<compile_context>
chip_gen: v7x
topology: tpu7x:2x2x1
jax: 0.10.0
libtpu: 0.0.40
codegen_flags: <defaults>
</compile_context>

<pallas_src>
import functools

import numpy as np
import jax
import jax.numpy as jnp
from jax import lax
from jax.experimental import pallas as pl
from jax.experimental.pallas import tpu as pltpu

RESIZE = 320                 # F.interpolate(size=(320, 320)) hard-coded in the module
PATCH = 16                   # synthetic stem patch size
EMBED_DIM = 128              # padded (64 -> 128) for full MXU lane fill / unmasked stores
NUM_CLASSES = 100            # RegressionModel(num_classes=100)
NUM_CLASSES_PADDED = 128     # lane-dense head; padded classes masked to -inf

NORM_MEAN = jnp.array([0.485, 0.456, 0.406], jnp.float32)
NORM_STD = jnp.array([0.229, 0.224, 0.225], jnp.float32)


# ---------------------------------------------------------------------------
# Bilinear resize matrix (PyTorch F.interpolate, mode='bilinear',
# align_corners=False).  Built in numpy so it bakes in as a constant.
# ---------------------------------------------------------------------------
def _bilinear_matrix(out_size, in_size):
    scale = in_size / out_size
    dst = np.arange(out_size, dtype=np.float64)
    src = np.maximum((dst + 0.5) * scale - 0.5, 0.0)
    i0 = np.clip(np.floor(src).astype(np.int64), 0, in_size - 1)
    i1 = np.minimum(i0 + 1, in_size - 1)
    f = src - i0.astype(np.float64)
    w = np.zeros((out_size, in_size), np.float64)
    rows = np.arange(out_size)
    np.add.at(w, (rows, i0), 1.0 - f)
    np.add.at(w, (rows, i1), f)
    return jnp.asarray(w, jnp.float32)


# ---------------------------------------------------------------------------
# Kernel 1: per-image normalize (scale/shift, no divide) + bilinear resize.
# One grid step handles all C channels of one image.  bf16 matmuls, f32 acc,
# bf16 output (halves writeback bytes — kernel is store-bound at small H, W).
# ---------------------------------------------------------------------------
def _resize_norm_kernel(num_c, scale_ref, shift_ref, x_ref, wy_ref, wxt_ref, o_ref):
    i = pl.program_id(0)
    # Resident resize weights: load once per grid step, reuse across channels.
    wy = wy_ref[...]                                        # (320, H) bf16
    wxt = wxt_ref[...]                                      # (W, 320) bf16
    for c in range(num_c):                                  # static 3-iteration loop
        sc = scale_ref[i * num_c + c]                       # SMEM scalars
        sh = shift_ref[i * num_c + c]
        xn = (x_ref[0, c] * sc + sh).astype(jnp.bfloat16)   # (H, W) affine, no divide
        # out = Wy @ (xn @ WxT): small (H, 320) intermediate, big matmul has N=320.
        tmp = jnp.dot(xn, wxt, preferred_element_type=jnp.float32)        # (H, 320)
        out = jnp.dot(wy, tmp.astype(jnp.bfloat16),
                      preferred_element_type=jnp.float32)                 # (320, 320)
        o_ref[0, c] = out.astype(jnp.bfloat16)


def pallas_resize_norm(x, scale, shift):
    """x: (N, C, H, W) f32; scale/shift: (N*C,) f32 -> (N, C, 320, 320) bf16."""
    N, C, H, W = x.shape
    wy = _bilinear_matrix(RESIZE, H).astype(jnp.bfloat16)       # (320, H)
    wxt = _bilinear_matrix(RESIZE, W).T.astype(jnp.bfloat16)    # (W, 320)

    out = pl.pallas_call(
        functools.partial(_resize_norm_kernel, C),
        grid=(N,),
        in_specs=[
            pl.BlockSpec(memory_space=pltpu.SMEM),                       # scale per (n, c)
            pl.BlockSpec(memory_space=pltpu.SMEM),                       # shift per (n, c)
            pl.BlockSpec((1, C, H, W), lambda i: (i, 0, 0, 0)),          # whole image
            pl.BlockSpec((RESIZE, H), lambda i: (0, 0)),                 # Wy (resident)
            pl.BlockSpec((W, RESIZE), lambda i: (0, 0)),                 # Wx^T (resident)
        ],
        out_specs=pl.BlockSpec((1, C, RESIZE, RESIZE), lambda i: (i, 0, 0, 0)),
        out_shape=jax.ShapeDtypeStruct((N, C, RESIZE, RESIZE), jnp.bfloat16),
        compiler_params=pltpu.CompilerParams(dimension_semantics=("parallel",)),
    )(scale.astype(jnp.float32), shift.astype(jnp.float32), x.astype(jnp.float32),
      wy, wxt)
    return out


# ---------------------------------------------------------------------------
# Patchify (XLA glue): (N, C, 320, 320) -> (N, 400, 768) tokens.
# ---------------------------------------------------------------------------
def _patchify(x, patch):
    N, C, H, W = x.shape
    gh, gw = H // patch, W // patch
    x = x.reshape(N, C, gh, patch, gw, patch)
    x = x.transpose(0, 2, 4, 1, 3, 5)                # N, gh, gw, C, p, p
    return x.reshape(N, gh * gw, C * patch * patch)


# ---------------------------------------------------------------------------
# Kernel 2: synthetic age net — patch-embed matmul (bf16, M=400, N=128),
# GELU, mean pool, lane-dense 128-class head; padded classes masked to -inf.
# One grid step per image; weights stay resident across steps.
# ---------------------------------------------------------------------------
def _agenet_kernel(tok_ref, w1_ref, b1_ref, w2_ref, b2_ref, logit_ref):
    t = tok_ref[0]                                                           # (T, P) bf16
    h = jnp.dot(t, w1_ref[...], preferred_element_type=jnp.float32) + b1_ref[...]
    # NOTE: torch nn.GELU defaults to exact erf; tanh approximation is used here
    # (synthetic head, not compared bit-for-bit against a torch checkpoint).
    h = jax.nn.gelu(h, approximate=True)                                     # (T, D) f32
    pooled = jnp.mean(h, axis=0, keepdims=True)                              # (1, D)
    logits = jnp.dot(pooled.astype(jnp.bfloat16), w2_ref[...],
                     preferred_element_type=jnp.float32) + b2_ref[...]       # (1, NCP)
    col = lax.broadcasted_iota(jnp.int32, logits.shape, 1)
    logit_ref[0] = jnp.where(col < NUM_CLASSES, logits, -jnp.inf)


def pallas_agenet(tokens, w1, b1, w2, b2):
    """tokens: (N, T, P) bf16 -> masked logits (N, NUM_CLASSES_PADDED) f32."""
    N, T, P = tokens.shape
    D = w1.shape[1]
    NCP = w2.shape[1]
    logits = pl.pallas_call(
        _agenet_kernel,
        grid=(N,),
        in_specs=[
            pl.BlockSpec((1, T, P), lambda b: (b, 0, 0)),
            pl.BlockSpec((P, D), lambda b: (0, 0)),
            pl.BlockSpec((1, D), lambda b: (0, 0)),
            pl.BlockSpec((D, NCP), lambda b: (0, 0)),
            pl.BlockSpec((1, NCP), lambda b: (0, 0)),
        ],
        out_specs=pl.BlockSpec((1, 1, NCP), lambda b: (b, 0, 0)),
        out_shape=jax.ShapeDtypeStruct((N, 1, NCP), jnp.float32),
        compiler_params=pltpu.CompilerParams(dimension_semantics=("parallel",)),
    )(tokens, w1, b1, w2, b2)
    return logits[:, 0, :]


# ---------------------------------------------------------------------------
# Parameters for the synthetic age net.
# ---------------------------------------------------------------------------
def init_age_net_params(key):
    k1, k2 = jax.random.split(key)
    patch_dim = 3 * PATCH * PATCH
    w1 = (jax.random.normal(k1, (patch_dim, EMBED_DIM), jnp.float32) * 0.02
          ).astype(jnp.bfloat16)
    b1 = jnp.zeros((1, EMBED_DIM), jnp.float32)
    w2 = jax.random.normal(k2, (EMBED_DIM, NUM_CLASSES_PADDED), jnp.float32) * 0.02
    # zero padded class columns (they are masked to -inf in-kernel anyway)
    w2 = (w2 * (jnp.arange(NUM_CLASSES_PADDED) < NUM_CLASSES)).astype(jnp.bfloat16)
    b2 = jnp.zeros((1, NUM_CLASSES_PADDED), jnp.float32)
    return (w1, b1, w2, b2)


# ---------------------------------------------------------------------------
# AgingLoss forward: y and y_hat processed as a single 2B-image batch.
# ---------------------------------------------------------------------------
@jax.jit
def _forward_device(y_hat, y, target_ages, params):
    B, C = y.shape[0], y.shape[1]
    x_all = jnp.concatenate([y, y_hat], axis=0).astype(jnp.float32)          # (2B, C, H, W)

    # per-plane affine: identity for raw y, ImageNet (x - mean) * (1/std) for y_hat
    inv_std = 1.0 / NORM_STD
    scale = jnp.concatenate(
        [jnp.ones((B, C), jnp.float32), jnp.broadcast_to(inv_std, (B, C))], axis=0
    ).reshape(-1)
    shift = jnp.concatenate(
        [jnp.zeros((B, C), jnp.float32),
         jnp.broadcast_to(-NORM_MEAN * inv_std, (B, C))], axis=0
    ).reshape(-1)

    resized = pallas_resize_norm(x_all, scale, shift)        # (2B, C, 320, 320) bf16
    tokens = _patchify(resized, PATCH)                       # (2B, 400, 768) bf16
    logits = pallas_agenet(tokens, *params)                  # (2B, 128) f32, padded -> -inf
    ages = jnp.argmax(logits, axis=1).astype(jnp.float32)    # torch argmax(1) * 1.0

    input_ages = ages[:B] / 100.0
    output_ages = ages[B:] / 100.0
    loss = jnp.mean((output_ages - target_ages.astype(jnp.float32)) ** 2)    # F.mse_loss
    return loss, input_ages, output_ages


def aging_loss_forward(y_hat, y, target_ages, id_logs, params, label=None):
    n_samples = int(y.shape[0])
    if id_logs is None:
        id_logs = []

    loss, input_ages, output_ages = _forward_device(y_hat, y, target_ages, params)
    # single host fetch for logging (no per-scalar device->host syncs)
    in_np, out_np, tgt_np = jax.device_get((input_ages, output_ages, target_ages))

    for i in range(n_samples):
        entry = {
            f'input_age_{label}': float(in_np[i]) * 100,
            f'output_age_{label}': float(out_np[i]) * 100,
            f'target_age_{label}': float(tgt_np[i]) * 100,
        }
        if len(id_logs) > i:
            id_logs[i].update(entry)
        else:
            id_logs.append(entry)

    return loss, id_logs


if __name__ == "__main__":
    key = jax.random.PRNGKey(0)
    k_yhat, k_y, k_t, k_params = jax.random.split(key, 4)

    B, C, H, W = 2, 3, 16, 16
    y_hat = jax.random.uniform(k_yhat, (B, C, H, W), jnp.float32)
    y = jax.random.uniform(k_y, (B, C, H, W), jnp.float32)
    target_ages = jax.random.uniform(k_t, (B,), jnp.float32)

    params = init_age_net_params(k_params)

    loss, id_logs = aging_loss_forward(y_hat, y, target_ages, None, params, label="synk")
    jax.block_until_ready(loss)
    print("KERNEL_OK")
</pallas_src>

<mosaic_0001>
module attributes {stable_mosaic.version = 11 : i64} {
  func.func @_resize_norm_kernel(%arg0: i32, %arg1: memref<12xf32, #tpu.memory_space<smem>>, %arg2: memref<12xf32, #tpu.memory_space<smem>>, %arg3: memref<1x3x16x16xf32, #tpu.memory_space<vmem>>, %arg4: memref<320x16xbf16, #tpu.memory_space<vmem>>, %arg5: memref<16x320xbf16, #tpu.memory_space<vmem>>, %arg6: memref<1x3x320x320xbf16, #tpu.memory_space<vmem>>) attributes {dimension_semantics = [#tpu.dimension_semantics<parallel>], iteration_bounds = array<i64: 4>, scalar_prefetch = 0 : i64, scratch_operands = 0 : i64, tpu.core_type = #tpu.core_type<tc>, window_params = [{transform_indices = @transform_0, window_bounds = array<i64: 12>}, {transform_indices = @transform_1, window_bounds = array<i64: 12>}, {transform_indices = @transform_2, window_bounds = array<i64: 1, 3, 16, 16>}, {pipeline_mode = #tpu.pipeline_mode<synchronous>, transform_indices = @transform_3, window_bounds = array<i64: 320, 16>}, {pipeline_mode = #tpu.pipeline_mode<synchronous>, transform_indices = @transform_4, window_bounds = array<i64: 16, 320>}, {transform_indices = @transform_5, window_bounds = array<i64: 1, 3, 320, 320>}]} {
    %c0 = arith.constant 0 : index
    %c0_0 = arith.constant 0 : index
    %0 = vector.load %arg4[%c0, %c0_0] : memref<320x16xbf16, #tpu.memory_space<vmem>>, vector<320x16xbf16>
    %c0_1 = arith.constant 0 : index
    %c0_2 = arith.constant 0 : index
    %1 = vector.load %arg5[%c0_1, %c0_2] : memref<16x320xbf16, #tpu.memory_space<vmem>>, vector<16x320xbf16>
    %c3_i32 = arith.constant 3 : i32
    %2 = arith.muli %arg0, %c3_i32 : i32
    %c0_i32 = arith.constant 0 : i32
    %3 = arith.addi %2, %c0_i32 : i32
    %4 = arith.index_cast %3 : i32 to index
    %5 = memref.load %arg1[%4] : memref<12xf32, #tpu.memory_space<smem>>
    %c3_i32_3 = arith.constant 3 : i32
    %6 = arith.muli %arg0, %c3_i32_3 : i32
    %c0_i32_4 = arith.constant 0 : i32
    %7 = arith.addi %6, %c0_i32_4 : i32
    %8 = arith.index_cast %7 : i32 to index
    %9 = memref.load %arg2[%8] : memref<12xf32, #tpu.memory_space<smem>>
    %c0_5 = arith.constant 0 : index
    %c0_6 = arith.constant 0 : index
    %c0_7 = arith.constant 0 : index
    %c0_8 = arith.constant 0 : index
    %10 = vector.load %arg3[%c0_5, %c0_6, %c0_7, %c0_8] : memref<1x3x16x16xf32, #tpu.memory_space<vmem>>, vector<1x1x16x16xf32>
    %11 = vector.shape_cast %10 : vector<1x1x16x16xf32> to vector<16x16xf32>
    %12 = vector.broadcast %5 : f32 to vector<16x16xf32>
    %13 = arith.mulf %11, %12 : vector<16x16xf32>
    %14 = vector.broadcast %9 : f32 to vector<16x16xf32>
    %15 = arith.addf %13, %14 : vector<16x16xf32>
    %16 = arith.truncf %15 : vector<16x16xf32> to vector<16x16xbf16>
    %cst = arith.constant dense<0.000000e+00> : vector<16x320xf32>
    %17 = tpu.matmul %16, %1, %cst {dimension_numbers = #tpu.dot_dimension_numbers<[1], [0], [0], [1], [0, 0, 1, 1], [], []>} : vector<16x16xbf16>, vector<16x320xbf16>, vector<16x320xf32> -> vector<16x320xf32>
    %18 = arith.truncf %17 : vector<16x320xf32> to vector<16x320xbf16>
    %cst_9 = arith.constant dense<0.000000e+00> : vector<320x320xf32>
    %19 = tpu.matmul %0, %18, %cst_9 {dimension_numbers = #tpu.dot_dimension_numbers<[1], [0], [0], [1], [0, 0, 1, 1], [], []>} : vector<320x16xbf16>, vector<16x320xbf16>, vector<320x320xf32> -> vector<320x320xf32>
    %20 = arith.truncf %19 : vector<320x320xf32> to vector<320x320xbf16>
    %c0_10 = arith.constant 0 : index
    %c0_11 = arith.constant 0 : index
    %c0_12 = arith.constant 0 : index
    %c0_13 = arith.constant 0 : index
    %21 = vector.load %arg6[%c0_10, %c0_11, %c0_12, %c0_13] : memref<1x3x320x320xbf16, #tpu.memory_space<vmem>>, vector<1x1x320x320xbf16>
    %22 = vector.shape_cast %21 : vector<1x1x320x320xbf16> to vector<320x320xbf16>
    %23 = vector.shape_cast %20 : vector<320x320xbf16> to vector<1x1x320x320xbf16>
    tpu.vector_store %arg6[%c0_10, %c0_11, %c0_12, %c0_13], %23 {strides = array<i32>} : memref<1x3x320x320xbf16, #tpu.memory_space<vmem>>, vector<1x1x320x320xbf16>,
    %c3_i32_14 = arith.constant 3 : i32
    %24 = arith.muli %arg0, %c3_i32_14 : i32
    %c1_i32 = arith.constant 1 : i32
    %25 = arith.addi %24, %c1_i32 : i32
    %26 = arith.index_cast %25 : i32 to index
    %27 = memref.load %arg1[%26] : memref<12xf32, #tpu.memory_space<smem>>
    %c3_i32_15 = arith.constant 3 : i32
    %28 = arith.muli %arg0, %c3_i32_15 : i32
    %c1_i32_16 = arith.constant 1 : i32
    %29 = arith.addi %28, %c1_i32_16 : i32
    %30 = arith.index_cast %29 : i32 to index
    %31 = memref.load %arg2[%30] : memref<12xf32, #tpu.memory_space<smem>>
    %c0_17 = arith.constant 0 : index
    %c1 = arith.constant 1 : index
    %c0_18 = arith.constant 0 : index
    %c0_19 = arith.constant 0 : index
    %32 = vector.load %arg3[%c0_17, %c1, %c0_18, %c0_19] : memref<1x3x16x16xf32, #tpu.memory_space<vmem>>, vector<1x1x16x16xf32>
    %33 = vector.shape_cast %32 : vector<1x1x16x16xf32> to vector<16x16xf32>
    %34 = vector.broadcast %27 : f32 to vector<16x16xf32>
    %35 = arith.mulf %33, %34 : vector<16x16xf32>
    %36 = vector.broadcast %31 : f32 to vector<16x16xf32>
    %37 = arith.addf %35, %36 : vector<16x16xf32>
    %38 = arith.truncf %37 : vector<16x16xf32> to vector<16x16xbf16>
    %cst_20 = arith.constant dense<0.000000e+00> : vector<16x320xf32>
    %39 = tpu.matmul %38, %1, %cst_20 {dimension_numbers = #tpu.dot_dimension_numbers<[1], [0], [0], [1], [0, 0, 1, 1], [], []>} : vector<16x16xbf16>, vector<16x320xbf16>, vector<16x320xf32> -> vector<16x320xf32>
    %40 = arith.truncf %39 : vector<16x320xf32> to vector<16x320xbf16>
    %cst_21 = arith.constant dense<0.000000e+00> : vector<320x320xf32>
    %41 = tpu.matmul %0, %40, %cst_21 {dimension_numbers = #tpu.dot_dimension_numbers<[1], [0], [0], [1], [0, 0, 1, 1], [], []>} : vector<320x16xbf16>, vector<16x320xbf16>, vector<320x320xf32> -> vector<320x320xf32>
    %42 = arith.truncf %41 : vector<320x320xf32> to vector<320x320xbf16>
    %c0_22 = arith.constant 0 : index
    %c1_23 = arith.constant 1 : index
    %c0_24 = arith.constant 0 : index
    %c0_25 = arith.constant 0 : index
    %43 = vector.load %arg6[%c0_22, %c1_23, %c0_24, %c0_25] : memref<1x3x320x320xbf16, #tpu.memory_space<vmem>>, vector<1x1x320x320xbf16>
    %44 = vector.shape_cast %43 : vector<1x1x320x320xbf16> to vector<320x320xbf16>
    %45 = vector.shape_cast %42 : vector<320x320xbf16> to vector<1x1x320x320xbf16>
    tpu.vector_store %arg6[%c0_22, %c1_23, %c0_24, %c0_25], %45 {strides = array<i32>} : memref<1x3x320x320xbf16, #tpu.memory_space<vmem>>, vector<1x1x320x320xbf16>,
    %c3_i32_26 = arith.constant 3 : i32
    %46 = arith.muli %arg0, %c3_i32_26 : i32
    %c2_i32 = arith.constant 2 : i32
    %47 = arith.addi %46, %c2_i32 : i32
    %48 = arith.index_cast %47 : i32 to index
    %49 = memref.load %arg1[%48] : memref<12xf32, #tpu.memory_space<smem>>
    %c3_i32_27 = arith.constant 3 : i32
    %50 = arith.muli %arg0, %c3_i32_27 : i32
    %c2_i32_28 = arith.constant 2 : i32
    %51 = arith.addi %50, %c2_i32_28 : i32
    %52 = arith.index_cast %51 : i32 to index
    %53 = memref.load %arg2[%52] : memref<12xf32, #tpu.memory_space<smem>>
    %c0_29 = arith.constant 0 : index
    %c2 = arith.constant 2 : index
    %c0_30 = arith.constant 0 : index
    %c0_31 = arith.constant 0 : index
    %54 = vector.load %arg3[%c0_29, %c2, %c0_30, %c0_31] : memref<1x3x16x16xf32, #tpu.memory_space<vmem>>, vector<1x1x16x16xf32>
    %55 = vector.shape_cast %54 : vector<1x1x16x16xf32> to vector<16x16xf32>
    %56 = vector.broadcast %49 : f32 to vector<16x16xf32>
    %57 = arith.mulf %55, %56 : vector<16x16xf32>
    %58 = vector.broadcast %53 : f32 to vector<16x16xf32>
    %59 = arith.addf %57, %58 : vector<16x16xf32>
    %60 = arith.truncf %59 : vector<16x16xf32> to vector<16x16xbf16>
    %cst_32 = arith.constant dense<0.000000e+00> : vector<16x320xf32>
    %61 = tpu.matmul %60, %1, %cst_32 {dimension_numbers = #tpu.dot_dimension_numbers<[1], [0], [0], [1], [0, 0, 1, 1], [], []>} : vector<16x16xbf16>, vector<16x320xbf16>, vector<16x320xf32> -> vector<16x320xf32>
    %62 = arith.truncf %61 : vector<16x320xf32> to vector<16x320xbf16>
    %cst_33 = arith.constant dense<0.000000e+00> : vector<320x320xf32>
    %63 = tpu.matmul %0, %62, %cst_33 {dimension_numbers = #tpu.dot_dimension_numbers<[1], [0], [0], [1], [0, 0, 1, 1], [], []>} : vector<320x16xbf16>, vector<16x320xbf16>, vector<320x320xf32> -> vector<320x320xf32>
    %64 = arith.truncf %63 : vector<320x320xf32> to vector<320x320xbf16>
    %c0_34 = arith.constant 0 : index
    %c2_35 = arith.constant 2 : index
    %c0_36 = arith.constant 0 : index
    %c0_37 = arith.constant 0 : index
    %65 = vector.load %arg6[%c0_34, %c2_35, %c0_36, %c0_37] : memref<1x3x320x320xbf16, #tpu.memory_space<vmem>>, vector<1x1x320x320xbf16>
    %66 = vector.shape_cast %65 : vector<1x1x320x320xbf16> to vector<320x320xbf16>
    %67 = vector.shape_cast %64 : vector<320x320xbf16> to vector<1x1x320x320xbf16>
    tpu.vector_store %arg6[%c0_34, %c2_35, %c0_36, %c0_37], %67 {strides = array<i32>} : memref<1x3x320x320xbf16, #tpu.memory_space<vmem>>, vector<1x1x320x320xbf16>,
    return
  }
  func.func @transform_0(%arg0: i32) -> i32 {
    %c0_i32 = arith.constant 0 : i32
    %c0_i32_0 = arith.constant 0 : i32
    return %c0_i32 : i32
  }
  func.func @transform_1(%arg0: i32) -> i32 {
    %c0_i32 = arith.constant 0 : i32
    %c0_i32_0 = arith.constant 0 : i32
    return %c0_i32 : i32
  }
  func.func @transform_2(%arg0: i32) -> (i32, i32, i32, i32) {
    %c0_i32 = arith.constant 0 : i32
    %c0_i32_0 = arith.constant 0 : i32
    %c0_i32_1 = arith.constant 0 : i32
    %c0_i32_2 = arith.constant 0 : i32
    return %arg0, %c0_i32, %c0_i32_0, %c0_i32_1 : i32, i32, i32, i32
  }
  func.func @transform_3(%arg0: i32) -> (i32, i32) {
    %c0_i32 = arith.constant 0 : i32
    %c0_i32_0 = arith.constant 0 : i32
    %c0_i32_1 = arith.constant 0 : i32
    return %c0_i32, %c0_i32_0 : i32, i32
  }
  func.func @transform_4(%arg0: i32) -> (i32, i32) {
    %c0_i32 = arith.constant 0 : i32
    %c0_i32_0 = arith.constant 0 : i32
    %c0_i32_1 = arith.constant 0 : i32
    return %c0_i32, %c0_i32_0 : i32, i32
  }
  func.func @transform_5(%arg0: i32) -> (i32, i32, i32, i32) {
    %c0_i32 = arith.constant 0 : i32
    %c0_i32_0 = arith.constant 0 : i32
    %c0_i32_1 = arith.constant 0 : i32
    %c0_i32_2 = arith.constant 0 : i32
    return %arg0, %c0_i32, %c0_i32_0, %c0_i32_1 : i32, i32, i32, i32
  }
}

module attributes {stable_mosaic.version = 11 : i64} {
  func.func @_agenet_kernel(%arg0: i32, %arg1: memref<1x400x768xbf16, #tpu.memory_space<vmem>>, %arg2: memref<768x128xbf16, #tpu.memory_space<vmem>>, %arg3: memref<1x128xf32, #tpu.memory_space<vmem>>, %arg4: memref<128x128xbf16, #tpu.memory_space<vmem>>, %arg5: memref<1x128xf32, #tpu.memory_space<vmem>>, %arg6: memref<1x1x128xf32, #tpu.memory_space<vmem>>) attributes {dimension_semantics = [#tpu.dimension_semantics<parallel>], iteration_bounds = array<i64: 4>, scalar_prefetch = 0 : i64, scratch_operands = 0 : i64, tpu.core_type = #tpu.core_type<tc>, window_params = [{transform_indices = @transform_0, window_bounds = array<i64: 1, 400, 768>}, {pipeline_mode = #tpu.pipeline_mode<synchronous>, transform_indices = @transform_1, window_bounds = array<i64: 768, 128>}, {pipeline_mode = #tpu.pipeline_mode<synchronous>, transform_indices = @transform_2, window_bounds = array<i64: 1, 128>}, {pipeline_mode = #tpu.pipeline_mode<synchronous>, transform_indices = @transform_3, window_bounds = array<i64: 128, 128>}, {pipeline_mode = #tpu.pipeline_mode<synchronous>, transform_indices = @transform_4, window_bounds = array<i64: 1, 128>}, {transform_indices = @transform_5, window_bounds = array<i64: 1, 1, 128>}]} {
    %c0 = arith.constant 0 : index
    %c0_0 = arith.constant 0 : index
    %c0_1 = arith.constant 0 : index
    %0 = vector.load %arg1[%c0, %c0_0, %c0_1] : memref<1x400x768xbf16, #tpu.memory_space<vmem>>, vector<1x400x768xbf16>
    %1 = vector.shape_cast %0 : vector<1x400x768xbf16> to vector<400x768xbf16>
    %c0_2 = arith.constant 0 : index
    %c0_3 = arith.constant 0 : index
    %2 = vector.load %arg2[%c0_2, %c0_3] : memref<768x128xbf16, #tpu.memory_space<vmem>>, vector<768x128xbf16>
    %cst = arith.constant dense<0.000000e+00> : vector<400x128xf32>
    %3 = tpu.matmul %1, %2, %cst {dimension_numbers = #tpu.dot_dimension_numbers<[1], [0], [0], [1], [0, 0, 1, 1], [], []>} : vector<400x768xbf16>, vector<768x128xbf16>, vector<400x128xf32> -> vector<400x128xf32>
    %c0_4 = arith.constant 0 : index
    %c0_5 = arith.constant 0 : index
    %4 = vector.load %arg3[%c0_4, %c0_5] : memref<1x128xf32, #tpu.memory_space<vmem>>, vector<1x128xf32>
    %5 = vector.broadcast %4 : vector<1x128xf32> to vector<400x128xf32>
    %6 = arith.addf %3, %5 : vector<400x128xf32>
    %7 = arith.mulf %6, %6 : vector<400x128xf32>
    %8 = arith.mulf %6, %7 : vector<400x128xf32>
    %cst_6 = arith.constant 4.471500e-02 : f32
    %9 = vector.broadcast %cst_6 : f32 to vector<400x128xf32>
    %10 = arith.mulf %9, %8 : vector<400x128xf32>
    %11 = arith.addf %6, %10 : vector<400x128xf32>
    %cst_7 = arith.constant 0.797884583 : f32
    %12 = vector.broadcast %cst_7 : f32 to vector<400x128xf32>
    %13 = arith.mulf %12, %11 : vector<400x128xf32>
    %14 = math.tanh %13 : vector<400x128xf32>
    %cst_8 = arith.constant 1.000000e+00 : f32
    %15 = vector.broadcast %cst_8 : f32 to vector<400x128xf32>
    %16 = arith.addf %15, %14 : vector<400x128xf32>
    %cst_9 = arith.constant 5.000000e-01 : f32
    %17 = vector.broadcast %cst_9 : f32 to vector<400x128xf32>
    %18 = arith.mulf %17, %16 : vector<400x128xf32>
    %19 = arith.mulf %6, %18 : vector<400x128xf32>
    %cst_10 = arith.constant dense<0.000000e+00> : vector<128xf32>
    %20 = vector.multi_reduction <add>, %19, %cst_10 [0] : vector<400x128xf32> to vector<128xf32>
    %21 = vector.shape_cast %20 : vector<128xf32> to vector<1x128xf32>
    %cst_11 = arith.constant 4.000000e+02 : f32
    %22 = vector.broadcast %cst_11 : f32 to vector<1x128xf32>
    %23 = arith.divf %21, %22 : vector<1x128xf32>
    %24 = arith.truncf %23 : vector<1x128xf32> to vector<1x128xbf16>
    %c0_12 = arith.constant 0 : index
    %c0_13 = arith.constant 0 : index
    %25 = vector.load %arg4[%c0_12, %c0_13] : memref<128x128xbf16, #tpu.memory_space<vmem>>, vector<128x128xbf16>
    %cst_14 = arith.constant dense<0.000000e+00> : vector<1x128xf32>
    %26 = tpu.matmul %24, %25, %cst_14 {dimension_numbers = #tpu.dot_dimension_numbers<[1], [0], [0], [1], [0, 0, 1, 1], [], []>} : vector<1x128xbf16>, vector<128x128xbf16>, vector<1x128xf32> -> vector<1x128xf32>
    %c0_15 = arith.constant 0 : index
    %c0_16 = arith.constant 0 : index
    %27 = vector.load %arg5[%c0_15, %c0_16] : memref<1x128xf32, #tpu.memory_space<vmem>>, vector<1x128xf32>
    %28 = arith.addf %26, %27 : vector<1x128xf32>
    %29 = tpu.iota {dimensions = array<i32: 1>} : vector<1x128xi32>
    %c100_i32 = arith.constant 100 : i32
    %30 = vector.broadcast %c100_i32 : i32 to vector<1x128xi32>
    %31 = arith.cmpi slt, %29, %30 : vector<1x128xi32>
    %cst_17 = arith.constant 0xFF800000 : f32
    %32 = vector.broadcast %cst_17 : f32 to vector<1x128xf32>
    %33 = arith.select %31, %28, %32 : vector<1x128xi1>, vector<1x128xf32>
    %c0_18 = arith.constant 0 : index
    %c0_19 = arith.constant 0 : index
    %c0_20 = arith.constant 0 : index
    %34 = vector.load %arg6[%c0_18, %c0_19, %c0_20] : memref<1x1x128xf32, #tpu.memory_space<vmem>>, vector<1x1x128xf32>
    %35 = vector.shape_cast %34 : vector<1x1x128xf32> to vector<1x128xf32>
    %36 = vector.shape_cast %33 : vector<1x128xf32> to vector<1x1x128xf32>
    tpu.vector_store %arg6[%c0_18, %c0_19, %c0_20], %36 {strides = array<i32>} : memref<1x1x128xf32, #tpu.memory_space<vmem>>, vector<1x1x128xf32>,
    return
  }
  func.func @transform_0(%arg0: i32) -> (i32, i32, i32) {
    %c0_i32 = arith.constant 0 : i32
    %c0_i32_0 = arith.constant 0 : i32
    %c0_i32_1 = arith.constant 0 : i32
    return %arg0, %c0_i32, %c0_i32_0 : i32, i32, i32
  }
  func.func @transform_1(%arg0: i32) -> (i32, i32) {
    %c0_i32 = arith.constant 0 : i32
    %c0_i32_0 = arith.constant 0 : i32
    %c0_i32_1 = arith.constant 0 : i32
    return %c0_i32, %c0_i32_0 : i32, i32
  }
  func.func @transform_2(%arg0: i32) -> (i32, i32) {
    %c0_i32 = arith.constant 0 : i32
    %c0_i32_0 = arith.constant 0 : i32
    %c0_i32_1 = arith.constant 0 : i32
    return %c0_i32, %c0_i32_0 : i32, i32
  }
  func.func @transform_3(%arg0: i32) -> (i32, i32) {
    %c0_i32 = arith.constant 0 : i32
    %c0_i32_0 = arith.constant 0 : i32
    %c0_i32_1 = arith.constant 0 : i32
    return %c0_i32, %c0_i32_0 : i32, i32
  }
  func.func @transform_4(%arg0: i32) -> (i32, i32) {
    %c0_i32 = arith.constant 0 : i32
    %c0_i32_0 = arith.constant 0 : i32
    %c0_i32_1 = arith.constant 0 : i32
    return %c0_i32, %c0_i32_0 : i32, i32
  }
  func.func @transform_5(%arg0: i32) -> (i32, i32, i32) {
    %c0_i32 = arith.constant 0 : i32
    %c0_i32_0 = arith.constant 0 : i32
    %c0_i32_1 = arith.constant 0 : i32
    return %arg0, %c0_i32, %c0_i32_0 : i32, i32, i32
  }
}

</mosaic_0001>

<bundles_post_ra>
// kernel: _forward_device.2
= control target key start
LH: loop header
LB: loop body
LE: loop exit
PB: predicated region body
PF: predicated region fallthrough
CT: control target
= control target key end

     0   :  { %10 = vsyncpa [#allocation4], 0  ;;  %s5684_s0 = inlined_call_operand.vmem [shape: f32[12], index: 0, kind: input, shape index: {}]   ;;  %s5685_s1 = inlined_call_operand.vmem [shape: f32[12], index: 1, kind: input, shape index: {}]   ;;  %s5686_s2 = inlined_call_operand.vmem [shape: f32[4,3,16,16], index: 2, kind: input, shape index: {}]   ;;  %s5687_s3 = inlined_call_operand.hbm [shape: bf16[320,16], index: 3, kind: input, shape index: {}]   ;;  %s5688_s4 = inlined_call_operand.vmem [shape: bf16[16,320], index: 4, kind: input, shape index: {}]   ;;  %s5689_s5 = inlined_call_operand.vmem [shape: bf16[4,3,320,320], index: 5, kind: output, shape index: {}]  }
   0x1   :  { %11 = vsyncpa [#allocation6], 0 }
   0x2   :  { %12 = vsyncpa [#allocation3], 0  ;;  %s4837_s18 = smov 0  }
   0x3 LB: > { %s172_s21 = sshll.u32 %s5684_s0, 4  ;;  %s4846_s22 = sadd.s32 4294967295, %s4797_s18   ;;  %s4797_s18 = sphi %s4837_s18, %s18_s18   ;;  %s173_s21 = int_to_ptr.vmem [resolvable:$true] %s172_s21 }
   0x4   : > { %p3609_p0 = scmp.ge.s32.totalorder %s4797_s18, 1  ;;  %p159_p1 = scmp.lt.s32.totalorder %s4797_s18, 5 }
   0x5   : > { %p5690_p2 = scmp.eq.s32.totalorder %s4846_s22, 0  ;;  %s183_s26 = sshll.u32 %s5685_s1, 4  ;;  %s184_s26 = int_to_ptr.vmem [resolvable:$true] %s183_s26 }
   0x6   : > { %p4851_p3 = pnand %p3609_p0, %p159_p1  ;;  %s4799_s27 = smov [#allocation7]  }
   0x7   : > { %s193_s28 = sshll.u32 %s4799_s27, 4  ;;  %s4721_s30 = scalar_lea.vmem %s173_s21, 16  ;;  %s4866_s28 = int_to_ptr.vmem [resolvable:$true] %s193_s28 }
   0x8   : > { %s5692_s23 = scalar_select %p4851_p3, 1, 0 }
   0x9   : > { %p4644_p4 = pneg %p4851_p3  ;;  %p4722_p6 = scmp.ne.s32.totalorder %s173_s21, %s4721_s30 }
   0xa   : > { %p4729_p10 = scmp.lt.s32.totalorder %s173_s21, %s173_s21  ;;  %p4730_p11 = scmp.lt.s32.totalorder %s4721_s30, %s4721_s30 }
   0xb   : > { %p4862_p5 = pnand %p5690_p2, %p4644_p4 }
   0xc   : > { %p4731_p12 = por %p4730_p11, %p4729_p10 }
   0xd   : > { %p4723_p7 = pneg %p4862_p5 }
   0xf   : > { %p4724_p8 = pnand %p4723_p7, %p4722_p6 }
  0x11   : > { %p4725_p9 = pneg %p4724_p8 }
  0x13   : > { %p4732_p13 = pnand %p4731_p12, %p4725_p9 }
  0x15   : > { %4735 = shalt.err (!%p4732_p13)
}
  0x16   : > { %s4800_s6 = smov [#allocation2]   ;;  %s4736_s7 = scalar_lea.vmem %s184_s26, 16 }
  0x17   : > { %4647 = dma.vmem_to_smem (!%p4862_p5), %s173_s21, 16, %s4800_s6, [#allocation4]  }
  0x18   : > { %p4737_p0 = scmp.ne.s32.totalorder %s184_s26, %s4736_s7  ;;  %p4744_p2 = scmp.lt.s32.totalorder %s184_s26, %s184_s26 }
  0x19   : > { %p4745_p3 = scmp.lt.s32.totalorder %s4736_s7, %s4736_s7 }
  0x1a   : > { %p4739_p1 = pnand %p4737_p0, %p4723_p7 }
  0x1b   : > { %p4746_p6 = por %p4745_p3, %p4744_p2 }
  0x1c   : > { %p4740_p4 = pneg %p4739_p1 }
  0x1e   : > { %p4747_p8 = pnand %p4746_p6, %p4740_p4 }
  0x20   : > { %4750 = shalt.err (!%p4747_p8)
}
  0x21   : > { %s4801_s8 = smov [#allocation5]   ;;  %s4751_s11 = scalar_lea.hbm %s5687_s3, 2560 }
  0x22   : > { %4650 = dma.vmem_to_smem (!%p4862_p5), %s184_s26, 16, %s4801_s8, [#allocation6]  }
  0x23   : > { %p4752_p9 = scmp.ne.s32.totalorder %s5687_s3, %s4751_s11  ;;  %p4758_p2 = scmp.lt.u32.totalorder %s4751_s11, %s5687_s3 }
  0x25   : > { %p4754_p10 = pnand %p4752_p9, %p4723_p7 }
  0x27   : > { %p4755_p11 = pneg %p4754_p10 }
  0x29   : > { %p4760_p3 = pnand %p4758_p2, %p4755_p11 }
  0x2b   : > { %4763 = shalt.err (!%p4760_p3)
}
  0x2c   : > { %s4764_s16 = scalar_lea.vmem %s4866_s28, 2560  ;;  %p4772_p1 = scmp.lt.s32.totalorder %s4866_s28, %s4866_s28 }
  0x2d   : > { %p4765_p12 = scmp.ne.s32.totalorder %s4866_s28, %s4764_s16  ;;  %p4773_p4 = scmp.lt.s32.totalorder %s4764_s16, %s4764_s16 }
  0x2f   : > { %p4767_p13 = pnand %p4765_p12, %p4723_p7  ;;  %p4774_p6 = por %p4773_p4, %p4772_p1 }
  0x31   : > { %p4768_p0 = pneg %p4767_p13 }
  0x33   : > { %p4775_p8 = pnand %p4774_p6, %p4768_p0 }
  0x35   : > { %4778 = shalt.err (!%p4775_p8)
}
  0x36   : > { %s4802_s17 = smov 64   ;;  %s4803_s19 = smov 4  }
  0x37   : > { %4653 = dma.hbm_to_vmem [thread:$0]  (!%p4862_p5), %s5687_s3, 2560, %s4866_s28, [#allocation3], %s4802_s17, %s4802_s17, %s4803_s19  }
  0x38   : > { %p5694_p9 = scmp.ne.s32.totalorder %s5692_s23, 0 }
  0x39   : > { %p5695_p7 = scmp.eq.s32.totalorder (!%p5694_p9), %s4846_s22, 0 }
  0x3a   : > { %220 = sbr.rel (%p5694_p9) target bundleno = 1331 (0x533), region = 40 }
  0x41   : > { %4784 = dma.done.wait (%p5695_p7), [#allocation4], 16   ;;  %p5696_p10 = pmov %p5695_p7 }
  0x42   : > { %p5697_p11 = pmov %p5695_p7 }
  0x43   : > { %4786 = vsyncadd (%p5696_p10), [#allocation4], 4294967280 }
  0x44   : > { %4788 = dma.done.wait (%p5697_p11), [#allocation6], 16   ;;  %p5698_p2 = pmov %p5695_p7 }
  0x46   : > { %4790 = vsyncadd (%p5698_p2), [#allocation6], 4294967280  ;;  %p5699_p3 = pmov %p5698_p2 }
  0x47   : > { %p5700_p5 = pmov %p5698_p2 }
  0x48   : > { %4792 = dma.done.wait (%p5699_p3), [#allocation3], 2560  }
  0x49   : > { %4794 = vsyncadd (%p5700_p5), [#allocation3], 4294964736 }
  0x4a   : > { %234 = sfence }
  0x4b   : > { %v4922_v0 = vld [vmem:[%s5688_s4 + $0x4] ss:$12 sps:$4 sm:$0xff]   ;;  %p257_p12 = scmp.lt.s32.totalorder %s4846_s22, 3  ;;  %v4928_v1 = vld [vmem:[%s5688_s4] ss:$12 sps:$4 sm:$0xff]   ;;  %v4804_v2 = vmov 0  }
  0x4c   : > { %376 = vmatprep.mubr.bf16.mxu0 %v4804_v2  ;;  %s4932_s27 = smul.u32 3, %s4846_s22  ;;  %344 = vmatprep.subr.bf16.mxu0 %v4922_v0  ;;  %v4805_v3 = vmov 0.0   ;;  %v4945_v4 = vld [vmem:[%s5688_s4 + $0x8] ss:$12 sps:$4 sm:$0xff]   ;;  %vm4806_vm0 = vmmov 0   ;;  %vm340_vm1 = vcmask 130048  }
  0x4d   : > { %s5702_s22 = smov (!%p257_p12, %s4846_s22), 3  ;;  %4484 = vmatprep.subr.bf16.mxu1 %v4805_v3  ;;  %345 = vmatpush1.bf16.msra.mxu0 %v4928_v1  ;;  %v4962_v25 = vld [vmem:[#allocation7 + $0x78] sm:$0xff]   ;;  %v4964_v26 = vld [vmem:[#allocation7] sm:$0xff]   ;;  %v4975_v28 = vld [vmem:[#allocation7 + $0x8] sm:$0xff]   ;;  %vm1418_vm2 = vcmask 519168  }
  0x4e   : > { %s313_s28 = sld [smem:[#allocation2 + %s4932_s27]]  ;;  %4486 = vmatprep.mubr.msk.bf16.mxu1 %vm4806_vm0, %v4805_v3  ;;  %s4630_s7 = smul.u32 48, %s5702_s22  ;;  %4485 = vmatpush3.bf16.msra.mxu1 %v4945_v4  ;;  %v4973_v27 = vld [vmem:[#allocation7 + $0x80] sm:$0xff]   ;;  %v4983_v29 = vld [vmem:[#allocation7 + $0x88] sm:$0xff]   ;;  %v4985_v30 = vld [vmem:[#allocation7 + $0x10] sm:$0xff]  }
  0x4f   : > { %s314_s29 = sld [smem:[#allocation5 + %s4932_s27]]  ;;  %v4993_v31 = vld [vmem:[#allocation7 + $0x90] sm:$0xff]   ;;  %v4995_v32 = vld [vmem:[#allocation7 + $0x18] sm:$0xff]   ;;  %v5005_v34 = vld [vmem:[#allocation7 + $0x20] sm:$0xff]   ;;  %s1498_s11 = sadd.s32 1, %s4932_s27 }
  0x50   : > { %s4954_s10 = scalar_lea.vmem %s5686_s2, %s4630_s7  ;;  %v5003_v33 = vld [vmem:[#allocation7 + $0x98] sm:$0xff]   ;;  %v5014_v35 = vld [vmem:[#allocation7 + $0x28] sm:$0xff]   ;;  %v5025_v36 = vld [vmem:[#allocation7 + $0x30] sm:$0xff]   ;;  %s1499_s12 = sld [smem:[#allocation2 + %s1498_s11]] }
  0x51   : > { %v315_v5 = vld [vmem:[%s4954_s10] sm:$0xff]  ;;  %v316_v6 = vld [vmem:[%s4954_s10 + $0x8] sm:$0xff]  ;;  %v5034_v37 = vld [vmem:[#allocation7 + $0x38] sm:$0xff]   ;;  %s1500_s13 = sld [smem:[#allocation5 + %s1498_s11]]  ;;  %s4631_s14 = smul.u32 1440, %s5702_s22 }
  0x52   : > { %v5043_v38 = vld [vmem:[#allocation7 + $0x40] sm:$0xff]   ;;  %v5052_v39 = vld [vmem:[#allocation7 + $0x48] sm:$0xff]   ;;  %v5054_v40 = vld [vmem:[#allocation7 + $0x50] sm:$0xff]   ;;  %s2508_s22 = sadd.s32 2, %s4932_s27 }
  0x53   : > { %v5063_v41 = vld [vmem:[#allocation7 + $0x58] sm:$0xff]   ;;  %v5065_v42 = vld [vmem:[#allocation7 + $0x60] sm:$0xff]   ;;  %v5074_v43 = vld [vmem:[#allocation7 + $0x68] sm:$0xff]   ;;  %s5119_s17 = scalar_lea.vmem %s5689_s5, %s4631_s14  ;;  %s2509_s19 = sld [smem:[#allocation2 + %s2508_s22]] }
  0x54   : > { %v317_v7 = vstv %s313_s28  ;;  %v5076_v44 = vld [vmem:[#allocation7 + $0x70] sm:$0xff]   ;;  %v3766_v46 = vld [vmem:[%s4954_s10 + $0x18] sm:$0xff]  ;;  %s2510_s20 = sld [smem:[#allocation5 + %s2508_s22]] }
  0x55   : > { %v320_v8 = vstv %s314_s29  ;;  %v318_v9 = vmul.f32 %v317_v7, %v315_v5  ;;  %v319_v10 = vmul.f32 %v317_v7, %v316_v6  ;;  %v3765_v45 = vld [vmem:[%s4954_s10 + $0x10] sm:$0xff] }
  0x56   : > { %v1504_v47 = vstv %s1499_s12 }
  0x57   : > { %v321_v11 = vadd.f32 %v320_v8, %v318_v9  ;;  %v322_v12 = vadd.f32 %v320_v8, %v319_v10  ;;  %v1505_v48 = vmul.f32 %v3765_v45, %v1504_v47  ;;  %v1506_v49 = vmul.f32 %v3766_v46, %v1504_v47 }
  0x58   : > { %v1507_v50 = vstv %s1500_s13 }
  0x59   : > { %v323_v13 = vpack.c.bf16 %v322_v12, %v321_v11  ;;  %v1508_v51 = vadd.f32 %v1507_v50, %v1505_v48  ;;  %v1509_v52 = vadd.f32 %v1507_v50, %v1506_v49 }
  0x5b   : > { %3623 = vmatmul.mubr.msk.bf16.vlgmr.msra.gmra.mrb[0].mxu0 %vm340_vm1, %v323_v13  ;;  %4487 = vmatmul.mubr.msk.bf16.vlgmr.msra.gmra.mrb[0].mxu1 %vm340_vm1, %v323_v13  ;;  %v1510_v53 = vpack.c.bf16 %v1509_v52, %v1508_v51 }
  0x5c   : > { %773 = vmatprep.mubr.bf16.mxu1 %v4804_v2  ;;  %623 = vmatprep.mubr.bf16.mxu0 %v4804_v2 }
 0x12e   : > { %v378_v14 = vpop.f32.mrb[0].mxu0  ;;  %v421_v15 = vpop.f32.mrb[0].mxu1 }
 0x12f   : > { %v380_v16 = vpop.f32.mrb[1].mxu0  ;;  %v4488_v17 = vpop.f32.mrb[1].mxu1 }
 0x130   : > { %v382_v18 = vpop.f32.mrb[2].mxu0  ;;  %v424_v19 = vpop.f32.mrb[2].mxu1 }
 0x131   : > { %v428_v20 = vpack.c.bf16 %v382_v18, %v378_v14  ;;  %v384_v21 = vpop.f32.mrb[3].mxu0  ;;  %v430_v22 = vpack.c.bf16 %v424_v19, %v421_v15  ;;  %v4489_v23 = vpop.f32.mrb[3].mxu1 }
 0x132   : > { %v429_v24 = vpack.c.bf16 %v384_v21, %v380_v16 }
 0x134   : > { %591 = vmatprep.subr.bf16.mxu0 %v429_v24  ;;  %4628 = vmatprep.subr.bf16.mxu1 %v429_v24 }
 0x135   : > { %592 = vmatpush1.bf16.msra.mxu0 %v428_v20  ;;  %4629 = vmatpush1.bf16.msra.mxu1 %v428_v20 }
 0x136   : > { %4490 = vmatprep.subr.bf16.mxu1 %v430_v22 }
 0x138   : > { %3660 = vmatmul.mubr.msk.bf16.vlgmr.msra.gmra.mrb[4].mxu1 %vm340_vm1, %v4962_v25  ;;  %3645 = vmatmul.mubr.msk.bf16.vlgmr.msra.gmra.mrb[4].mxu0 %vm340_vm1, %v4964_v26 }
 0x139   : > { %783 = vmatprep.mubr.bf16.mxu1 %v4804_v2  ;;  %4491 = vmatpush3.bf16.msra.mxu1 %v430_v22 }
 0x13a   : > { %1514 = vmatprep.subr.bf16.mxu1 %v4922_v0  ;;  %633 = vmatprep.mubr.bf16.mxu0 %v4804_v2 }
 0x140   : > { %3661 = vmatmul.mubr.msk.bf16.gmra.mrb[8].mxu1 %vm340_vm1, %v4973_v27  ;;  %3646 = vmatmul.mubr.msk.bf16.gmra.mrb[8].mxu0 %vm340_vm1, %v4975_v28 }
 0x141   : > { %793 = vmatprep.mubr.bf16.mxu1 %v4804_v2  ;;  %643 = vmatprep.mubr.bf16.mxu0 %v4804_v2 }
 0x148   : > { %3662 = vmatmul.mubr.msk.bf16.gmra.mrb[12].mxu1 %vm340_vm1, %v4983_v29  ;;  %3647 = vmatmul.mubr.msk.bf16.gmra.mrb[12].mxu0 %vm340_vm1, %v4985_v30 }
 0x149   : > { %803 = vmatprep.mubr.bf16.mxu1 %v4804_v2  ;;  %653 = vmatprep.mubr.bf16.mxu0 %v4804_v2 }
 0x150   : > { %3663 = vmatmul.mubr.msk.bf16.gmra.mrb[16].mxu1 %vm340_vm1, %v4993_v31  ;;  %3648 = vmatmul.mubr.msk.bf16.gmra.mrb[16].mxu0 %vm340_vm1, %v4995_v32 }
 0x151   : > { %813 = vmatprep.mubr.bf16.mxu1 %v4804_v2  ;;  %663 = vmatprep.mubr.bf16.mxu0 %v4804_v2 }
 0x158   : > { %3664 = vmatmul.mubr.msk.bf16.gmra.mrb[20].mxu1 %vm340_vm1, %v5003_v33  ;;  %3649 = vmatmul.mubr.msk.bf16.gmra.mrb[20].mxu0 %vm340_vm1, %v5005_v34 }
 0x159   : > { %4492 = vmatprep.mubr.msk.bf16.mxu1 %vm340_vm1, %v4964_v26  ;;  %673 = vmatprep.mubr.bf16.mxu0 %v4804_v2 }
 0x160   : > { %4493 = vmatmul.mubr.msk.bf16.vlgmr.msra.gmra.mrb[24].mxu1 %vm340_vm1, %v4975_v28  ;;  %3650 = vmatmul.mubr.msk.bf16.gmra.mrb[24].mxu0 %vm340_vm1, %v5014_v35 }
 0x161   : > { %4496 = vmatprep.mubr.msk.bf16.mxu1 %vm340_vm1, %v4985_v30  ;;  %1515 = vmatpush1.bf16.msra.mxu1 %v4928_v1 }
 0x162   : > { %4532 = vmatprep.subr.bf16.mxu1 %v4805_v3  ;;  %683 = vmatprep.mubr.bf16.mxu0 %v4804_v2 }
 0x168   : > { %4497 = vmatmul.mubr.msk.bf16.gmra.mrb[28].mxu1 %vm340_vm1, %v4995_v32  ;;  %3651 = vmatmul.mubr.msk.bf16.gmra.mrb[28].mxu0 %vm340_vm1, %v5025_v36 }
 0x169   : > { %4500 = vmatprep.mubr.msk.bf16.mxu1 %vm340_vm1, %v5005_v34  ;;  %693 = vmatprep.mubr.bf16.mxu0 %v4804_v2 }
 0x170   : > { %4501 = vmatmul.mubr.msk.bf16.gmra.mrb[32].mxu1 %vm340_vm1, %v5014_v35  ;;  %3652 = vmatmul.mubr.msk.bf16.gmra.mrb[32].mxu0 %vm340_vm1, %v5034_v37 }
 0x171   : > { %4504 = vmatprep.mubr.msk.bf16.mxu1 %vm340_vm1, %v5025_v36  ;;  %703 = vmatprep.mubr.bf16.mxu0 %v4804_v2 }
 0x178   : > { %4505 = vmatmul.mubr.msk.bf16.gmra.mrb[36].mxu1 %vm340_vm1, %v5034_v37  ;;  %3653 = vmatmul.mubr.msk.bf16.gmra.mrb[36].mxu0 %vm340_vm1, %v5043_v38 }
 0x179   : > { %4508 = vmatprep.mubr.msk.bf16.mxu1 %vm340_vm1, %v5043_v38  ;;  %713 = vmatprep.mubr.bf16.mxu0 %v4804_v2 }
 0x180   : > { %4509 = vmatmul.mubr.msk.bf16.gmra.mrb[40].mxu1 %vm340_vm1, %v5052_v39  ;;  %3654 = vmatmul.mubr.msk.bf16.gmra.mrb[40].mxu0 %vm340_vm1, %v5052_v39 }
 0x181   : > { %4512 = vmatprep.mubr.msk.bf16.mxu1 %vm340_vm1, %v5054_v40  ;;  %723 = vmatprep.mubr.bf16.mxu0 %v4804_v2 }
 0x188   : > { %4513 = vmatmul.mubr.msk.bf16.gmra.mrb[44].mxu1 %vm340_vm1, %v5063_v41  ;;  %3655 = vmatmul.mubr.msk.bf16.gmra.mrb[44].mxu0 %vm340_vm1, %v5054_v40 }
 0x189   : > { %4516 = vmatprep.mubr.msk.bf16.mxu1 %vm340_vm1, %v5065_v42  ;;  %733 = vmatprep.mubr.bf16.mxu0 %v4804_v2 }
 0x190   : > { %4517 = vmatmul.mubr.msk.bf16.gmra.mrb[48].mxu1 %vm340_vm1, %v5074_v43  ;;  %3656 = vmatmul.mubr.msk.bf16.gmra.mrb[48].mxu0 %vm340_vm1, %v5063_v41 }
 0x191   : > { %4520 = vmatprep.mubr.msk.bf16.mxu1 %vm340_vm1, %v5076_v44  ;;  %743 = vmatprep.mubr.bf16.mxu0 %v4804_v2 }
 0x198   : > { %4521 = vmatmul.mubr.msk.bf16.gmra.mrb[52].mxu1 %vm340_vm1, %v4962_v25  ;;  %3657 = vmatmul.mubr.msk.bf16.gmra.mrb[52].mxu0 %vm340_vm1, %v5065_v42 }
 0x199   : > { %4524 = vmatprep.mubr.msk.bf16.mxu1 %vm340_vm1, %v4973_v27  ;;  %753 = vmatprep.mubr.bf16.mxu0 %v4804_v2 }
 0x1a0   : > { %4525 = vmatmul.mubr.msk.bf16.gmra.mrb[56].mxu1 %vm340_vm1, %v4983_v29  ;;  %3658 = vmatmul.mubr.msk.bf16.gmra.mrb[56].mxu0 %vm340_vm1, %v5074_v43 }
 0x1a1   : > { %4528 = vmatprep.mubr.msk.bf16.mxu1 %vm340_vm1, %v4993_v31  ;;  %763 = vmatprep.mubr.bf16.mxu0 %v4804_v2 }
 0x1a8   : > { %4529 = vmatmul.mubr.msk.bf16.gmra.mrb[60].mxu1 %vm340_vm1, %v5003_v33  ;;  %3659 = vmatmul.mubr.msk.bf16.gmra.mrb[60].mxu0 %vm340_vm1, %v5076_v44 }
 0x1a9   : > { %1546 = vmatprep.mubr.bf16.mxu1 %v4804_v2  ;;  %4540 = vmatprep.mubr.msk.bf16.mxu0 %vm340_vm1, %v4964_v26 }
 0x1b0   : > { %3767 = vmatmul.mubr.msk.bf16.vlgmr.msra.gmra.mrb[64].mxu1 %vm340_vm1, %v1510_v53 }
 0x1b1   : > { %4533 = vmatpush3.bf16.msra.mxu1 %v4945_v4  ;;  %4534 = vmatprep.mubr.msk.bf16.mxu1 %vm4806_vm0, %v4805_v3 }
 0x1b8   : > { %4535 = vmatmul.mubr.msk.bf16.vlgmr.msra.gmra.mrb[68].mxu1 %vm340_vm1, %v1510_v53 }
 0x1b9   : > { %1633 = vmatprep.mubr.bf16.mxu1 %v4804_v2 }
 0x20b   : > { %v775_v54 = vpop.f32.mrb[4].mxu1 }
 0x20c   : > { %v777_v55 = vpop.f32.mrb[5].mxu1 }
 0x20d   : > { %v4235_v56 = vpack.c.bf16 %v777_v55, %v775_v54  ;;  %v779_v57 = vpop.f32.mrb[6].mxu1 }
 0x20e   : > { %v781_v58 = vpop.f32.mrb[7].mxu1 }
 0x20f   : > { %1478 = vst [vmem:[%s5119_s17 + $0x168] sm:$0xff] %v4235_v56  ;;  %v4237_v59 = vpack.c.bf16 %v781_v58, %v779_v57 }
 0x211   : > { %1480 = vst [vmem:[%s5119_s17 + $0x174] sm:$0xff] %v4237_v59 }
 0x213   : > { %v785_v60 = vpop.f32.mrb[8].mxu1 }
 0x214   : > { %v787_v61 = vpop.f32.mrb[9].mxu1 }
 0x215   : > { %v4239_v62 = vpack.c.bf16 %v787_v61, %v785_v60  ;;  %v789_v63 = vpop.f32.mrb[10].mxu1 }
 0x216   : > { %v791_v4 = vpop.f32.mrb[11].mxu1 }
 0x217   : > { %1482 = vst [vmem:[%s5119_s17 + $0x180] sm:$0xff] %v4239_v62  ;;  %v4241_v5 = vpack.c.bf16 %v791_v4, %v789_v63 }
 0x219   : > { %1484 = vst [vmem:[%s5119_s17 + $0x18c] sm:$0xff] %v4241_v5 }
 0x21b   : > { %v795_v6 = vpop.f32.mrb[12].mxu1 }
 0x21c   : > { %v797_v7 = vpop.f32.mrb[13].mxu1 }
 0x21d   : > { %v4243_v8 = vpack.c.bf16 %v797_v7, %v795_v6  ;;  %v799_v9 = vpop.f32.mrb[14].mxu1 }
 0x21e   : > { %v801_v10 = vpop.f32.mrb[15].mxu1 }
 0x21f   : > { %1486 = vst [vmem:[%s5119_s17 + $0x198] sm:$0xff] %v4243_v8  ;;  %v4245_v11 = vpack.c.bf16 %v801_v10, %v799_v9 }
 0x221   : > { %1488 = vst [vmem:[%s5119_s17 + $0x1a4] sm:$0xff] %v4245_v11 }
 0x223   : > { %v805_v12 = vpop.f32.mrb[16].mxu1 }
 0x224   : > { %v807_v13 = vpop.f32.mrb[17].mxu1 }
 0x225   : > { %v4247_v14 = vpack.c.bf16 %v807_v13, %v805_v12  ;;  %v809_v15 = vpop.f32.mrb[18].mxu1 }
 0x226   : > { %v811_v16 = vpop.f32.mrb[19].mxu1 }
 0x227   : > { %1490 = vst [vmem:[%s5119_s17 + $0x1b0] sm:$0xff] %v4247_v14  ;;  %v4249_v17 = vpack.c.bf16 %v811_v16, %v809_v15 }
 0x229   : > { %1492 = vst [vmem:[%s5119_s17 + $0x1bc] sm:$0xff] %v4249_v17 }
 0x22b   : > { %v815_v18 = vpop.f32.mrb[20].mxu1 }
 0x22c   : > { %v817_v19 = vpop.f32.mrb[21].mxu1 }
 0x22d   : > { %v4251_v20 = vpack.c.bf16 %v817_v19, %v815_v18  ;;  %v819_v21 = vpop.f32.mrb[22].mxu1 }
 0x22e   : > { %v821_v22 = vpop.f32.mrb[23].mxu1 }
 0x22f   : > { %1494 = vst [vmem:[%s5119_s17 + $0x1c8] sm:$0xff] %v4251_v20  ;;  %v4253_v23 = vpack.c.bf16 %v821_v22, %v819_v21 }
 0x231   : > { %1496 = vst [vmem:[%s5119_s17 + $0x1d4] sm:$0xff] %v4253_v23 }
 0x233   : > { %v4494_v24 = vpop.f32.mrb[24].mxu1 }
 0x234   : > { %v4180_v45 = vpack.c.bf16 %v4494_v24, %v4494_v24  ;;  %v858_v46 = vpop.f32.mrb[25].mxu1 }
 0x235   : > { %v4176_v47 = vpack.c.bf16 %v858_v46, %v858_v46  ;;  %v4495_v48 = vpop.f32.mrb[26].mxu1 }
 0x236   : > { %1423 = vst.msk [vmem:[%s5119_s17 + $0x20] sm:$0xf] %vm1418_vm2, %v4180_v45  ;;  %v4182_v49 = vpack.c.bf16 %v4495_v48, %v4495_v48  ;;  %v861_v50 = vpop.f32.mrb[27].mxu1 }
 0x237   : > { %1419 = vst.msk [vmem:[%s5119_s17 + $0x8] sm:$0xf] %vm1418_vm2, %v4176_v47  ;;  %v4178_v51 = vpack.c.bf16 %v861_v50, %v861_v50 }
 0x238   : > { %1425 = vst.msk [vmem:[%s5119_s17 + $0x2c] sm:$0xf] %vm1418_vm2, %v4182_v49 }
 0x239   : > { %1421 = vst.msk [vmem:[%s5119_s17 + $0x14] sm:$0xf] %vm1418_vm2, %v4178_v51 }
 0x23b   : > { %v4498_v52 = vpop.f32.mrb[28].mxu1 }
 0x23c   : > { %v4188_v53 = vpack.c.bf16 %v4498_v52, %v4498_v52  ;;  %v874_v54 = vpop.f32.mrb[29].mxu1 }
 0x23d   : > { %v4184_v55 = vpack.c.bf16 %v874_v54, %v874_v54  ;;  %v4499_v56 = vpop.f32.mrb[30].mxu1 }
 0x23e   : > { %1431 = vst.msk [vmem:[%s5119_s17 + $0x50] sm:$0xf] %vm1418_vm2, %v4188_v53  ;;  %v4190_v57 = vpack.c.bf16 %v4499_v56, %v4499_v56  ;;  %v877_v58 = vpop.f32.mrb[31].mxu1 }
 0x23f   : > { %1427 = vst.msk [vmem:[%s5119_s17 + $0x38] sm:$0xf] %vm1418_vm2, %v4184_v55  ;;  %v4186_v59 = vpack.c.bf16 %v877_v58, %v877_v58 }
 0x240   : > { %1433 = vst.msk [vmem:[%s5119_s17 + $0x5c] sm:$0xf] %vm1418_vm2, %v4190_v57 }
 0x241   : > { %1429 = vst.msk [vmem:[%s5119_s17 + $0x44] sm:$0xf] %vm1418_vm2, %v4186_v59 }
 0x243   : > { %v4502_v60 = vpop.f32.mrb[32].mxu1 }
 0x244   : > { %v4196_v61 = vpack.c.bf16 %v4502_v60, %v4502_v60  ;;  %v890_v62 = vpop.f32.mrb[33].mxu1 }
 0x245   : > { %v4192_v63 = vpack.c.bf16 %v890_v62, %v890_v62  ;;  %v4503_v4 = vpop.f32.mrb[34].mxu1 }
 0x246   : > { %1439 = vst.msk [vmem:[%s5119_s17 + $0x80] sm:$0xf] %vm1418_vm2, %v4196_v61  ;;  %v4198_v5 = vpack.c.bf16 %v4503_v4, %v4503_v4  ;;  %v893_v6 = vpop.f32.mrb[35].mxu1 }
 0x247   : > { %1435 = vst.msk [vmem:[%s5119_s17 + $0x68] sm:$0xf] %vm1418_vm2, %v4192_v63  ;;  %v4194_v7 = vpack.c.bf16 %v893_v6, %v893_v6  ;;  %v625_v63 = vpop.f32.mrb[4].mxu0 }
 0x248   : > { %1441 = vst.msk [vmem:[%s5119_s17 + $0x8c] sm:$0xf] %vm1418_vm2, %v4198_v5  ;;  %v627_v6 = vpop.f32.mrb[5].mxu0 }
 0x249   : > { %1437 = vst.msk [vmem:[%s5119_s17 + $0x74] sm:$0xf] %vm1418_vm2, %v4194_v7 }
 0x24b   : > { %v4506_v8 = vpop.f32.mrb[36].mxu1 }
 0x24c   : > { %v4204_v9 = vpack.c.bf16 %v4506_v8, %v4506_v8  ;;  %v906_v10 = vpop.f32.mrb[37].mxu1 }
 0x24d   : > { %v4200_v11 = vpack.c.bf16 %v906_v10, %v906_v10  ;;  %v4507_v12 = vpop.f32.mrb[38].mxu1  ;;  %v629_v10 = vpop.f32.mrb[6].mxu0 }
 0x24e   : > { %1447 = vst.msk [vmem:[%s5119_s17 + $0xb0] sm:$0xf] %vm1418_vm2, %v4204_v9  ;;  %v4206_v13 = vpack.c.bf16 %v4507_v12, %v4507_v12  ;;  %v909_v14 = vpop.f32.mrb[39].mxu1  ;;  %v4175_v9 = vpack.c.bf16 %v627_v6, %v625_v63  ;;  %v631_v12 = vpop.f32.mrb[7].mxu0 }
 0x24f   : > { %1443 = vst.msk [vmem:[%s5119_s17 + $0x98] sm:$0xf] %vm1418_vm2, %v4200_v11  ;;  %v4202_v15 = vpack.c.bf16 %v909_v14, %v909_v14  ;;  %v635_v14 = vpop.f32.mrb[8].mxu0 }
 0x250   : > { %1449 = vst.msk [vmem:[%s5119_s17 + $0xbc] sm:$0xf] %vm1418_vm2, %v4206_v13  ;;  %1417 = vst [vmem:[%s5119_s17] sm:$0xff] %v4175_v9  ;;  %v4177_v13 = vpack.c.bf16 %v631_v12, %v629_v10 }
 0x251   : > { %1445 = vst.msk [vmem:[%s5119_s17 + $0xa4] sm:$0xf] %vm1418_vm2, %v4202_v15  ;;  %v637_v15 = vpop.f32.mrb[9].mxu0 }
 0x252   : > { %1420 = vst [vmem:[%s5119_s17 + $0xc] sm:$0xff] %v4177_v13 }
 0x253   : > { %v4510_v16 = vpop.f32.mrb[40].mxu1 }
 0x254   : > { %v4212_v17 = vpack.c.bf16 %v4510_v16, %v4510_v16  ;;  %v922_v18 = vpop.f32.mrb[41].mxu1  ;;  %v4179_v16 = vpack.c.bf16 %v637_v15, %v635_v14 }
 0x255   : > { %v4208_v19 = vpack.c.bf16 %v922_v18, %v922_v18  ;;  %v4511_v20 = vpop.f32.mrb[42].mxu1 }
 0x256   : > { %1455 = vst.msk [vmem:[%s5119_s17 + $0xe0] sm:$0xf] %vm1418_vm2, %v4212_v17  ;;  %v4214_v21 = vpack.c.bf16 %v4511_v20, %v4511_v20  ;;  %v925_v22 = vpop.f32.mrb[43].mxu1  ;;  %v639_v17 = vpop.f32.mrb[10].mxu0  ;;  %1422 = vst [vmem:[%s5119_s17 + $0x18] sm:$0xff] %v4179_v16 }
 0x257   : > { %1451 = vst.msk [vmem:[%s5119_s17 + $0xc8] sm:$0xf] %vm1418_vm2, %v4208_v19  ;;  %v4210_v23 = vpack.c.bf16 %v925_v22, %v925_v22  ;;  %v641_v19 = vpop.f32.mrb[11].mxu0 }
 0x258   : > { %1457 = vst.msk [vmem:[%s5119_s17 + $0xec] sm:$0xf] %vm1418_vm2, %v4214_v21  ;;  %v4181_v22 = vpack.c.bf16 %v641_v19, %v639_v17 }
 0x259   : > { %1453 = vst.msk [vmem:[%s5119_s17 + $0xd4] sm:$0xf] %vm1418_vm2, %v4210_v23  ;;  %v645_v23 = vpop.f32.mrb[12].mxu0 }
 0x25a   : > { %1424 = vst [vmem:[%s5119_s17 + $0x24] sm:$0xff] %v4181_v22 }
 0x25b   : > { %v4514_v24 = vpop.f32.mrb[44].mxu1 }
 0x25c   : > { %v4220_v45 = vpack.c.bf16 %v4514_v24, %v4514_v24  ;;  %v938_v46 = vpop.f32.mrb[45].mxu1 }
 0x25d   : > { %v4216_v47 = vpack.c.bf16 %v938_v46, %v938_v46  ;;  %v4515_v48 = vpop.f32.mrb[46].mxu1  ;;  %v647_v46 = vpop.f32.mrb[13].mxu0 }
 0x25e   : > { %1463 = vst.msk [vmem:[%s5119_s17 + $0x110] sm:$0xf] %vm1418_vm2, %v4220_v45  ;;  %v4222_v49 = vpack.c.bf16 %v4515_v48, %v4515_v48  ;;  %v941_v50 = vpop.f32.mrb[47].mxu1 }
 0x25f   : > { %1459 = vst.msk [vmem:[%s5119_s17 + $0xf8] sm:$0xf] %vm1418_vm2, %v4216_v47  ;;  %v4218_v51 = vpack.c.bf16 %v941_v50, %v941_v50  ;;  %v649_v50 = vpop.f32.mrb[14].mxu0 }
 0x260   : > { %1465 = vst.msk [vmem:[%s5119_s17 + $0x11c] sm:$0xf] %vm1418_vm2, %v4222_v49  ;;  %v4183_v49 = vpack.c.bf16 %v647_v46, %v645_v23 }
 0x261   : > { %1461 = vst.msk [vmem:[%s5119_s17 + $0x104] sm:$0xf] %vm1418_vm2, %v4218_v51 }
 0x262   : > { %1426 = vst [vmem:[%s5119_s17 + $0x30] sm:$0xff] %v4183_v49 }
 0x263   : > { %v4518_v52 = vpop.f32.mrb[48].mxu1 }
 0x264   : > { %v4228_v53 = vpack.c.bf16 %v4518_v52, %v4518_v52  ;;  %v954_v54 = vpop.f32.mrb[49].mxu1  ;;  %v651_v52 = vpop.f32.mrb[15].mxu0 }
 0x265   : > { %v4224_v55 = vpack.c.bf16 %v954_v54, %v954_v54  ;;  %v4519_v56 = vpop.f32.mrb[50].mxu1  ;;  %v655_v54 = vpop.f32.mrb[16].mxu0 }
 0x266   : > { %1471 = vst.msk [vmem:[%s5119_s17 + $0x140] sm:$0xf] %vm1418_vm2, %v4228_v53  ;;  %v4230_v57 = vpack.c.bf16 %v4519_v56, %v4519_v56  ;;  %v957_v58 = vpop.f32.mrb[51].mxu1  ;;  %v4185_v53 = vpack.c.bf16 %v651_v52, %v649_v50 }
 0x267   : > { %1467 = vst.msk [vmem:[%s5119_s17 + $0x128] sm:$0xf] %vm1418_vm2, %v4224_v55  ;;  %v4226_v59 = vpack.c.bf16 %v957_v58, %v957_v58  ;;  %v657_v55 = vpop.f32.mrb[17].mxu0 }
 0x268   : > { %1473 = vst.msk [vmem:[%s5119_s17 + $0x14c] sm:$0xf] %vm1418_vm2, %v4230_v57  ;;  %1428 = vst [vmem:[%s5119_s17 + $0x3c] sm:$0xff] %v4185_v53  ;;  %v4187_v56 = vpack.c.bf16 %v657_v55, %v655_v54  ;;  %v659_v57 = vpop.f32.mrb[18].mxu0 }
 0x269   : > { %1469 = vst.msk [vmem:[%s5119_s17 + $0x134] sm:$0xf] %vm1418_vm2, %v4226_v59  ;;  %v661_v59 = vpop.f32.mrb[19].mxu0 }
 0x26a   : > { %1430 = vst [vmem:[%s5119_s17 + $0x48] sm:$0xff] %v4187_v56  ;;  %v665_v63 = vpop.f32.mrb[20].mxu0 }
 0x26b   : > { %v4522_v60 = vpop.f32.mrb[52].mxu1  ;;  %v667_v6 = vpop.f32.mrb[21].mxu0 }
 0x26c   : > { %v4236_v61 = vpack.c.bf16 %v4522_v60, %v4522_v60  ;;  %v970_v62 = vpop.f32.mrb[53].mxu1  ;;  %v4191_v9 = vpack.c.bf16 %v667_v6, %v665_v63  ;;  %v669_v10 = vpop.f32.mrb[22].mxu0 }
 0x26d   : > { %v4232_v4 = vpack.c.bf16 %v970_v62, %v970_v62  ;;  %v4523_v5 = vpop.f32.mrb[54].mxu1  ;;  %v4189_v62 = vpack.c.bf16 %v661_v59, %v659_v57  ;;  %v671_v12 = vpop.f32.mrb[23].mxu0 }
 0x26e   : > { %1479 = vst.msk [vmem:[%s5119_s17 + $0x170] sm:$0xf] %vm1418_vm2, %v4236_v61  ;;  %v4238_v7 = vpack.c.bf16 %v4523_v5, %v4523_v5  ;;  %v973_v8 = vpop.f32.mrb[55].mxu1  ;;  %1434 = vst [vmem:[%s5119_s17 + $0x60] sm:$0xff] %v4191_v9  ;;  %v4193_v13 = vpack.c.bf16 %v671_v12, %v669_v10  ;;  %v675_v14 = vpop.f32.mrb[24].mxu0 }
 0x26f   : > { %1475 = vst.msk [vmem:[%s5119_s17 + $0x158] sm:$0xf] %vm1418_vm2, %v4232_v4  ;;  %v4234_v11 = vpack.c.bf16 %v973_v8, %v973_v8  ;;  %1432 = vst [vmem:[%s5119_s17 + $0x54] sm:$0xff] %v4189_v62  ;;  %v677_v15 = vpop.f32.mrb[25].mxu0 }
 0x270   : > { %1481 = vst.msk [vmem:[%s5119_s17 + $0x17c] sm:$0xf] %vm1418_vm2, %v4238_v7  ;;  %1436 = vst [vmem:[%s5119_s17 + $0x6c] sm:$0xff] %v4193_v13  ;;  %v4195_v16 = vpack.c.bf16 %v677_v15, %v675_v14  ;;  %v679_v17 = vpop.f32.mrb[26].mxu0 }
 0x271   : > { %1477 = vst.msk [vmem:[%s5119_s17 + $0x164] sm:$0xf] %vm1418_vm2, %v4234_v11  ;;  %v681_v19 = vpop.f32.mrb[27].mxu0 }
 0x272   : > { %1438 = vst [vmem:[%s5119_s17 + $0x78] sm:$0xff] %v4195_v16  ;;  %v685_v22 = vpop.f32.mrb[28].mxu0 }
 0x273   : > { %v4526_v18 = vpop.f32.mrb[56].mxu1 }
 0x274   : > { %v4244_v20 = vpack.c.bf16 %v4526_v18, %v4526_v18  ;;  %v986_v21 = vpop.f32.mrb[57].mxu1 }
 0x275   : > { %v4240_v24 = vpack.c.bf16 %v986_v21, %v986_v21  ;;  %v4527_v45 = vpop.f32.mrb[58].mxu1  ;;  %v4197_v21 = vpack.c.bf16 %v681_v19, %v679_v17 }
 0x276   : > { %1487 = vst.msk [vmem:[%s5119_s17 + $0x1a0] sm:$0xf] %vm1418_vm2, %v4244_v20  ;;  %v4246_v47 = vpack.c.bf16 %v4527_v45, %v4527_v45  ;;  %v989_v48 = vpop.f32.mrb[59].mxu1 }
 0x277   : > { %1483 = vst.msk [vmem:[%s5119_s17 + $0x188] sm:$0xf] %vm1418_vm2, %v4240_v24  ;;  %v4242_v51 = vpack.c.bf16 %v989_v48, %v989_v48  ;;  %v687_v24 = vpop.f32.mrb[29].mxu0  ;;  %1440 = vst [vmem:[%s5119_s17 + $0x84] sm:$0xff] %v4197_v21 }
 0x278   : > { %1489 = vst.msk [vmem:[%s5119_s17 + $0x1ac] sm:$0xf] %vm1418_vm2, %v4246_v47  ;;  %v4199_v47 = vpack.c.bf16 %v687_v24, %v685_v22  ;;  %v689_v48 = vpop.f32.mrb[30].mxu0 }
 0x279   : > { %1485 = vst.msk [vmem:[%s5119_s17 + $0x194] sm:$0xf] %vm1418_vm2, %v4242_v51  ;;  %v691_v50 = vpop.f32.mrb[31].mxu0 }
 0x27a   : > { %1442 = vst [vmem:[%s5119_s17 + $0x90] sm:$0xff] %v4199_v47  ;;  %v4201_v51 = vpack.c.bf16 %v691_v50, %v689_v48  ;;  %v695_v52 = vpop.f32.mrb[32].mxu0 }
 0x27b   : > { %v4530_v58 = vpop.f32.mrb[60].mxu1  ;;  %v697_v53 = vpop.f32.mrb[33].mxu0 }
 0x27c   : > { %v4252_v60 = vpack.c.bf16 %v4530_v58, %v4530_v58  ;;  %v1002_v61 = vpop.f32.mrb[61].mxu1  ;;  %1444 = vst [vmem:[%s5119_s17 + $0x9c] sm:$0xff] %v4201_v51  ;;  %v4203_v54 = vpack.c.bf16 %v697_v53, %v695_v52  ;;  %v699_v55 = vpop.f32.mrb[34].mxu0 }
 0x27d   : > { %v4248_v4 = vpack.c.bf16 %v1002_v61, %v1002_v61  ;;  %v4531_v5 = vpop.f32.mrb[62].mxu1  ;;  %v701_v57 = vpop.f32.mrb[35].mxu0 }
 0x27e   : > { %1495 = vst.msk [vmem:[%s5119_s17 + $0x1d0] sm:$0xf] %vm1418_vm2, %v4252_v60  ;;  %v4254_v7 = vpack.c.bf16 %v4531_v5, %v4531_v5  ;;  %v1005_v8 = vpop.f32.mrb[63].mxu1  ;;  %1446 = vst [vmem:[%s5119_s17 + $0xa8] sm:$0xff] %v4203_v54  ;;  %v4205_v59 = vpack.c.bf16 %v701_v57, %v699_v55  ;;  %v705_v60 = vpop.f32.mrb[36].mxu0 }
 0x27f   : > { %1491 = vst.msk [vmem:[%s5119_s17 + $0x1b8] sm:$0xf] %vm1418_vm2, %v4248_v4  ;;  %v4250_v11 = vpack.c.bf16 %v1005_v8, %v1005_v8  ;;  %v707_v62 = vpop.f32.mrb[37].mxu0 }
 0x280   : > { %1497 = vst.msk [vmem:[%s5119_s17 + $0x1dc] sm:$0xf] %vm1418_vm2, %v4254_v7  ;;  %1448 = vst [vmem:[%s5119_s17 + $0xb4] sm:$0xff] %v4205_v59  ;;  %v4207_v5 = vpack.c.bf16 %v707_v62, %v705_v60  ;;  %v709_v6 = vpop.f32.mrb[38].mxu0 }
 0x281   : > { %1493 = vst.msk [vmem:[%s5119_s17 + $0x1c4] sm:$0xf] %vm1418_vm2, %v4250_v11  ;;  %v711_v7 = vpop.f32.mrb[39].mxu0 }
 0x282   : > { %1450 = vst [vmem:[%s5119_s17 + $0xc0] sm:$0xff] %v4207_v5  ;;  %v4209_v8 = vpack.c.bf16 %v711_v7, %v709_v6  ;;  %v715_v9 = vpop.f32.mrb[40].mxu0 }
 0x283   : > { %v1548_v18 = vpop.f32.mrb[64].mxu1  ;;  %v717_v10 = vpop.f32.mrb[41].mxu0 }
 0x284   : > { %v1550_v20 = vpop.f32.mrb[65].mxu1  ;;  %1452 = vst [vmem:[%s5119_s17 + $0xcc] sm:$0xff] %v4209_v8  ;;  %v4211_v11 = vpack.c.bf16 %v717_v10, %v715_v9  ;;  %v719_v12 = vpop.f32.mrb[42].mxu0 }
 0x285   : > { %v1552_v23 = vpop.f32.mrb[66].mxu1  ;;  %v721_v13 = vpop.f32.mrb[43].mxu0 }
 0x286   : > { %v1598_v45 = vpack.c.bf16 %v1552_v23, %v1548_v18  ;;  %v1554_v46 = vpop.f32.mrb[67].mxu1  ;;  %1454 = vst [vmem:[%s5119_s17 + $0xd8] sm:$0xff] %v4211_v11  ;;  %v4213_v14 = vpack.c.bf16 %v721_v13, %v719_v12  ;;  %v725_v15 = vpop.f32.mrb[44].mxu0 }
 0x287   : > { %v1599_v49 = vpack.c.bf16 %v1554_v46, %v1550_v20  ;;  %v727_v16 = vpop.f32.mrb[45].mxu0 }
 0x288   : > { %1456 = vst [vmem:[%s5119_s17 + $0xe4] sm:$0xff] %v4213_v14  ;;  %v729_v17 = vpop.f32.mrb[46].mxu0 }
 0x289   : > { %1601 = vmatprep.subr.bf16.mxu1 %v1599_v49  ;;  %v731_v18 = vpop.f32.mrb[47].mxu0 }
 0x28a   : > { %1602 = vmatpush1.bf16.msra.mxu1 %v1598_v45  ;;  %v4217_v19 = vpack.c.bf16 %v731_v18, %v729_v17  ;;  %v735_v20 = vpop.f32.mrb[48].mxu0 }
 0x28b   : > { %v1591_v56 = vpop.f32.mrb[68].mxu1  ;;  %v737_v21 = vpop.f32.mrb[49].mxu0 }
 0x28c   : > { %v4536_v58 = vpop.f32.mrb[69].mxu1  ;;  %1460 = vst [vmem:[%s5119_s17 + $0xfc] sm:$0xff] %v4217_v19  ;;  %v739_v22 = vpop.f32.mrb[50].mxu0 }
 0x28d   : > { %v1594_v61 = vpop.f32.mrb[70].mxu1  ;;  %3769 = vmatmul.mubr.msk.bf16.vlgmr.msra.gmra.mrb[72].mxu1 %vm340_vm1, %v4964_v26  ;;  %v741_v23 = vpop.f32.mrb[51].mxu0 }
 0x28e   : > { %v1600_v63 = vpack.c.bf16 %v1594_v61, %v1591_v56  ;;  %v4537_v4 = vpop.f32.mrb[71].mxu1  ;;  %1643 = vmatprep.mubr.bf16.mxu1 %v4804_v2  ;;  %v4221_v24 = vpack.c.bf16 %v741_v23, %v739_v22 }
 0x290   : > { %4538 = vmatprep.subr.bf16.mxu0 %v1600_v63  ;;  %1464 = vst [vmem:[%s5119_s17 + $0x114] sm:$0xff] %v4221_v24 }
 0x291   : > { %4539 = vmatpush3.bf16.msra.mxu0 %v1600_v63 }
 0x292   : > { %2524 = vmatprep.subr.bf16.mxu0 %v4922_v0  ;;  %v4215_v0 = vpack.c.bf16 %v727_v16, %v725_v15 }
 0x294   : > { %4541 = vmatmul.mubr.msk.bf16.vlgmr.msra.gmra.mrb[64].mxu0 %vm340_vm1, %v4975_v28  ;;  %1458 = vst [vmem:[%s5119_s17 + $0xf0] sm:$0xff] %v4215_v0 }
 0x295   : > { %4544 = vmatprep.mubr.msk.bf16.mxu0 %vm340_vm1, %v4985_v30  ;;  %2525 = vmatpush1.bf16.msra.mxu0 %v4928_v1  ;;  %v4219_v1 = vpack.c.bf16 %v737_v21, %v735_v20 }
 0x296   : > { %4580 = vmatprep.subr.bf16.mxu0 %v4805_v3  ;;  %3770 = vmatmul.mubr.msk.bf16.gmra.mrb[76].mxu1 %vm340_vm1, %v4975_v28  ;;  %v745_v28 = vpop.f32.mrb[52].mxu0 }
 0x297   : > { %1653 = vmatprep.mubr.bf16.mxu1 %v4804_v2  ;;  %1462 = vst [vmem:[%s5119_s17 + $0x108] sm:$0xff] %v4219_v1  ;;  %v747_v45 = vpop.f32.mrb[53].mxu0 }
 0x298   : > { %v4223_v46 = vpack.c.bf16 %v747_v45, %v745_v28  ;;  %v749_v47 = vpop.f32.mrb[54].mxu0 }
 0x299   : > { %v751_v48 = vpop.f32.mrb[55].mxu0 }
 0x29a   : > { %1466 = vst [vmem:[%s5119_s17 + $0x120] sm:$0xff] %v4223_v46  ;;  %v4225_v49 = vpack.c.bf16 %v751_v48, %v749_v47  ;;  %v755_v50 = vpop.f32.mrb[56].mxu0 }
 0x29b   : > { %v757_v51 = vpop.f32.mrb[57].mxu0 }
 0x29c   : > { %4545 = vmatmul.mubr.msk.bf16.gmra.mrb[68].mxu0 %vm340_vm1, %v4995_v32  ;;  %1468 = vst [vmem:[%s5119_s17 + $0x12c] sm:$0xff] %v4225_v49  ;;  %v4227_v52 = vpack.c.bf16 %v757_v51, %v755_v50  ;;  %v759_v53 = vpop.f32.mrb[58].mxu0 }
 0x29d   : > { %4548 = vmatprep.mubr.msk.bf16.mxu0 %vm340_vm1, %v5005_v34  ;;  %v761_v54 = vpop.f32.mrb[59].mxu0 }
 0x29e   : > { %3771 = vmatmul.mubr.msk.bf16.gmra.mrb[80].mxu1 %vm340_vm1, %v4985_v30  ;;  %1470 = vst [vmem:[%s5119_s17 + $0x138] sm:$0xff] %v4227_v52  ;;  %v4229_v55 = vpack.c.bf16 %v761_v54, %v759_v53  ;;  %v765_v30 = vpop.f32.mrb[60].mxu0 }
 0x29f   : > { %1663 = vmatprep.mubr.bf16.mxu1 %v4804_v2  ;;  %v767_v56 = vpop.f32.mrb[61].mxu0 }
 0x2a0   : > { %1472 = vst [vmem:[%s5119_s17 + $0x144] sm:$0xff] %v4229_v55  ;;  %v4231_v57 = vpack.c.bf16 %v767_v56, %v765_v30  ;;  %v769_v58 = vpop.f32.mrb[62].mxu0 }
 0x2a1   : > { %v771_v59 = vpop.f32.mrb[63].mxu0 }
 0x2a2   : > { %1474 = vst [vmem:[%s5119_s17 + $0x150] sm:$0xff] %v4231_v57  ;;  %v4233_v60 = vpack.c.bf16 %v771_v59, %v769_v58 }
 0x2a4   : > { %4549 = vmatmul.mubr.msk.bf16.gmra.mrb[72].mxu0 %vm340_vm1, %v5014_v35  ;;  %1476 = vst [vmem:[%s5119_s17 + $0x15c] sm:$0xff] %v4233_v60 }
 0x2a5   : > { %4552 = vmatprep.mubr.msk.bf16.mxu0 %vm340_vm1, %v5025_v36 }
 0x2a6   : > { %3772 = vmatmul.mubr.msk.bf16.gmra.mrb[84].mxu1 %vm340_vm1, %v4995_v32  ;;  %v3969_v32 = vld [vmem:[%s4954_s10 + $0x20] sm:$0xff] }
 0x2a7   : > { %1673 = vmatprep.mubr.bf16.mxu1 %v4804_v2 }
 0x2ac   : > { %4553 = vmatmul.mubr.msk.bf16.gmra.mrb[76].mxu0 %vm340_vm1, %v5034_v37 }
 0x2ad   : > { %4556 = vmatprep.mubr.msk.bf16.mxu0 %vm340_vm1, %v5043_v38 }
 0x2ae   : > { %3773 = vmatmul.mubr.msk.bf16.gmra.mrb[88].mxu1 %vm340_vm1, %v5005_v34  ;;  %v3970_v34 = vld [vmem:[%s4954_s10 + $0x28] sm:$0xff] }
 0x2af   : > { %1683 = vmatprep.mubr.bf16.mxu1 %v4804_v2 }
 0x2b4   : > { %4557 = vmatmul.mubr.msk.bf16.gmra.mrb[80].mxu0 %vm340_vm1, %v5052_v39 }
 0x2b5   : > { %4560 = vmatprep.mubr.msk.bf16.mxu0 %vm340_vm1, %v5054_v40 }
 0x2b6   : > { %3774 = vmatmul.mubr.msk.bf16.gmra.mrb[92].mxu1 %vm340_vm1, %v5014_v35  ;;  %v2514_v35 = vstv %s2509_s19 }
 0x2b7   : > { %1693 = vmatprep.mubr.bf16.mxu1 %v4804_v2 }
 0x2bc   : > { %4561 = vmatmul.mubr.msk.bf16.gmra.mrb[84].mxu0 %vm340_vm1, %v5063_v41 }
 0x2bd   : > { %4564 = vmatprep.mubr.msk.bf16.mxu0 %vm340_vm1, %v5065_v42 }
 0x2be   : > { %3775 = vmatmul.mubr.msk.bf16.gmra.mrb[96].mxu1 %vm340_vm1, %v5025_v36  ;;  %v2515_v36 = vmul.f32 %v3969_v32, %v2514_v35 }
 0x2bf   : > { %1703 = vmatprep.mubr.bf16.mxu1 %v4804_v2 }
 0x2c4   : > { %4565 = vmatmul.mubr.msk.bf16.gmra.mrb[88].mxu0 %vm340_vm1, %v5074_v43 }
 0x2c5   : > { %4568 = vmatprep.mubr.msk.bf16.mxu0 %vm340_vm1, %v5076_v44 }
 0x2c6   : > { %3776 = vmatmul.mubr.msk.bf16.gmra.mrb[100].mxu1 %vm340_vm1, %v5034_v37  ;;  %v2516_v37 = vmul.f32 %v3970_v34, %v2514_v35 }
 0x2c7   : > { %1713 = vmatprep.mubr.bf16.mxu1 %v4804_v2 }
 0x2cc   : > { %4569 = vmatmul.mubr.msk.bf16.gmra.mrb[92].mxu0 %vm340_vm1, %v4962_v25 }
 0x2cd   : > { %4572 = vmatprep.mubr.msk.bf16.mxu0 %vm340_vm1, %v4973_v27 }
 0x2ce   : > { %3777 = vmatmul.mubr.msk.bf16.gmra.mrb[104].mxu1 %vm340_vm1, %v5043_v38  ;;  %v2517_v38 = vstv %s2510_s20 }
 0x2cf   : > { %1723 = vmatprep.mubr.bf16.mxu1 %v4804_v2  ;;  %v2518_v61 = vadd.f32 %v2517_v38, %v2515_v36  ;;  %v2519_v62 = vadd.f32 %v2517_v38, %v2516_v37 }
 0x2d1   : > { %v2520_v63 = vpack.c.bf16 %v2519_v62, %v2518_v61 }
 0x2d4   : > { %4573 = vmatmul.mubr.msk.bf16.gmra.mrb[96].mxu0 %vm340_vm1, %v4983_v29 }
 0x2d5   : > { %4576 = vmatprep.mubr.msk.bf16.mxu0 %vm340_vm1, %v4993_v31 }
 0x2d6   : > { %3778 = vmatmul.mubr.msk.bf16.gmra.mrb[108].mxu1 %vm340_vm1, %v5052_v39  ;;  %v4700_v39 = vld [vmem:[%s5688_s4 + $0x8] ss:$12 sps:$4 sm:$0xff]  }
 0x2d7   : > { %1733 = vmatprep.mubr.bf16.mxu1 %v4804_v2 }
 0x2dc   : > { %4577 = vmatmul.mubr.msk.bf16.gmra.mrb[100].mxu0 %vm340_vm1, %v5003_v33 }
 0x2dd   : > { %2556 = vmatprep.mubr.bf16.mxu0 %v4804_v2 }
 0x2de   : > { %3779 = vmatmul.mubr.msk.bf16.gmra.mrb[112].mxu1 %vm340_vm1, %v5054_v40 }
 0x2df   : > { %1743 = vmatprep.mubr.bf16.mxu1 %v4804_v2 }
 0x2e4   : > { %3971 = vmatmul.mubr.msk.bf16.vlgmr.msra.gmra.mrb[104].mxu0 %vm340_vm1, %v2520_v63 }
 0x2e5   : > { %4581 = vmatpush3.bf16.msra.mxu0 %v4700_v39  ;;  %4582 = vmatprep.mubr.msk.bf16.mxu0 %vm4806_vm0, %v4805_v3 }
 0x2e6   : > { %3780 = vmatmul.mubr.msk.bf16.gmra.mrb[116].mxu1 %vm340_vm1, %v5063_v41 }
 0x2e7   : > { %1753 = vmatprep.mubr.bf16.mxu1 %v4804_v2 }
 0x2ec   : > { %4583 = vmatmul.mubr.msk.bf16.vlgmr.msra.gmra.mrb[108].mxu0 %vm340_vm1, %v2520_v63 }
 0x2ed   : > { %2643 = vmatprep.mubr.bf16.mxu0 %v4804_v2 }
 0x2ee   : > { %3781 = vmatmul.mubr.msk.bf16.gmra.mrb[120].mxu1 %vm340_vm1, %v5065_v42 }
 0x2ef   : > { %1763 = vmatprep.mubr.bf16.mxu1 %v4804_v2 }
 0x2f6   : > { %3782 = vmatmul.mubr.msk.bf16.gmra.mrb[124].mxu1 %vm340_vm1, %v5074_v43 }
 0x2f7   : > { %1773 = vmatprep.mubr.bf16.mxu1 %v4804_v2 }
 0x2fe   : > { %3783 = vmatmul.mubr.msk.bf16.gmra.mrb[128].mxu1 %vm340_vm1, %v5076_v44 }
 0x2ff   : > { %1783 = vmatprep.mubr.bf16.mxu1 %v4804_v2 }
 0x306   : > { %3784 = vmatmul.mubr.msk.bf16.gmra.mrb[132].mxu1 %vm340_vm1, %v4962_v25 }
 0x307   : > { %1793 = vmatprep.mubr.bf16.mxu1 %v4804_v2 }
 0x30e   : > { %3785 = vmatmul.mubr.msk.bf16.gmra.mrb[136].mxu1 %vm340_vm1, %v4973_v27 }
 0x30f   : > { %1803 = vmatprep.mubr.bf16.mxu1 %v4804_v2 }
 0x316   : > { %3786 = vmatmul.mubr.msk.bf16.gmra.mrb[140].mxu1 %vm340_vm1, %v4983_v29 }
 0x317   : > { %1813 = vmatprep.mubr.bf16.mxu1 %v4804_v2 }
 0x31e   : > { %3787 = vmatmul.mubr.msk.bf16.gmra.mrb[144].mxu1 %vm340_vm1, %v4993_v31 }
 0x31f   : > { %1823 = vmatprep.mubr.bf16.mxu1 %v4804_v2 }
 0x326   : > { %3788 = vmatmul.mubr.msk.bf16.gmra.mrb[148].mxu1 %vm340_vm1, %v5003_v33 }
 0x327   : > { %4588 = vmatprep.mubr.msk.bf16.mxu1 %vm340_vm1, %v4964_v26 }
 0x367   : > { %v4542_v3 = vpop.f32.mrb[64].mxu0 }
 0x368   : > { %v4260_v25 = vpack.c.bf16 %v4542_v3, %v4542_v3  ;;  %v1868_v27 = vpop.f32.mrb[65].mxu0 }
 0x369   : > { %v4256_v29 = vpack.c.bf16 %v1868_v27, %v1868_v27  ;;  %v4543_v40 = vpop.f32.mrb[66].mxu0 }
 0x36a   : > { %3894 = vst.msk [vmem:[%s5119_s17 + $0x200] sm:$0xf] %vm1418_vm2, %v4260_v25  ;;  %v4262_v41 = vpack.c.bf16 %v4543_v40, %v4543_v40  ;;  %v1871_v31 = vpop.f32.mrb[67].mxu0 }
 0x36b   : > { %3890 = vst.msk [vmem:[%s5119_s17 + $0x1e8] sm:$0xf] %vm1418_vm2, %v4256_v29  ;;  %v4258_v42 = vpack.c.bf16 %v1871_v31, %v1871_v31 }
 0x36c   : > { %3896 = vst.msk [vmem:[%s5119_s17 + $0x20c] sm:$0xf] %vm1418_vm2, %v4262_v41 }
 0x36d   : > { %3892 = vst.msk [vmem:[%s5119_s17 + $0x1f4] sm:$0xf] %vm1418_vm2, %v4258_v42 }
 0x36f   : > { %v4546_v26 = vpop.f32.mrb[68].mxu0 }
 0x370   : > { %v4268_v33 = vpack.c.bf16 %v4546_v26, %v4546_v26  ;;  %v1884_v43 = vpop.f32.mrb[69].mxu0 }
 0x371   : > { %v4264_v44 = vpack.c.bf16 %v1884_v43, %v1884_v43  ;;  %v4547_v4 = vpop.f32.mrb[70].mxu0 }
 0x372   : > { %3902 = vst.msk [vmem:[%s5119_s17 + $0x230] sm:$0xf] %vm1418_vm2, %v4268_v33  ;;  %v4270_v5 = vpack.c.bf16 %v4547_v4, %v4547_v4  ;;  %v1887_v6 = vpop.f32.mrb[71].mxu0 }
 0x373   : > { %3898 = vst.msk [vmem:[%s5119_s17 + $0x218] sm:$0xf] %vm1418_vm2, %v4264_v44  ;;  %v4266_v7 = vpack.c.bf16 %v1887_v6, %v1887_v6 }
 0x374   : > { %3904 = vst.msk [vmem:[%s5119_s17 + $0x23c] sm:$0xf] %vm1418_vm2, %v4270_v5 }
 0x375   : > { %3900 = vst.msk [vmem:[%s5119_s17 + $0x224] sm:$0xf] %vm1418_vm2, %v4266_v7 }
 0x377   : > { %v4550_v8 = vpop.f32.mrb[72].mxu0 }
 0x378   : > { %v4276_v9 = vpack.c.bf16 %v4550_v8, %v4550_v8  ;;  %v1900_v10 = vpop.f32.mrb[73].mxu0 }
 0x379   : > { %v4272_v11 = vpack.c.bf16 %v1900_v10, %v1900_v10  ;;  %v4551_v12 = vpop.f32.mrb[74].mxu0 }
 0x37a   : > { %3910 = vst.msk [vmem:[%s5119_s17 + $0x260] sm:$0xf] %vm1418_vm2, %v4276_v9  ;;  %v4278_v13 = vpack.c.bf16 %v4551_v12, %v4551_v12  ;;  %v1903_v14 = vpop.f32.mrb[75].mxu0 }
 0x37b   : > { %3906 = vst.msk [vmem:[%s5119_s17 + $0x248] sm:$0xf] %vm1418_vm2, %v4272_v11  ;;  %v4274_v15 = vpack.c.bf16 %v1903_v14, %v1903_v14 }
 0x37c   : > { %3912 = vst.msk [vmem:[%s5119_s17 + $0x26c] sm:$0xf] %vm1418_vm2, %v4278_v13 }
 0x37d   : > { %3908 = vst.msk [vmem:[%s5119_s17 + $0x254] sm:$0xf] %vm1418_vm2, %v4274_v15 }
 0x37f   : > { %v4554_v16 = vpop.f32.mrb[76].mxu0 }
 0x380   : > { %v4284_v0 = vpack.c.bf16 %v4554_v16, %v4554_v16  ;;  %v1916_v17 = vpop.f32.mrb[77].mxu0 }
 0x381   : > { %v4280_v18 = vpack.c.bf16 %v1916_v17, %v1916_v17  ;;  %v4555_v19 = vpop.f32.mrb[78].mxu0  ;;  %v4701_v17 = vld [vmem:[#allocation7] sm:$0xff]  }
 0x382   : > { %3918 = vst.msk [vmem:[%s5119_s17 + $0x290] sm:$0xf] %vm1418_vm2, %v4284_v0  ;;  %v4286_v20 = vpack.c.bf16 %v4555_v19, %v4555_v19  ;;  %v1919_v21 = vpop.f32.mrb[79].mxu0 }
 0x383   : > { %3914 = vst.msk [vmem:[%s5119_s17 + $0x278] sm:$0xf] %vm1418_vm2, %v4280_v18  ;;  %v4282_v1 = vpack.c.bf16 %v1919_v21, %v1919_v21  ;;  %v1635_v18 = vpop.f32.mrb[72].mxu1 }
 0x384   : > { %3920 = vst.msk [vmem:[%s5119_s17 + $0x29c] sm:$0xf] %vm1418_vm2, %v4286_v20  ;;  %v1637_v21 = vpop.f32.mrb[73].mxu1 }
 0x385   : > { %3916 = vst.msk [vmem:[%s5119_s17 + $0x284] sm:$0xf] %vm1418_vm2, %v4282_v1  ;;  %v4255_v1 = vpack.c.bf16 %v1637_v21, %v1635_v18  ;;  %v4713_v21 = vld [vmem:[#allocation7 + $0x60] sm:$0xff]  }
 0x387   : > { %v4558_v22 = vpop.f32.mrb[80].mxu0  ;;  %3889 = vst [vmem:[%s5119_s17 + $0x1e0] sm:$0xff] %v4255_v1 }
 0x388   : > { %v4292_v23 = vpack.c.bf16 %v4558_v22, %v4558_v22  ;;  %v1932_v24 = vpop.f32.mrb[81].mxu0  ;;  %v1639_v22 = vpop.f32.mrb[74].mxu1 }
 0x389   : > { %v4288_v28 = vpack.c.bf16 %v1932_v24, %v1932_v24  ;;  %v4559_v45 = vpop.f32.mrb[82].mxu0 }
 0x38a   : > { %3926 = vst.msk [vmem:[%s5119_s17 + $0x2c0] sm:$0xf] %vm1418_vm2, %v4292_v23  ;;  %v4294_v46 = vpack.c.bf16 %v4559_v45, %v4559_v45  ;;  %v1935_v47 = vpop.f32.mrb[83].mxu0  ;;  %v1641_v23 = vpop.f32.mrb[75].mxu1  ;;  %v4703_v45 = vld [vmem:[#allocation7 + $0x10] sm:$0xff]  }
 0x38b   : > { %3922 = vst.msk [vmem:[%s5119_s17 + $0x2a8] sm:$0xf] %vm1418_vm2, %v4288_v28  ;;  %v4290_v48 = vpack.c.bf16 %v1935_v47, %v1935_v47  ;;  %v4257_v24 = vpack.c.bf16 %v1641_v23, %v1639_v22  ;;  %v4702_v28 = vld [vmem:[#allocation7 + $0x8] sm:$0xff]  }
 0x38c   : > { %3928 = vst.msk [vmem:[%s5119_s17 + $0x2cc] sm:$0xf] %vm1418_vm2, %v4294_v46  ;;  %v1645_v46 = vpop.f32.mrb[76].mxu1 }
 0x38d   : > { %3924 = vst.msk [vmem:[%s5119_s17 + $0x2b4] sm:$0xf] %vm1418_vm2, %v4290_v48  ;;  %3891 = vst [vmem:[%s5119_s17 + $0x1ec] sm:$0xff] %v4257_v24  ;;  %v1647_v47 = vpop.f32.mrb[77].mxu1 }
 0x38e   : > { %v4259_v48 = vpack.c.bf16 %v1647_v47, %v1645_v46 }
 0x38f   : > { %v4562_v49 = vpop.f32.mrb[84].mxu0 }
 0x390   : > { %v4300_v50 = vpack.c.bf16 %v4562_v49, %v4562_v49  ;;  %v1948_v51 = vpop.f32.mrb[85].mxu0  ;;  %v1649_v49 = vpop.f32.mrb[78].mxu1  ;;  %3893 = vst [vmem:[%s5119_s17 + $0x1f8] sm:$0xff] %v4259_v48  ;;  %v4714_v48 = vld [vmem:[#allocation7 + $0x68] sm:$0xff]  }
 0x391   : > { %v4296_v52 = vpack.c.bf16 %v1948_v51, %v1948_v51  ;;  %v4563_v53 = vpop.f32.mrb[86].mxu0 }
 0x392   : > { %3934 = vst.msk [vmem:[%s5119_s17 + $0x2f0] sm:$0xf] %vm1418_vm2, %v4300_v50  ;;  %v4302_v54 = vpack.c.bf16 %v4563_v53, %v4563_v53  ;;  %v1951_v55 = vpop.f32.mrb[87].mxu0  ;;  %v1651_v50 = vpop.f32.mrb[79].mxu1  ;;  %v4705_v53 = vld [vmem:[#allocation7 + $0x20] sm:$0xff]  }
 0x393   : > { %3930 = vst.msk [vmem:[%s5119_s17 + $0x2d8] sm:$0xf] %vm1418_vm2, %v4296_v52  ;;  %v4298_v30 = vpack.c.bf16 %v1951_v55, %v1951_v55  ;;  %v4261_v51 = vpack.c.bf16 %v1651_v50, %v1649_v49  ;;  %v4704_v52 = vld [vmem:[#allocation7 + $0x18] sm:$0xff]   ;;  %v4715_v49 = vld [vmem:[#allocation7 + $0x70] sm:$0xff]  }
 0x394   : > { %3936 = vst.msk [vmem:[%s5119_s17 + $0x2fc] sm:$0xf] %vm1418_vm2, %v4302_v54  ;;  %v1655_v54 = vpop.f32.mrb[80].mxu1  ;;  %v5492_v50 = vld [vmem:[#allocation7 + $0x78] sm:$0xff]  }
 0x395   : > { %3932 = vst.msk [vmem:[%s5119_s17 + $0x2e4] sm:$0xf] %vm1418_vm2, %v4298_v30  ;;  %3895 = vst [vmem:[%s5119_s17 + $0x204] sm:$0xff] %v4261_v51  ;;  %v1657_v55 = vpop.f32.mrb[81].mxu1  ;;  %v5498_v51 = vld [vmem:[#allocation7 + $0x80] sm:$0xff]  }
 0x396   : > { %v4263_v30 = vpack.c.bf16 %v1657_v55, %v1655_v54  ;;  %v5513_v54 = vld [vmem:[#allocation7 + $0x98] sm:$0xff]  }
 0x397   : > { %v4566_v56 = vpop.f32.mrb[88].mxu0 }
 0x398   : > { %v4308_v57 = vpack.c.bf16 %v4566_v56, %v4566_v56  ;;  %v1964_v58 = vpop.f32.mrb[89].mxu0  ;;  %v1659_v56 = vpop.f32.mrb[82].mxu1  ;;  %3897 = vst [vmem:[%s5119_s17 + $0x210] sm:$0xff] %v4263_v30 }
 0x399   : > { %v4304_v59 = vpack.c.bf16 %v1964_v58, %v1964_v58  ;;  %v4567_v60 = vpop.f32.mrb[90].mxu0 }
 0x39a   : > { %3942 = vst.msk [vmem:[%s5119_s17 + $0x320] sm:$0xf] %vm1418_vm2, %v4308_v57  ;;  %v4310_v32 = vpack.c.bf16 %v4567_v60, %v4567_v60  ;;  %v1967_v34 = vpop.f32.mrb[91].mxu0  ;;  %v1661_v57 = vpop.f32.mrb[83].mxu1  ;;  %v4707_v60 = vld [vmem:[#allocation7 + $0x30] sm:$0xff]  }
 0x39b   : > { %3938 = vst.msk [vmem:[%s5119_s17 + $0x308] sm:$0xf] %vm1418_vm2, %v4304_v59  ;;  %v4306_v35 = vpack.c.bf16 %v1967_v34, %v1967_v34  ;;  %v4265_v58 = vpack.c.bf16 %v1661_v57, %v1659_v56  ;;  %v4706_v59 = vld [vmem:[#allocation7 + $0x28] sm:$0xff]  }
 0x39c   : > { %3944 = vst.msk [vmem:[%s5119_s17 + $0x32c] sm:$0xf] %vm1418_vm2, %v4310_v32  ;;  %v1665_v32 = vpop.f32.mrb[84].mxu1 }
 0x39d   : > { %3940 = vst.msk [vmem:[%s5119_s17 + $0x314] sm:$0xf] %vm1418_vm2, %v4306_v35  ;;  %3899 = vst [vmem:[%s5119_s17 + $0x21c] sm:$0xff] %v4265_v58  ;;  %v1667_v34 = vpop.f32.mrb[85].mxu1 }
 0x39e   : > { %v4267_v35 = vpack.c.bf16 %v1667_v34, %v1665_v32 }
 0x39f   : > { %v4570_v36 = vpop.f32.mrb[92].mxu0 }
 0x3a0   : > { %v4316_v37 = vpack.c.bf16 %v4570_v36, %v4570_v36  ;;  %v1980_v38 = vpop.f32.mrb[93].mxu0  ;;  %v1669_v36 = vpop.f32.mrb[86].mxu1  ;;  %3901 = vst [vmem:[%s5119_s17 + $0x228] sm:$0xff] %v4267_v35 }
 0x3a1   : > { %v4312_v61 = vpack.c.bf16 %v1980_v38, %v1980_v38  ;;  %v4571_v62 = vpop.f32.mrb[94].mxu0 }
 0x3a2   : > { %3950 = vst.msk [vmem:[%s5119_s17 + $0x350] sm:$0xf] %vm1418_vm2, %v4316_v37  ;;  %v4318_v63 = vpack.c.bf16 %v4571_v62, %v4571_v62  ;;  %v1983_v39 = vpop.f32.mrb[95].mxu0  ;;  %v1671_v37 = vpop.f32.mrb[87].mxu1 }
 0x3a3   : > { %3946 = vst.msk [vmem:[%s5119_s17 + $0x338] sm:$0xf] %vm1418_vm2, %v4312_v61  ;;  %v4314_v3 = vpack.c.bf16 %v1983_v39, %v1983_v39  ;;  %v4269_v38 = vpack.c.bf16 %v1671_v37, %v1669_v36  ;;  %v1675_v61 = vpop.f32.mrb[88].mxu1 }
 0x3a4   : > { %3952 = vst.msk [vmem:[%s5119_s17 + $0x35c] sm:$0xf] %vm1418_vm2, %v4318_v63  ;;  %v1677_v62 = vpop.f32.mrb[89].mxu1 }
 0x3a5   : > { %3948 = vst.msk [vmem:[%s5119_s17 + $0x344] sm:$0xf] %vm1418_vm2, %v4314_v3  ;;  %3903 = vst [vmem:[%s5119_s17 + $0x234] sm:$0xff] %v4269_v38  ;;  %v4271_v63 = vpack.c.bf16 %v1677_v62, %v1675_v61  ;;  %v1679_v39 = vpop.f32.mrb[90].mxu1  ;;  %v5457_v3 = vld [vmem:[#allocation7 + $0x38] sm:$0xff]  }
 0x3a7   : > { %v4574_v25 = vpop.f32.mrb[96].mxu0  ;;  %3905 = vst [vmem:[%s5119_s17 + $0x240] sm:$0xff] %v4271_v63 }
 0x3a8   : > { %v4324_v27 = vpack.c.bf16 %v4574_v25, %v4574_v25  ;;  %v1996_v29 = vpop.f32.mrb[97].mxu0  ;;  %v1681_v25 = vpop.f32.mrb[91].mxu1 }
 0x3a9   : > { %v4320_v40 = vpack.c.bf16 %v1996_v29, %v1996_v29  ;;  %v4575_v41 = vpop.f32.mrb[98].mxu0  ;;  %v4273_v29 = vpack.c.bf16 %v1681_v25, %v1679_v39 }
 0x3aa   : > { %3958 = vst.msk [vmem:[%s5119_s17 + $0x380] sm:$0xf] %vm1418_vm2, %v4324_v27  ;;  %v4326_v31 = vpack.c.bf16 %v4575_v41, %v4575_v41  ;;  %v1999_v42 = vpop.f32.mrb[99].mxu0  ;;  %v5462_v27 = vld [vmem:[#allocation7 + $0x40] sm:$0xff]  }
 0x3ab   : > { %3954 = vst.msk [vmem:[%s5119_s17 + $0x368] sm:$0xf] %vm1418_vm2, %v4320_v40  ;;  %v4322_v26 = vpack.c.bf16 %v1999_v42, %v1999_v42  ;;  %v1685_v40 = vpop.f32.mrb[92].mxu1  ;;  %3907 = vst [vmem:[%s5119_s17 + $0x24c] sm:$0xff] %v4273_v29 }
 0x3ac   : > { %3960 = vst.msk [vmem:[%s5119_s17 + $0x38c] sm:$0xf] %vm1418_vm2, %v4326_v31  ;;  %v1687_v41 = vpop.f32.mrb[93].mxu1 }
 0x3ad   : > { %3956 = vst.msk [vmem:[%s5119_s17 + $0x374] sm:$0xf] %vm1418_vm2, %v4322_v26  ;;  %v4275_v31 = vpack.c.bf16 %v1687_v41, %v1685_v40  ;;  %v1689_v42 = vpop.f32.mrb[94].mxu1 }
 0x3ae   : > { %v1691_v26 = vpop.f32.mrb[95].mxu1 }
 0x3af   : > { %v4578_v33 = vpop.f32.mrb[100].mxu0  ;;  %3909 = vst [vmem:[%s5119_s17 + $0x258] sm:$0xff] %v4275_v31 }
 0x3b0   : > { %v4332_v43 = vpack.c.bf16 %v4578_v33, %v4578_v33  ;;  %v2012_v44 = vpop.f32.mrb[101].mxu0  ;;  %v4277_v33 = vpack.c.bf16 %v1691_v26, %v1689_v42 }
 0x3b1   : > { %v4328_v4 = vpack.c.bf16 %v2012_v44, %v2012_v44  ;;  %v4579_v5 = vpop.f32.mrb[102].mxu0 }
 0x3b2   : > { %3966 = vst.msk [vmem:[%s5119_s17 + $0x3b0] sm:$0xf] %vm1418_vm2, %v4332_v43  ;;  %v4334_v6 = vpack.c.bf16 %v4579_v5, %v4579_v5  ;;  %v2015_v7 = vpop.f32.mrb[103].mxu0  ;;  %v1695_v43 = vpop.f32.mrb[96].mxu1  ;;  %3911 = vst [vmem:[%s5119_s17 + $0x264] sm:$0xff] %v4277_v33 }
 0x3b3   : > { %3962 = vst.msk [vmem:[%s5119_s17 + $0x398] sm:$0xf] %vm1418_vm2, %v4328_v4  ;;  %v4330_v8 = vpack.c.bf16 %v2015_v7, %v2015_v7  ;;  %v1697_v44 = vpop.f32.mrb[97].mxu1 }
 0x3b4   : > { %3968 = vst.msk [vmem:[%s5119_s17 + $0x3bc] sm:$0xf] %vm1418_vm2, %v4334_v6  ;;  %v4279_v4 = vpack.c.bf16 %v1697_v44, %v1695_v43  ;;  %v1699_v5 = vpop.f32.mrb[98].mxu1  ;;  %v4710_v6 = vld [vmem:[#allocation7 + $0x48] sm:$0xff]  }
 0x3b5   : > { %3964 = vst.msk [vmem:[%s5119_s17 + $0x3a4] sm:$0xf] %vm1418_vm2, %v4330_v8  ;;  %v1701_v7 = vpop.f32.mrb[99].mxu1  ;;  %v4711_v8 = vld [vmem:[#allocation7 + $0x50] sm:$0xff]  }
 0x3b6   : > { %3913 = vst [vmem:[%s5119_s17 + $0x270] sm:$0xff] %v4279_v4 }
 0x3b7   : > { %v2558_v9 = vpop.f32.mrb[104].mxu0 }
 0x3b8   : > { %v2560_v10 = vpop.f32.mrb[105].mxu0 }
 0x3b9   : > { %v2562_v11 = vpop.f32.mrb[106].mxu0 }
 0x3ba   : > { %v2608_v12 = vpack.c.bf16 %v2562_v11, %v2558_v9  ;;  %v2564_v13 = vpop.f32.mrb[107].mxu0  ;;  %v4281_v9 = vpack.c.bf16 %v1701_v7, %v1699_v5 }
 0x3bb   : > { %v2609_v14 = vpack.c.bf16 %v2564_v13, %v2560_v10  ;;  %v1705_v10 = vpop.f32.mrb[100].mxu1 }
 0x3bc   : > { %v1707_v11 = vpop.f32.mrb[101].mxu1  ;;  %3915 = vst [vmem:[%s5119_s17 + $0x27c] sm:$0xff] %v4281_v9 }
 0x3bd   : > { %2611 = vmatprep.subr.bf16.mxu0 %v2609_v14  ;;  %v1709_v13 = vpop.f32.mrb[102].mxu1 }
 0x3be   : > { %2612 = vmatpush1.bf16.msra.mxu0 %v2608_v12  ;;  %v4283_v12 = vpack.c.bf16 %v1707_v11, %v1705_v10  ;;  %v1711_v14 = vpop.f32.mrb[103].mxu1 }
 0x3bf   : > { %v2601_v15 = vpop.f32.mrb[108].mxu0 }
 0x3c0   : > { %v4584_v16 = vpop.f32.mrb[109].mxu0  ;;  %3917 = vst [vmem:[%s5119_s17 + $0x288] sm:$0xff] %v4283_v12 }
 0x3c1   : > { %v2604_v0 = vpop.f32.mrb[110].mxu0  ;;  %3973 = vmatmul.mubr.msk.bf16.vlgmr.msra.gmra.mrb[112].mxu0 %vm340_vm1, %v4701_v17  ;;  %v1715_v16 = vpop.f32.mrb[104].mxu1 }
 0x3c2   : > { %v2610_v19 = vpack.c.bf16 %v2604_v0, %v2601_v15  ;;  %v4585_v20 = vpop.f32.mrb[111].mxu0  ;;  %2653 = vmatprep.mubr.bf16.mxu0 %v4804_v2  ;;  %v4285_v15 = vpack.c.bf16 %v1711_v14, %v1709_v13  ;;  %v1717_v0 = vpop.f32.mrb[105].mxu1 }
 0x3c3   : > { %v4287_v17 = vpack.c.bf16 %v1717_v0, %v1715_v16  ;;  %v1719_v18 = vpop.f32.mrb[106].mxu1 }
 0x3c4   : > { %4586 = vmatprep.subr.bf16.mxu1 %v2610_v19  ;;  %3919 = vst [vmem:[%s5119_s17 + $0x294] sm:$0xff] %v4285_v15  ;;  %v1721_v20 = vpop.f32.mrb[107].mxu1 }
 0x3c5   : > { %4587 = vmatpush3.bf16.msra.mxu1 %v2610_v19  ;;  %v4712_v19 = vld [vmem:[#allocation7 + $0x58] sm:$0xff]   ;;  %3921 = vst [vmem:[%s5119_s17 + $0x2a0] sm:$0xff] %v4287_v17  ;;  %v4289_v1 = vpack.c.bf16 %v1721_v20, %v1719_v18  ;;  %v1725_v22 = vpop.f32.mrb[108].mxu1 }
 0x3c6   : > { %v1727_v23 = vpop.f32.mrb[109].mxu1 }
 0x3c7   : > { %3923 = vst [vmem:[%s5119_s17 + $0x2ac] sm:$0xff] %v4289_v1  ;;  %v4291_v24 = vpack.c.bf16 %v1727_v23, %v1725_v22 }
 0x3c8   : > { %4589 = vmatmul.mubr.msk.bf16.vlgmr.msra.gmra.mrb[152].mxu1 %vm340_vm1, %v4702_v28 }
 0x3c9   : > { %3974 = vmatmul.mubr.msk.bf16.gmra.mrb[116].mxu0 %vm340_vm1, %v4702_v28  ;;  %4592 = vmatprep.mubr.msk.bf16.mxu1 %vm340_vm1, %v4703_v45  ;;  %v1729_v28 = vpop.f32.mrb[110].mxu1  ;;  %3925 = vst [vmem:[%s5119_s17 + $0x2b8] sm:$0xff] %v4291_v24 }
 0x3ca   : > { %2663 = vmatprep.mubr.bf16.mxu0 %v4804_v2 }
 0x3d0   : > { %4593 = vmatmul.mubr.msk.bf16.gmra.mrb[156].mxu1 %vm340_vm1, %v4704_v52 }
 0x3d1   : > { %3975 = vmatmul.mubr.msk.bf16.gmra.mrb[120].mxu0 %vm340_vm1, %v4703_v45  ;;  %4596 = vmatprep.mubr.msk.bf16.mxu1 %vm340_vm1, %v4705_v53  ;;  %v1731_v45 = vpop.f32.mrb[111].mxu1 }
 0x3d2   : > { %2673 = vmatprep.mubr.bf16.mxu0 %v4804_v2  ;;  %v4293_v46 = vpack.c.bf16 %v1731_v45, %v1729_v28  ;;  %v1735_v47 = vpop.f32.mrb[112].mxu1 }
 0x3d3   : > { %v1737_v55 = vpop.f32.mrb[113].mxu1 }
 0x3d4   : > { %3927 = vst [vmem:[%s5119_s17 + $0x2c4] sm:$0xff] %v4293_v46  ;;  %v1739_v30 = vpop.f32.mrb[114].mxu1  ;;  %v4295_v56 = vpack.c.bf16 %v1737_v55, %v1735_v47 }
 0x3d5   : > { %v1741_v57 = vpop.f32.mrb[115].mxu1 }
 0x3d6   : > { %v4297_v58 = vpack.c.bf16 %v1741_v57, %v1739_v30  ;;  %3929 = vst [vmem:[%s5119_s17 + $0x2d0] sm:$0xff] %v4295_v56 }
 0x3d8   : > { %4597 = vmatmul.mubr.msk.bf16.gmra.mrb[160].mxu1 %vm340_vm1, %v4706_v59  ;;  %3931 = vst [vmem:[%s5119_s17 + $0x2dc] sm:$0xff] %v4297_v58 }
 0x3d9   : > { %3976 = vmatmul.mubr.msk.bf16.gmra.mrb[124].mxu0 %vm340_vm1, %v4704_v52  ;;  %4600 = vmatprep.mubr.msk.bf16.mxu1 %vm340_vm1, %v4707_v60  ;;  %v5503_v52 = vld [vmem:[#allocation7 + $0x88] sm:$0xff]  }
 0x3da   : > { %2683 = vmatprep.mubr.bf16.mxu0 %v4804_v2 }
 0x3e0   : > { %4601 = vmatmul.mubr.msk.bf16.gmra.mrb[164].mxu1 %vm340_vm1, %v5457_v3 }
 0x3e1   : > { %3977 = vmatmul.mubr.msk.bf16.gmra.mrb[128].mxu0 %vm340_vm1, %v4705_v53  ;;  %4604 = vmatprep.mubr.msk.bf16.mxu1 %vm340_vm1, %v5462_v27  ;;  %v5508_v53 = vld [vmem:[#allocation7 + $0x90] sm:$0xff]  }
 0x3e2   : > { %2693 = vmatprep.mubr.bf16.mxu0 %v4804_v2 }
 0x3e8   : > { %4605 = vmatmul.mubr.msk.bf16.gmra.mrb[168].mxu1 %vm340_vm1, %v4710_v6 }
 0x3e9   : > { %3978 = vmatmul.mubr.msk.bf16.gmra.mrb[132].mxu0 %vm340_vm1, %v4706_v59  ;;  %4608 = vmatprep.mubr.msk.bf16.mxu1 %vm340_vm1, %v4711_v8  ;;  %v1745_v59 = vpop.f32.mrb[116].mxu1 }
 0x3ea   : > { %2703 = vmatprep.mubr.bf16.mxu0 %v4804_v2 }
 0x3f0   : > { %4609 = vmatmul.mubr.msk.bf16.gmra.mrb[172].mxu1 %vm340_vm1, %v4712_v19 }
 0x3f1   : > { %3979 = vmatmul.mubr.msk.bf16.gmra.mrb[136].mxu0 %vm340_vm1, %v4707_v60  ;;  %4612 = vmatprep.mubr.msk.bf16.mxu1 %vm340_vm1, %v4713_v21  ;;  %v1747_v60 = vpop.f32.mrb[117].mxu1 }
 0x3f2   : > { %2713 = vmatprep.mubr.bf16.mxu0 %v4804_v2  ;;  %v1749_v32 = vpop.f32.mrb[118].mxu1  ;;  %v4299_v34 = vpack.c.bf16 %v1747_v60, %v1745_v59 }
 0x3f3   : > { %v1751_v35 = vpop.f32.mrb[119].mxu1 }
 0x3f4   : > { %v4301_v36 = vpack.c.bf16 %v1751_v35, %v1749_v32  ;;  %3933 = vst [vmem:[%s5119_s17 + $0x2e8] sm:$0xff] %v4299_v34  ;;  %v1755_v37 = vpop.f32.mrb[120].mxu1 }
 0x3f5   : > { %v1757_v38 = vpop.f32.mrb[121].mxu1 }
 0x3f6   : > { %3935 = vst [vmem:[%s5119_s17 + $0x2f4] sm:$0xff] %v4301_v36  ;;  %v1759_v61 = vpop.f32.mrb[122].mxu1  ;;  %v4303_v62 = vpack.c.bf16 %v1757_v38, %v1755_v37 }
 0x3f7   : > { %v1761_v63 = vpop.f32.mrb[123].mxu1 }
 0x3f8   : > { %4613 = vmatmul.mubr.msk.bf16.gmra.mrb[176].mxu1 %vm340_vm1, %v4714_v48  ;;  %v4305_v39 = vpack.c.bf16 %v1761_v63, %v1759_v61  ;;  %3937 = vst [vmem:[%s5119_s17 + $0x300] sm:$0xff] %v4303_v62 }
 0x3f9   : > { %3980 = vmatmul.mubr.msk.bf16.gmra.mrb[140].mxu0 %vm340_vm1, %v5457_v3  ;;  %4616 = vmatprep.mubr.msk.bf16.mxu1 %vm340_vm1, %v4715_v49  ;;  %v1765_v3 = vpop.f32.mrb[124].mxu1 }
 0x3fa   : > { %2723 = vmatprep.mubr.bf16.mxu0 %v4804_v2  ;;  %3939 = vst [vmem:[%s5119_s17 + $0x30c] sm:$0xff] %v4305_v39  ;;  %v1767_v25 = vpop.f32.mrb[125].mxu1 }
 0x3fb   : > { %v4307_v29 = vpack.c.bf16 %v1767_v25, %v1765_v3 }
 0x3fd   : > { %3941 = vst [vmem:[%s5119_s17 + $0x318] sm:$0xff] %v4307_v29 }
 0x400   : > { %4617 = vmatmul.mubr.msk.bf16.gmra.mrb[180].mxu1 %vm340_vm1, %v5492_v50 }
 0x401   : > { %3981 = vmatmul.mubr.msk.bf16.gmra.mrb[144].mxu0 %vm340_vm1, %v5462_v27  ;;  %4620 = vmatprep.mubr.msk.bf16.mxu1 %vm340_vm1, %v5498_v51  ;;  %v1769_v27 = vpop.f32.mrb[126].mxu1 }
 0x402   : > { %2733 = vmatprep.mubr.bf16.mxu0 %v4804_v2  ;;  %v1771_v40 = vpop.f32.mrb[127].mxu1 }
 0x403   : > { %v4309_v41 = vpack.c.bf16 %v1771_v40, %v1769_v27  ;;  %v1775_v31 = vpop.f32.mrb[128].mxu1 }
 0x404   : > { %v1777_v42 = vpop.f32.mrb[129].mxu1 }
 0x405   : > { %3943 = vst [vmem:[%s5119_s17 + $0x324] sm:$0xff] %v4309_v41  ;;  %v1779_v26 = vpop.f32.mrb[130].mxu1  ;;  %v4311_v33 = vpack.c.bf16 %v1777_v42, %v1775_v31 }
 0x406   : > { %v1781_v43 = vpop.f32.mrb[131].mxu1 }
 0x407   : > { %v4313_v44 = vpack.c.bf16 %v1781_v43, %v1779_v26  ;;  %3945 = vst [vmem:[%s5119_s17 + $0x330] sm:$0xff] %v4311_v33  ;;  %v1785_v4 = vpop.f32.mrb[132].mxu1 }
 0x408   : > { %4621 = vmatmul.mubr.msk.bf16.gmra.mrb[184].mxu1 %vm340_vm1, %v5503_v52  ;;  %v1787_v5 = vpop.f32.mrb[133].mxu1 }
 0x409   : > { %3982 = vmatmul.mubr.msk.bf16.gmra.mrb[148].mxu0 %vm340_vm1, %v4710_v6  ;;  %4624 = vmatprep.mubr.msk.bf16.mxu1 %vm340_vm1, %v5508_v53  ;;  %3947 = vst [vmem:[%s5119_s17 + $0x33c] sm:$0xff] %v4313_v44  ;;  %v1789_v6 = vpop.f32.mrb[134].mxu1  ;;  %v4315_v7 = vpack.c.bf16 %v1787_v5, %v1785_v4 }
 0x40a   : > { %2743 = vmatprep.mubr.bf16.mxu0 %v4804_v2 }
 0x40b   : > { %3949 = vst [vmem:[%s5119_s17 + $0x348] sm:$0xff] %v4315_v7 }
 0x410   : > { %4625 = vmatmul.mubr.msk.bf16.gmra.mrb[188].mxu1 %vm340_vm1, %v5513_v54 }
 0x411   : > { %3983 = vmatmul.mubr.msk.bf16.gmra.mrb[152].mxu0 %vm340_vm1, %v4711_v8  ;;  %v1791_v8 = vpop.f32.mrb[135].mxu1 }
 0x412   : > { %2753 = vmatprep.mubr.bf16.mxu0 %v4804_v2  ;;  %v4317_v9 = vpack.c.bf16 %v1791_v8, %v1789_v6  ;;  %v1795_v10 = vpop.f32.mrb[136].mxu1 }
 0x413   : > { %v1797_v11 = vpop.f32.mrb[137].mxu1 }
 0x414   : > { %3951 = vst [vmem:[%s5119_s17 + $0x354] sm:$0xff] %v4317_v9  ;;  %v1799_v12 = vpop.f32.mrb[138].mxu1  ;;  %v4319_v13 = vpack.c.bf16 %v1797_v11, %v1795_v10 }
 0x415   : > { %v1801_v14 = vpop.f32.mrb[139].mxu1 }
 0x416   : > { %v4321_v15 = vpack.c.bf16 %v1801_v14, %v1799_v12  ;;  %3953 = vst [vmem:[%s5119_s17 + $0x360] sm:$0xff] %v4319_v13  ;;  %v1805_v16 = vpop.f32.mrb[140].mxu1 }
 0x417   : > { %v1807_v0 = vpop.f32.mrb[141].mxu1 }
 0x418   : > { %3955 = vst [vmem:[%s5119_s17 + $0x36c] sm:$0xff] %v4321_v15  ;;  %v1809_v17 = vpop.f32.mrb[142].mxu1  ;;  %v4323_v18 = vpack.c.bf16 %v1807_v0, %v1805_v16 }
 0x419   : > { %3984 = vmatmul.mubr.msk.bf16.gmra.mrb[156].mxu0 %vm340_vm1, %v4712_v19  ;;  %v1811_v19 = vpop.f32.mrb[143].mxu1 }
 0x41a   : > { %2763 = vmatprep.mubr.bf16.mxu0 %v4804_v2  ;;  %v4325_v20 = vpack.c.bf16 %v1811_v19, %v1809_v17  ;;  %3957 = vst [vmem:[%s5119_s17 + $0x378] sm:$0xff] %v4323_v18 }
 0x41c   : > { %3959 = vst [vmem:[%s5119_s17 + $0x384] sm:$0xff] %v4325_v20 }
 0x421   : > { %3985 = vmatmul.mubr.msk.bf16.gmra.mrb[160].mxu0 %vm340_vm1, %v4713_v21  ;;  %v1815_v21 = vpop.f32.mrb[144].mxu1 }
 0x422   : > { %2773 = vmatprep.mubr.bf16.mxu0 %v4804_v2  ;;  %v1817_v1 = vpop.f32.mrb[145].mxu1 }
 0x423   : > { %v1819_v22 = vpop.f32.mrb[146].mxu1  ;;  %v4327_v23 = vpack.c.bf16 %v1817_v1, %v1815_v21 }
 0x424   : > { %v1821_v24 = vpop.f32.mrb[147].mxu1 }
 0x425   : > { %v4329_v28 = vpack.c.bf16 %v1821_v24, %v1819_v22  ;;  %3961 = vst [vmem:[%s5119_s17 + $0x390] sm:$0xff] %v4327_v23  ;;  %v1825_v45 = vpop.f32.mrb[148].mxu1 }
 0x426   : > { %v1827_v46 = vpop.f32.mrb[149].mxu1 }
 0x427   : > { %3963 = vst [vmem:[%s5119_s17 + $0x39c] sm:$0xff] %v4329_v28  ;;  %v1829_v47 = vpop.f32.mrb[150].mxu1 }
 0x429   : > { %3986 = vmatmul.mubr.msk.bf16.gmra.mrb[164].mxu0 %vm340_vm1, %v4714_v48  ;;  %v4331_v48 = vpack.c.bf16 %v1827_v46, %v1825_v45 }
 0x42a   : > { %2783 = vmatprep.mubr.bf16.mxu0 %v4804_v2 }
 0x42b   : > { %3965 = vst [vmem:[%s5119_s17 + $0x3a8] sm:$0xff] %v4331_v48 }
 0x431   : > { %3987 = vmatmul.mubr.msk.bf16.gmra.mrb[168].mxu0 %vm340_vm1, %v4715_v49  ;;  %v1831_v49 = vpop.f32.mrb[151].mxu1 }
 0x432   : > { %2793 = vmatprep.mubr.bf16.mxu0 %v4804_v2 }
 0x439   : > { %3988 = vmatmul.mubr.msk.bf16.gmra.mrb[172].mxu0 %vm340_vm1, %v5492_v50  ;;  %v4333_v50 = vpack.c.bf16 %v1831_v49, %v1829_v47 }
 0x43a   : > { %2803 = vmatprep.mubr.bf16.mxu0 %v4804_v2 }
 0x43b   : > { %3967 = vst [vmem:[%s5119_s17 + $0x3b4] sm:$0xff] %v4333_v50 }
 0x441   : > { %3989 = vmatmul.mubr.msk.bf16.gmra.mrb[176].mxu0 %vm340_vm1, %v5498_v51 }
 0x442   : > { %2813 = vmatprep.mubr.bf16.mxu0 %v4804_v2 }
 0x449   : > { %3990 = vmatmul.mubr.msk.bf16.gmra.mrb[180].mxu0 %vm340_vm1, %v5503_v52 }
 0x44a   : > { %2823 = vmatprep.mubr.bf16.mxu0 %v4804_v2 }
 0x451   : > { %3991 = vmatmul.mubr.msk.bf16.gmra.mrb[184].mxu0 %vm340_vm1, %v5508_v53 }
 0x452   : > { %2833 = vmatprep.mubr.bf16.mxu0 %v4804_v2 }
 0x459   : > { %3992 = vmatmul.mubr.msk.bf16.gmra.mrb[188].mxu0 %vm340_vm1, %v5513_v54 }
 0x494   : > { %v2645_v2 = vpop.f32.mrb[112].mxu0 }
 0x495   : > { %v2647_v51 = vpop.f32.mrb[113].mxu0 }
 0x496   : > { %v4335_v52 = vpack.c.bf16 %v2647_v51, %v2645_v2  ;;  %v2649_v53 = vpop.f32.mrb[114].mxu0 }
 0x497   : > { %v2651_v55 = vpop.f32.mrb[115].mxu0 }
 0x498   : > { %4093 = vst [vmem:[%s5119_s17 + $0x3c0] sm:$0xff] %v4335_v52  ;;  %v4337_v30 = vpack.c.bf16 %v2651_v55, %v2649_v53 }
 0x49a   : > { %4095 = vst [vmem:[%s5119_s17 + $0x3cc] sm:$0xff] %v4337_v30 }
 0x49b   : > { %v4590_v54 = vpop.f32.mrb[152].mxu1 }
 0x49c   : > { %v2655_v56 = vpop.f32.mrb[116].mxu0  ;;  %v4340_v57 = vpack.c.bf16 %v4590_v54, %v4590_v54  ;;  %v2878_v58 = vpop.f32.mrb[153].mxu1 }
 0x49d   : > { %v2657_v59 = vpop.f32.mrb[117].mxu0  ;;  %v4336_v60 = vpack.c.bf16 %v2878_v58, %v2878_v58  ;;  %v4591_v32 = vpop.f32.mrb[154].mxu1 }
 0x49e   : > { %v4339_v34 = vpack.c.bf16 %v2657_v59, %v2655_v56  ;;  %v2659_v35 = vpop.f32.mrb[118].mxu0  ;;  %4098 = vst.msk [vmem:[%s5119_s17 + $0x3e0] sm:$0xf] %vm1418_vm2, %v4340_v57  ;;  %v4342_v36 = vpack.c.bf16 %v4591_v32, %v4591_v32  ;;  %v2881_v37 = vpop.f32.mrb[155].mxu1 }
 0x49f   : > { %v2661_v38 = vpop.f32.mrb[119].mxu0  ;;  %4094 = vst.msk [vmem:[%s5119_s17 + $0x3c8] sm:$0xf] %vm1418_vm2, %v4336_v60  ;;  %v4338_v61 = vpack.c.bf16 %v2881_v37, %v2881_v37 }
 0x4a0   : > { %4097 = vst [vmem:[%s5119_s17 + $0x3d8] sm:$0xff] %v4339_v34  ;;  %v4341_v62 = vpack.c.bf16 %v2661_v38, %v2659_v35  ;;  %4100 = vst.msk [vmem:[%s5119_s17 + $0x3ec] sm:$0xf] %vm1418_vm2, %v4342_v36 }
 0x4a1   : > { %4096 = vst.msk [vmem:[%s5119_s17 + $0x3d4] sm:$0xf] %vm1418_vm2, %v4338_v61 }
 0x4a2   : > { %4099 = vst [vmem:[%s5119_s17 + $0x3e4] sm:$0xff] %v4341_v62 }
 0x4a3   : > { %v4594_v63 = vpop.f32.mrb[156].mxu1 }
 0x4a4   : > { %v2665_v39 = vpop.f32.mrb[120].mxu0  ;;  %v4348_v3 = vpack.c.bf16 %v4594_v63, %v4594_v63  ;;  %v2894_v25 = vpop.f32.mrb[157].mxu1 }
 0x4a5   : > { %v2667_v27 = vpop.f32.mrb[121].mxu0  ;;  %v4344_v29 = vpack.c.bf16 %v2894_v25, %v2894_v25  ;;  %v4595_v40 = vpop.f32.mrb[158].mxu1 }
 0x4a6   : > { %v4343_v41 = vpack.c.bf16 %v2667_v27, %v2665_v39  ;;  %v2669_v31 = vpop.f32.mrb[122].mxu0  ;;  %4106 = vst.msk [vmem:[%s5119_s17 + $0x410] sm:$0xf] %vm1418_vm2, %v4348_v3  ;;  %v4350_v42 = vpack.c.bf16 %v4595_v40, %v4595_v40  ;;  %v2897_v26 = vpop.f32.mrb[159].mxu1 }
 0x4a7   : > { %v2671_v33 = vpop.f32.mrb[123].mxu0  ;;  %4102 = vst.msk [vmem:[%s5119_s17 + $0x3f8] sm:$0xf] %vm1418_vm2, %v4344_v29  ;;  %v4346_v43 = vpack.c.bf16 %v2897_v26, %v2897_v26 }
 0x4a8   : > { %4101 = vst [vmem:[%s5119_s17 + $0x3f0] sm:$0xff] %v4343_v41  ;;  %v4345_v44 = vpack.c.bf16 %v2671_v33, %v2669_v31  ;;  %4108 = vst.msk [vmem:[%s5119_s17 + $0x41c] sm:$0xf] %vm1418_vm2, %v4350_v42 }
 0x4a9   : > { %4104 = vst.msk [vmem:[%s5119_s17 + $0x404] sm:$0xf] %vm1418_vm2, %v4346_v43 }
 0x4aa   : > { %4103 = vst [vmem:[%s5119_s17 + $0x3fc] sm:$0xff] %v4345_v44 }
 0x4ab   : > { %v4598_v4 = vpop.f32.mrb[160].mxu1 }
 0x4ac   : > { %v2675_v5 = vpop.f32.mrb[124].mxu0  ;;  %v4356_v6 = vpack.c.bf16 %v4598_v4, %v4598_v4  ;;  %v2910_v7 = vpop.f32.mrb[161].mxu1 }
 0x4ad   : > { %v2677_v8 = vpop.f32.mrb[125].mxu0  ;;  %v4352_v9 = vpack.c.bf16 %v2910_v7, %v2910_v7  ;;  %v4599_v10 = vpop.f32.mrb[162].mxu1 }
 0x4ae   : > { %v4347_v11 = vpack.c.bf16 %v2677_v8, %v2675_v5  ;;  %v2679_v12 = vpop.f32.mrb[126].mxu0  ;;  %4114 = vst.msk [vmem:[%s5119_s17 + $0x440] sm:$0xf] %vm1418_vm2, %v4356_v6  ;;  %v4358_v13 = vpack.c.bf16 %v4599_v10, %v4599_v10  ;;  %v2913_v14 = vpop.f32.mrb[163].mxu1 }
 0x4af   : > { %v2681_v15 = vpop.f32.mrb[127].mxu0  ;;  %4110 = vst.msk [vmem:[%s5119_s17 + $0x428] sm:$0xf] %vm1418_vm2, %v4352_v9  ;;  %v4354_v16 = vpack.c.bf16 %v2913_v14, %v2913_v14 }
 0x4b0   : > { %4105 = vst [vmem:[%s5119_s17 + $0x408] sm:$0xff] %v4347_v11  ;;  %v4349_v0 = vpack.c.bf16 %v2681_v15, %v2679_v12  ;;  %4116 = vst.msk [vmem:[%s5119_s17 + $0x44c] sm:$0xf] %vm1418_vm2, %v4358_v13 }
 0x4b1   : > { %4112 = vst.msk [vmem:[%s5119_s17 + $0x434] sm:$0xf] %vm1418_vm2, %v4354_v16 }
 0x4b2   : > { %4107 = vst [vmem:[%s5119_s17 + $0x414] sm:$0xff] %v4349_v0 }
 0x4b3   : > { %v4602_v17 = vpop.f32.mrb[164].mxu1 }
 0x4b4   : > { %v2685_v18 = vpop.f32.mrb[128].mxu0  ;;  %v4364_v19 = vpack.c.bf16 %v4602_v17, %v4602_v17  ;;  %v2926_v20 = vpop.f32.mrb[165].mxu1 }
 0x4b5   : > { %v2687_v21 = vpop.f32.mrb[129].mxu0  ;;  %v4360_v1 = vpack.c.bf16 %v2926_v20, %v2926_v20  ;;  %v4603_v22 = vpop.f32.mrb[166].mxu1 }
 0x4b6   : > { %v4351_v23 = vpack.c.bf16 %v2687_v21, %v2685_v18  ;;  %v2689_v24 = vpop.f32.mrb[130].mxu0  ;;  %4122 = vst.msk [vmem:[%s5119_s17 + $0x470] sm:$0xf] %vm1418_vm2, %v4364_v19  ;;  %v4366_v28 = vpack.c.bf16 %v4603_v22, %v4603_v22  ;;  %v2929_v45 = vpop.f32.mrb[167].mxu1 }
 0x4b7   : > { %v2691_v46 = vpop.f32.mrb[131].mxu0  ;;  %4118 = vst.msk [vmem:[%s5119_s17 + $0x458] sm:$0xf] %vm1418_vm2, %v4360_v1  ;;  %v4362_v47 = vpack.c.bf16 %v2929_v45, %v2929_v45 }
 0x4b8   : > { %4109 = vst [vmem:[%s5119_s17 + $0x420] sm:$0xff] %v4351_v23  ;;  %v4353_v48 = vpack.c.bf16 %v2691_v46, %v2689_v24  ;;  %4124 = vst.msk [vmem:[%s5119_s17 + $0x47c] sm:$0xf] %vm1418_vm2, %v4366_v28 }
 0x4b9   : > { %4120 = vst.msk [vmem:[%s5119_s17 + $0x464] sm:$0xf] %vm1418_vm2, %v4362_v47 }
 0x4ba   : > { %4111 = vst [vmem:[%s5119_s17 + $0x42c] sm:$0xff] %v4353_v48 }
 0x4bb   : > { %v4606_v49 = vpop.f32.mrb[168].mxu1 }
 0x4bc   : > { %v2695_v50 = vpop.f32.mrb[132].mxu0  ;;  %v4372_v2 = vpack.c.bf16 %v4606_v49, %v4606_v49  ;;  %v2942_v51 = vpop.f32.mrb[169].mxu1 }
 0x4bd   : > { %v2697_v52 = vpop.f32.mrb[133].mxu0  ;;  %v4368_v53 = vpack.c.bf16 %v2942_v51, %v2942_v51  ;;  %v4607_v55 = vpop.f32.mrb[170].mxu1 }
 0x4be   : > { %v4355_v30 = vpack.c.bf16 %v2697_v52, %v2695_v50  ;;  %v2699_v54 = vpop.f32.mrb[134].mxu0  ;;  %4130 = vst.msk [vmem:[%s5119_s17 + $0x4a0] sm:$0xf] %vm1418_vm2, %v4372_v2  ;;  %v4374_v56 = vpack.c.bf16 %v4607_v55, %v4607_v55  ;;  %v2945_v57 = vpop.f32.mrb[171].mxu1 }
 0x4bf   : > { %v2701_v58 = vpop.f32.mrb[135].mxu0  ;;  %4126 = vst.msk [vmem:[%s5119_s17 + $0x488] sm:$0xf] %vm1418_vm2, %v4368_v53  ;;  %v4370_v59 = vpack.c.bf16 %v2945_v57, %v2945_v57 }
 0x4c0   : > { %4113 = vst [vmem:[%s5119_s17 + $0x438] sm:$0xff] %v4355_v30  ;;  %v4357_v60 = vpack.c.bf16 %v2701_v58, %v2699_v54  ;;  %4132 = vst.msk [vmem:[%s5119_s17 + $0x4ac] sm:$0xf] %vm1418_vm2, %v4374_v56 }
 0x4c1   : > { %4128 = vst.msk [vmem:[%s5119_s17 + $0x494] sm:$0xf] %vm1418_vm2, %v4370_v59 }
 0x4c2   : > { %4115 = vst [vmem:[%s5119_s17 + $0x444] sm:$0xff] %v4357_v60 }
 0x4c3   : > { %v4610_v32 = vpop.f32.mrb[172].mxu1 }
 0x4c4   : > { %v2705_v34 = vpop.f32.mrb[136].mxu0  ;;  %v4380_v35 = vpack.c.bf16 %v4610_v32, %v4610_v32  ;;  %v2958_v36 = vpop.f32.mrb[173].mxu1 }
 0x4c5   : > { %v2707_v37 = vpop.f32.mrb[137].mxu0  ;;  %v4376_v38 = vpack.c.bf16 %v2958_v36, %v2958_v36  ;;  %v4611_v61 = vpop.f32.mrb[174].mxu1 }
 0x4c6   : > { %v4359_v62 = vpack.c.bf16 %v2707_v37, %v2705_v34  ;;  %v2709_v63 = vpop.f32.mrb[138].mxu0  ;;  %4138 = vst.msk [vmem:[%s5119_s17 + $0x4d0] sm:$0xf] %vm1418_vm2, %v4380_v35  ;;  %v4382_v39 = vpack.c.bf16 %v4611_v61, %v4611_v61  ;;  %v2961_v3 = vpop.f32.mrb[175].mxu1 }
 0x4c7   : > { %v2711_v25 = vpop.f32.mrb[139].mxu0  ;;  %4134 = vst.msk [vmem:[%s5119_s17 + $0x4b8] sm:$0xf] %vm1418_vm2, %v4376_v38  ;;  %v4378_v27 = vpack.c.bf16 %v2961_v3, %v2961_v3 }
 0x4c8   : > { %4117 = vst [vmem:[%s5119_s17 + $0x450] sm:$0xff] %v4359_v62  ;;  %v4361_v29 = vpack.c.bf16 %v2711_v25, %v2709_v63  ;;  %4140 = vst.msk [vmem:[%s5119_s17 + $0x4dc] sm:$0xf] %vm1418_vm2, %v4382_v39 }
 0x4c9   : > { %4136 = vst.msk [vmem:[%s5119_s17 + $0x4c4] sm:$0xf] %vm1418_vm2, %v4378_v27 }
 0x4ca   : > { %4119 = vst [vmem:[%s5119_s17 + $0x45c] sm:$0xff] %v4361_v29 }
 0x4cb   : > { %v4614_v40 = vpop.f32.mrb[176].mxu1 }
 0x4cc   : > { %v2715_v41 = vpop.f32.mrb[140].mxu0  ;;  %v4388_v31 = vpack.c.bf16 %v4614_v40, %v4614_v40  ;;  %v2974_v42 = vpop.f32.mrb[177].mxu1 }
 0x4cd   : > { %v2717_v26 = vpop.f32.mrb[141].mxu0  ;;  %v4384_v33 = vpack.c.bf16 %v2974_v42, %v2974_v42  ;;  %v4615_v43 = vpop.f32.mrb[178].mxu1 }
 0x4ce   : > { %v4363_v44 = vpack.c.bf16 %v2717_v26, %v2715_v41  ;;  %v2719_v4 = vpop.f32.mrb[142].mxu0  ;;  %4146 = vst.msk [vmem:[%s5119_s17 + $0x500] sm:$0xf] %vm1418_vm2, %v4388_v31  ;;  %v4390_v5 = vpack.c.bf16 %v4615_v43, %v4615_v43  ;;  %v2977_v6 = vpop.f32.mrb[179].mxu1 }
 0x4cf   : > { %v2721_v7 = vpop.f32.mrb[143].mxu0  ;;  %4142 = vst.msk [vmem:[%s5119_s17 + $0x4e8] sm:$0xf] %vm1418_vm2, %v4384_v33  ;;  %v4386_v8 = vpack.c.bf16 %v2977_v6, %v2977_v6 }
 0x4d0   : > { %4121 = vst [vmem:[%s5119_s17 + $0x468] sm:$0xff] %v4363_v44  ;;  %v4365_v9 = vpack.c.bf16 %v2721_v7, %v2719_v4  ;;  %4148 = vst.msk [vmem:[%s5119_s17 + $0x50c] sm:$0xf] %vm1418_vm2, %v4390_v5 }
 0x4d1   : > { %4144 = vst.msk [vmem:[%s5119_s17 + $0x4f4] sm:$0xf] %vm1418_vm2, %v4386_v8 }
 0x4d2   : > { %4123 = vst [vmem:[%s5119_s17 + $0x474] sm:$0xff] %v4365_v9 }
 0x4d3   : > { %v4618_v10 = vpop.f32.mrb[180].mxu1 }
 0x4d4   : > { %v2725_v11 = vpop.f32.mrb[144].mxu0  ;;  %v4396_v12 = vpack.c.bf16 %v4618_v10, %v4618_v10  ;;  %v2990_v13 = vpop.f32.mrb[181].mxu1 }
 0x4d5   : > { %v2727_v14 = vpop.f32.mrb[145].mxu0  ;;  %v4392_v15 = vpack.c.bf16 %v2990_v13, %v2990_v13  ;;  %v4619_v16 = vpop.f32.mrb[182].mxu1 }
 0x4d6   : > { %v4367_v0 = vpack.c.bf16 %v2727_v14, %v2725_v11  ;;  %v2729_v17 = vpop.f32.mrb[146].mxu0  ;;  %4154 = vst.msk [vmem:[%s5119_s17 + $0x530] sm:$0xf] %vm1418_vm2, %v4396_v12  ;;  %v4398_v18 = vpack.c.bf16 %v4619_v16, %v4619_v16  ;;  %v2993_v19 = vpop.f32.mrb[183].mxu1 }
 0x4d7   : > { %v2731_v20 = vpop.f32.mrb[147].mxu0  ;;  %4150 = vst.msk [vmem:[%s5119_s17 + $0x518] sm:$0xf] %vm1418_vm2, %v4392_v15  ;;  %v4394_v21 = vpack.c.bf16 %v2993_v19, %v2993_v19 }
 0x4d8   : > { %4125 = vst [vmem:[%s5119_s17 + $0x480] sm:$0xff] %v4367_v0  ;;  %v4369_v1 = vpack.c.bf16 %v2731_v20, %v2729_v17  ;;  %4156 = vst.msk [vmem:[%s5119_s17 + $0x53c] sm:$0xf] %vm1418_vm2, %v4398_v18 }
 0x4d9   : > { %4152 = vst.msk [vmem:[%s5119_s17 + $0x524] sm:$0xf] %vm1418_vm2, %v4394_v21 }
 0x4da   : > { %4127 = vst [vmem:[%s5119_s17 + $0x48c] sm:$0xff] %v4369_v1 }
 0x4db   : > { %v4622_v22 = vpop.f32.mrb[184].mxu1 }
 0x4dc   : > { %v2735_v23 = vpop.f32.mrb[148].mxu0  ;;  %v4404_v24 = vpack.c.bf16 %v4622_v22, %v4622_v22  ;;  %v3006_v28 = vpop.f32.mrb[185].mxu1 }
 0x4dd   : > { %v2737_v45 = vpop.f32.mrb[149].mxu0  ;;  %v4400_v46 = vpack.c.bf16 %v3006_v28, %v3006_v28  ;;  %v4623_v47 = vpop.f32.mrb[186].mxu1 }
 0x4de   : > { %v4371_v48 = vpack.c.bf16 %v2737_v45, %v2735_v23  ;;  %v2739_v49 = vpop.f32.mrb[150].mxu0  ;;  %4162 = vst.msk [vmem:[%s5119_s17 + $0x560] sm:$0xf] %vm1418_vm2, %v4404_v24  ;;  %v4406_v50 = vpack.c.bf16 %v4623_v47, %v4623_v47  ;;  %v3009_v2 = vpop.f32.mrb[187].mxu1 }
 0x4df   : > { %v2741_v51 = vpop.f32.mrb[151].mxu0  ;;  %4158 = vst.msk [vmem:[%s5119_s17 + $0x548] sm:$0xf] %vm1418_vm2, %v4400_v46  ;;  %v4402_v52 = vpack.c.bf16 %v3009_v2, %v3009_v2 }
 0x4e0   : > { %4129 = vst [vmem:[%s5119_s17 + $0x498] sm:$0xff] %v4371_v48  ;;  %v4373_v53 = vpack.c.bf16 %v2741_v51, %v2739_v49  ;;  %4164 = vst.msk [vmem:[%s5119_s17 + $0x56c] sm:$0xf] %vm1418_vm2, %v4406_v50 }
 0x4e1   : > { %4160 = vst.msk [vmem:[%s5119_s17 + $0x554] sm:$0xf] %vm1418_vm2, %v4402_v52 }
 0x4e2   : > { %4131 = vst [vmem:[%s5119_s17 + $0x4a4] sm:$0xff] %v4373_v53 }
 0x4e3   : > { %v4626_v55 = vpop.f32.mrb[188].mxu1 }
 0x4e4   : > { %v2745_v30 = vpop.f32.mrb[152].mxu0  ;;  %v4412_v54 = vpack.c.bf16 %v4626_v55, %v4626_v55  ;;  %v3022_v56 = vpop.f32.mrb[189].mxu1 }
 0x4e5   : > { %v2747_v57 = vpop.f32.mrb[153].mxu0  ;;  %v4408_v58 = vpack.c.bf16 %v3022_v56, %v3022_v56  ;;  %v4627_v59 = vpop.f32.mrb[190].mxu1 }
 0x4e6   : > { %v4375_v60 = vpack.c.bf16 %v2747_v57, %v2745_v30  ;;  %v2749_v32 = vpop.f32.mrb[154].mxu0  ;;  %4170 = vst.msk [vmem:[%s5119_s17 + $0x590] sm:$0xf] %vm1418_vm2, %v4412_v54  ;;  %v4414_v34 = vpack.c.bf16 %v4627_v59, %v4627_v59  ;;  %v3025_v35 = vpop.f32.mrb[191].mxu1 }
 0x4e7   : > { %v2751_v36 = vpop.f32.mrb[155].mxu0  ;;  %4166 = vst.msk [vmem:[%s5119_s17 + $0x578] sm:$0xf] %vm1418_vm2, %v4408_v58  ;;  %v4410_v37 = vpack.c.bf16 %v3025_v35, %v3025_v35 }
 0x4e8   : > { %4133 = vst [vmem:[%s5119_s17 + $0x4b0] sm:$0xff] %v4375_v60  ;;  %v4377_v38 = vpack.c.bf16 %v2751_v36, %v2749_v32  ;;  %4172 = vst.msk [vmem:[%s5119_s17 + $0x59c] sm:$0xf] %vm1418_vm2, %v4414_v34 }
 0x4e9   : > { %4168 = vst.msk [vmem:[%s5119_s17 + $0x584] sm:$0xf] %vm1418_vm2, %v4410_v37 }
 0x4ea   : > { %4135 = vst [vmem:[%s5119_s17 + $0x4bc] sm:$0xff] %v4377_v38 }
 0x4ec   : > { %v2755_v61 = vpop.f32.mrb[156].mxu0 }
 0x4ed   : > { %v2757_v62 = vpop.f32.mrb[157].mxu0 }
 0x4ee   : > { %v4379_v63 = vpack.c.bf16 %v2757_v62, %v2755_v61  ;;  %v2759_v39 = vpop.f32.mrb[158].mxu0 }
 0x4ef   : > { %v2761_v3 = vpop.f32.mrb[159].mxu0 }
 0x4f0   : > { %4137 = vst [vmem:[%s5119_s17 + $0x4c8] sm:$0xff] %v4379_v63  ;;  %v4381_v25 = vpack.c.bf16 %v2761_v3, %v2759_v39 }
 0x4f2   : > { %4139 = vst [vmem:[%s5119_s17 + $0x4d4] sm:$0xff] %v4381_v25 }
 0x4f4   : > { %v2765_v27 = vpop.f32.mrb[160].mxu0 }
 0x4f5   : > { %v2767_v29 = vpop.f32.mrb[161].mxu0 }
 0x4f6   : > { %v4383_v40 = vpack.c.bf16 %v2767_v29, %v2765_v27  ;;  %v2769_v41 = vpop.f32.mrb[162].mxu0 }
 0x4f7   : > { %v2771_v31 = vpop.f32.mrb[163].mxu0 }
 0x4f8   : > { %4141 = vst [vmem:[%s5119_s17 + $0x4e0] sm:$0xff] %v4383_v40  ;;  %v4385_v42 = vpack.c.bf16 %v2771_v31, %v2769_v41 }
 0x4fa   : > { %4143 = vst [vmem:[%s5119_s17 + $0x4ec] sm:$0xff] %v4385_v42 }
 0x4fc   : > { %v2775_v26 = vpop.f32.mrb[164].mxu0 }
 0x4fd   : > { %v2777_v33 = vpop.f32.mrb[165].mxu0 }
 0x4fe   : > { %v4387_v43 = vpack.c.bf16 %v2777_v33, %v2775_v26  ;;  %v2779_v44 = vpop.f32.mrb[166].mxu0 }
 0x4ff   : > { %v2781_v4 = vpop.f32.mrb[167].mxu0 }
 0x500   : > { %4145 = vst [vmem:[%s5119_s17 + $0x4f8] sm:$0xff] %v4387_v43  ;;  %v4389_v5 = vpack.c.bf16 %v2781_v4, %v2779_v44 }
 0x502   : > { %4147 = vst [vmem:[%s5119_s17 + $0x504] sm:$0xff] %v4389_v5 }
 0x504   : > { %v2785_v6 = vpop.f32.mrb[168].mxu0 }
 0x505   : > { %v2787_v7 = vpop.f32.mrb[169].mxu0 }
 0x506   : > { %v4391_v8 = vpack.c.bf16 %v2787_v7, %v2785_v6  ;;  %v2789_v9 = vpop.f32.mrb[170].mxu0 }
 0x507   : > { %v2791_v10 = vpop.f32.mrb[171].mxu0 }
 0x508   : > { %4149 = vst [vmem:[%s5119_s17 + $0x510] sm:$0xff] %v4391_v8  ;;  %v4393_v11 = vpack.c.bf16 %v2791_v10, %v2789_v9 }
 0x50a   : > { %4151 = vst [vmem:[%s5119_s17 + $0x51c] sm:$0xff] %v4393_v11 }
 0x50c   : > { %v2795_v12 = vpop.f32.mrb[172].mxu0 }
 0x50d   : > { %v2797_v13 = vpop.f32.mrb[173].mxu0 }
 0x50e   : > { %v4395_v14 = vpack.c.bf16 %v2797_v13, %v2795_v12  ;;  %v2799_v15 = vpop.f32.mrb[174].mxu0 }
 0x50f   : > { %v2801_v16 = vpop.f32.mrb[175].mxu0 }
 0x510   : > { %4153 = vst [vmem:[%s5119_s17 + $0x528] sm:$0xff] %v4395_v14  ;;  %v4397_v0 = vpack.c.bf16 %v2801_v16, %v2799_v15 }
 0x512   : > { %4155 = vst [vmem:[%s5119_s17 + $0x534] sm:$0xff] %v4397_v0 }
 0x514   : > { %v2805_v17 = vpop.f32.mrb[176].mxu0 }
 0x515   : > { %v2807_v18 = vpop.f32.mrb[177].mxu0 }
 0x516   : > { %v4399_v19 = vpack.c.bf16 %v2807_v18, %v2805_v17  ;;  %v2809_v20 = vpop.f32.mrb[178].mxu0 }
 0x517   : > { %v2811_v21 = vpop.f32.mrb[179].mxu0 }
 0x518   : > { %4157 = vst [vmem:[%s5119_s17 + $0x540] sm:$0xff] %v4399_v19  ;;  %v4401_v1 = vpack.c.bf16 %v2811_v21, %v2809_v20 }
 0x51a   : > { %4159 = vst [vmem:[%s5119_s17 + $0x54c] sm:$0xff] %v4401_v1 }
 0x51c   : > { %v2815_v22 = vpop.f32.mrb[180].mxu0 }
 0x51d   : > { %v2817_v23 = vpop.f32.mrb[181].mxu0 }
 0x51e   : > { %v4403_v24 = vpack.c.bf16 %v2817_v23, %v2815_v22  ;;  %v2819_v28 = vpop.f32.mrb[182].mxu0 }
 0x51f   : > { %v2821_v45 = vpop.f32.mrb[183].mxu0 }
 0x520   : > { %4161 = vst [vmem:[%s5119_s17 + $0x558] sm:$0xff] %v4403_v24  ;;  %v4405_v46 = vpack.c.bf16 %v2821_v45, %v2819_v28 }
 0x522   : > { %4163 = vst [vmem:[%s5119_s17 + $0x564] sm:$0xff] %v4405_v46 }
 0x524   : > { %v2825_v47 = vpop.f32.mrb[184].mxu0 }
 0x525   : > { %v2827_v48 = vpop.f32.mrb[185].mxu0 }
 0x526   : > { %v4407_v49 = vpack.c.bf16 %v2827_v48, %v2825_v47  ;;  %v2829_v50 = vpop.f32.mrb[186].mxu0 }
 0x527   : > { %v2831_v2 = vpop.f32.mrb[187].mxu0 }
 0x528   : > { %4165 = vst [vmem:[%s5119_s17 + $0x570] sm:$0xff] %v4407_v49  ;;  %v4409_v51 = vpack.c.bf16 %v2831_v2, %v2829_v50 }
 0x52a   : > { %4167 = vst [vmem:[%s5119_s17 + $0x57c] sm:$0xff] %v4409_v51 }
 0x52c   : > { %v2835_v52 = vpop.f32.mrb[188].mxu0 }
 0x52d   : > { %v2837_v53 = vpop.f32.mrb[189].mxu0 }
 0x52e   : > { %v4411_v55 = vpack.c.bf16 %v2837_v53, %v2835_v52  ;;  %v2839_v30 = vpop.f32.mrb[190].mxu0 }
 0x52f   : > { %v2841_v54 = vpop.f32.mrb[191].mxu0 }
 0x530   : > { %4169 = vst [vmem:[%s5119_s17 + $0x588] sm:$0xff] %v4411_v55  ;;  %v4413_v56 = vpack.c.bf16 %v2841_v54, %v2839_v30 }
 0x532   : > { %4171 = vst [vmem:[%s5119_s17 + $0x594] sm:$0xff] %v4413_v56 }
 0x533 PF: > { %s18_s18 = sadd.s32 1, %s4797_s18  }
 0x534   : > { %p15_p13 = scmp.ge.s32.totalorder %s18_s18, 6  }
 0x536   :  { %17 = sbr.rel (!%p15_p13) target bundleno = 3 (0x3), region = 88 }
 0x53d   :  { %3539 = vsyncpa [#allocation3], 1 }
 0x53e   :  { %3541 = vsyncpa [#allocation3 + $0x1], 1 }
 0x53f   :  { %3542 = vsyncpa [#allocation4], 1 }
 0x540   :  { %3544 = vsyncpa [#allocation4 + $0x1], 1 }
 0x541   :  { %3545 = vsyncpa [#allocation6], 1 }

// kernel: _forward_device.3
= control target key start
LH: loop header
LB: loop body
LE: loop exit
PB: predicated region body
PF: predicated region fallthrough
CT: control target
= control target key end

     0   :  { %s3788_s18 = smov 0   ;;  %s4747_s0 = inlined_call_operand.vmem [shape: bf16[4,400,768], index: 0, kind: input, shape index: {}]   ;;  %s4748_s1 = inlined_call_operand.vmem [shape: bf16[768,128], index: 1, kind: input, shape index: {}]   ;;  %s4749_s2 = inlined_call_operand.vmem [shape: f32[1,128], index: 2, kind: input, shape index: {}]   ;;  %s4750_s3 = inlined_call_operand.vmem [shape: bf16[128,128], index: 3, kind: input, shape index: {}]   ;;  %s4751_s4 = inlined_call_operand.vmem [shape: f32[1,128], index: 4, kind: input, shape index: {}]   ;;  %s4752_s5 = inlined_call_operand.vmem [shape: f32[4,1,128], index: 5, kind: output, shape index: {}]  }
   0x1 LB: > { %s2877_s19 = sadd.s32 4294967295, %s3753_s18   ;;  %p2881_p0 = scmp.ge.s32.totalorder %s3753_s18, 1  ;;  %s3753_s18 = sphi %s3788_s18, %s15_s18  }
   0x2   : > { %p187_p1 = scmp.lt.s32.totalorder %s3753_s18, 5 }
   0x4   : > { %p188_p2 = pnand %p2881_p0, %p187_p1 }
   0x5   : > { %v3365_v0 = vld [vmem:[%s4748_s1] sm:$0xff] (!%p188_p2)   ;;  %v3755_v1 = vmov (!%p188_p2), 0   ;;  %v3367_v3 = vld [vmem:[%s4748_s1 + $0x8] sm:$0xff] (!%p188_p2)   ;;  %v3369_v5 = vld [vmem:[%s4748_s1 + $0x10] sm:$0xff] (!%p188_p2)   ;;  %p213_p3 = scmp.lt.s32.totalorder (!%p188_p2), %s2877_s19, 3  ;;  %vm3757_vm0 = vmmov (!%p188_p2), 0  }
   0x6   : > { %191 = sbr.rel (%p188_p2) target bundleno = 844 (0x34c), region = 40  ;;  %1513 = vmatprep.subr.bf16.mxu1 (!%p188_p2), %v3755_v1  ;;  %1746 = vmatprep.subr.bf16.mxu0 (!%p188_p2), %v3755_v1  ;;  %v3804_v2 = vld [vmem:[%s4748_s1 + $0x80] sm:$0xff] (!%p188_p2)   ;;  %v3814_v4 = vld [vmem:[%s4748_s1 + $0x88] sm:$0xff] (!%p188_p2)   ;;  %v3825_v6 = vld [vmem:[%s4748_s1 + $0x90] sm:$0xff] (!%p188_p2)  }
   0x7   : > { %1514 = vmatpush1.bf16.msra.mxu1 (!%p188_p2), %v3365_v0  ;;  %1747 = vmatpush1.bf16.msra.mxu0 (!%p188_p2), %v3804_v2  ;;  %v3371_v7 = vld [vmem:[%s4748_s1 + $0x18] sm:$0xff] (!%p188_p2)   ;;  %v3373_v9 = vld [vmem:[%s4748_s1 + $0x20] sm:$0xff] (!%p188_p2)   ;;  %v3375_v11 = vld [vmem:[%s4748_s1 + $0x28] sm:$0xff] (!%p188_p2)  }
   0x8   : > { %1515 = vmatprep.subr.bf16.mxu1 (!%p188_p2), %v3755_v1  ;;  %1748 = vmatprep.subr.bf16.mxu0 (!%p188_p2), %v3755_v1  ;;  %v3836_v8 = vld [vmem:[%s4748_s1 + $0x98] sm:$0xff] (!%p188_p2)   ;;  %v3847_v10 = vld [vmem:[%s4748_s1 + $0xa0] sm:$0xff] (!%p188_p2)   ;;  %v3860_v12 = vld [vmem:[%s4748_s1 + $0xa8] sm:$0xff] (!%p188_p2)  }
   0x9   : > { %v3377_v13 = vld [vmem:[%s4748_s1 + $0x30] sm:$0xff] (!%p188_p2)   ;;  %v3379_v15 = vld [vmem:[%s4748_s1 + $0x38] sm:$0xff] (!%p188_p2)   ;;  %v3381_v17 = vld [vmem:[%s4748_s1 + $0x40] sm:$0xff] (!%p188_p2)  }
   0xa   : > { %v3875_v14 = vld [vmem:[%s4748_s1 + $0xb0] sm:$0xff] (!%p188_p2)   ;;  %v3887_v16 = vld [vmem:[%s4748_s1 + $0xb8] sm:$0xff] (!%p188_p2)   ;;  %v3903_v18 = vld [vmem:[%s4748_s1 + $0xc0] sm:$0xff] (!%p188_p2)  }
   0xb   : > { %1516 = vmatpush1.bf16.msra.mxu1 (!%p188_p2), %v3367_v3  ;;  %1749 = vmatpush1.bf16.msra.mxu0 (!%p188_p2), %v3814_v4  ;;  %v3383_v20 = vld [vmem:[%s4748_s1 + $0x48] sm:$0xff] (!%p188_p2)   ;;  %v3385_v23 = vld [vmem:[%s4748_s1 + $0x50] sm:$0xff] (!%p188_p2)   ;;  %v3387_v25 = vld [vmem:[%s4748_s1 + $0x58] sm:$0xff] (!%p188_p2)  }
   0xc   : > { %1517 = vmatprep.subr.bf16.mxu1 (!%p188_p2), %v3755_v1  ;;  %1750 = vmatprep.subr.bf16.mxu0 (!%p188_p2), %v3755_v1  ;;  %v3916_v22 = vld [vmem:[%s4748_s1 + $0xc8] sm:$0xff] (!%p188_p2)   ;;  %v3927_v24 = vld [vmem:[%s4748_s1 + $0xd0] sm:$0xff] (!%p188_p2)   ;;  %v3938_v26 = vld [vmem:[%s4748_s1 + $0xd8] sm:$0xff] (!%p188_p2)  }
   0xd   : > { %s4754_s19 = smov (!%p213_p3, %s2877_s19), 3  ;;  %v3389_v27 = vld [vmem:[%s4748_s1 + $0x60] sm:$0xff]   ;;  %v3391_v29 = vld [vmem:[%s4748_s1 + $0x68] sm:$0xff]   ;;  %v3393_v31 = vld [vmem:[%s4748_s1 + $0x70] sm:$0xff]  }
   0xe   : > { %s3353_s27 = smul.u32 1200, %s4754_s19  ;;  %v3949_v28 = vld [vmem:[%s4748_s1 + $0xe0] sm:$0xff]   ;;  %v3960_v30 = vld [vmem:[%s4748_s1 + $0xe8] sm:$0xff]   ;;  %v3971_v32 = vld [vmem:[%s4748_s1 + $0xf0] sm:$0xff]   ;;  %s220_s6 = scalar_lea.vmem %s4752_s5, %s4754_s19 }
   0xf   : > { %1518 = vmatpush1.bf16.msra.mxu1 %v3369_v5  ;;  %1751 = vmatpush1.bf16.msra.mxu0 %v3825_v6  ;;  %v3395_v33 = vld [vmem:[%s4748_s1 + $0x78] sm:$0xff]   ;;  %v3403_v38 = vld [vmem:[%s4748_s1 + $0x100] sm:$0xff]   ;;  %v3410_v40 = vld [vmem:[%s4748_s1 + $0x108] sm:$0xff]  }
  0x10   : > { %1519 = vmatprep.subr.bf16.mxu1 %v3755_v1  ;;  %1752 = vmatprep.subr.bf16.mxu0 %v3755_v1  ;;  %s3896_s9 = scalar_lea.vmem %s4747_s0, %s3353_s27  ;;  %v3982_v34 = vld [vmem:[%s4748_s1 + $0xf8] sm:$0xff]   ;;  %v3411_v43 = vld [vmem:[%s4748_s1 + $0x110] sm:$0xff]   ;;  %v3425_v51 = vld [vmem:[%s4748_s1 + $0x120] sm:$0xff]  }
  0x11   : > { %v3399_v19 = vld [vmem:[%s3896_s9 + $0x4] ss:$24 sps:$4 sm:$0xff]   ;;  %v3397_v35 = vld [vmem:[%s3896_s9] ss:$24 sps:$4 sm:$0xff]   ;;  %v3404_v37 = vld [vmem:[%s3896_s9 + $0x34] ss:$24 sps:$4 sm:$0xff]  }
  0x12   : > { %v3402_v21 = vld [vmem:[%s3896_s9 + $0xc] ss:$24 sps:$4 sm:$0xff]   ;;  %1545 = vmatprep.mubr.bf16.mxu1 %v3399_v19  ;;  %v3400_v36 = vld [vmem:[%s3896_s9 + $0x8] ss:$24 sps:$4 sm:$0xff]   ;;  %v3406_v39 = vld [vmem:[%s3896_s9 + $0x3c] ss:$24 sps:$4 sm:$0xff]  }
  0x13   : > { %1520 = vmatpush1.bf16.msra.mxu1 %v3371_v7  ;;  %1753 = vmatpush1.bf16.msra.mxu0 %v3836_v8  ;;  %v3408_v41 = vld [vmem:[%s3896_s9 + $0x30] ss:$24 sps:$4 sm:$0xff]   ;;  %v3412_v44 = vld [vmem:[%s3896_s9 + $0x64] ss:$24 sps:$4 sm:$0xff]   ;;  %v3416_v47 = vld [vmem:[%s3896_s9 + $0x60] ss:$24 sps:$4 sm:$0xff]  }
  0x14   : > { %1521 = vmatprep.subr.bf16.mxu1 %v3755_v1  ;;  %1754 = vmatprep.subr.bf16.mxu0 %v3755_v1  ;;  %v3409_v42 = vld [vmem:[%s3896_s9 + $0x38] ss:$24 sps:$4 sm:$0xff]   ;;  %v3414_v45 = vld [vmem:[%s3896_s9 + $0x6c] ss:$24 sps:$4 sm:$0xff]   ;;  %v3417_v48 = vld [vmem:[%s3896_s9 + $0x68] ss:$24 sps:$4 sm:$0xff]  }
  0x15   : > { %1778 = vmatprep.mubr.bf16.mxu0 %v3402_v21  ;;  %v3418_v46 = vld [vmem:[%s4748_s1 + $0x118] sm:$0xff]   ;;  %v3419_v49 = vld [vmem:[%s3896_s9 + $0x94] ss:$24 sps:$4 sm:$0xff]   ;;  %v3423_v53 = vld [vmem:[%s3896_s9 + $0x90] ss:$24 sps:$4 sm:$0xff]  }
  0x16   : > { %v3421_v50 = vld [vmem:[%s3896_s9 + $0x9c] ss:$24 sps:$4 sm:$0xff]   ;;  %v3432_v52 = vld [vmem:[%s4748_s1 + $0x128] sm:$0xff]   ;;  %v3424_v54 = vld [vmem:[%s3896_s9 + $0x98] ss:$24 sps:$4 sm:$0xff]  }
  0x17   : > { %1522 = vmatpush1.bf16.msra.mxu1 %v3373_v9  ;;  %1755 = vmatpush1.bf16.msra.mxu0 %v3847_v10  ;;  %v3426_v55 = vld [vmem:[%s3896_s9 + $0xc4] ss:$24 sps:$4 sm:$0xff]   ;;  %v3439_v57 = vld [vmem:[%s4748_s1 + $0x130] sm:$0xff]   ;;  %v3430_v59 = vld [vmem:[%s3896_s9 + $0xc0] ss:$24 sps:$4 sm:$0xff]  }
  0x18   : > { %1523 = vmatprep.subr.bf16.mxu1 %v3755_v1  ;;  %1756 = vmatprep.subr.bf16.mxu0 %v3755_v1  ;;  %v3428_v56 = vld [vmem:[%s3896_s9 + $0xcc] ss:$24 sps:$4 sm:$0xff]   ;;  %v3444_v58 = vld [vmem:[%s4748_s1 + $0x138] sm:$0xff]   ;;  %v3431_v60 = vld [vmem:[%s3896_s9 + $0xc8] ss:$24 sps:$4 sm:$0xff]  }
  0x19   : > { %v3433_v61 = vld [vmem:[%s3896_s9 + $0xf4] ss:$24 sps:$4 sm:$0xff]   ;;  %v3447_v63 = vld [vmem:[%s4748_s1 + $0x140] sm:$0xff]   ;;  %v3438_v3 = vld [vmem:[%s3896_s9 + $0xf8] ss:$24 sps:$4 sm:$0xff]  }
  0x1a   : > { %v3435_v62 = vld [vmem:[%s3896_s9 + $0xfc] ss:$24 sps:$4 sm:$0xff]   ;;  %v3454_v0 = vld [vmem:[%s4748_s1 + $0x148] sm:$0xff]   ;;  %v3445_v7 = vld [vmem:[%s3896_s9 + $0x120] ss:$24 sps:$4 sm:$0xff]  }
  0x1b   : > { %1524 = vmatpush1.bf16.msra.mxu1 %v3375_v11  ;;  %1757 = vmatpush1.bf16.msra.mxu0 %v3860_v12  ;;  %v3442_v5 = vld [vmem:[%s3896_s9 + $0x12c] ss:$24 sps:$4 sm:$0xff]   ;;  %v3446_v9 = vld [vmem:[%s3896_s9 + $0x128] ss:$24 sps:$4 sm:$0xff]   ;;  %v3450_v11 = vld [vmem:[%s3896_s9 + $0x15c] ss:$24 sps:$4 sm:$0xff]  }
  0x1c   : > { %1525 = vmatprep.subr.bf16.mxu1 %v3755_v1  ;;  %1758 = vmatprep.subr.bf16.mxu0 %v3755_v1  ;;  %v3459_v19 = vld [vmem:[%s3896_s9 + $0x180] ss:$24 sps:$4 sm:$0xff]  }
  0x1d   : > { %v3460_v21 = vld [vmem:[%s3896_s9 + $0x188] ss:$24 sps:$4 sm:$0xff]  }
  0x1f   : > { %1526 = vmatpush1.bf16.msra.mxu1 %v3377_v13  ;;  %1759 = vmatpush1.bf16.msra.mxu0 %v3875_v14  ;;  %v3452_v13 = vld [vmem:[%s3896_s9 + $0x150] ss:$24 sps:$4 sm:$0xff]  }
  0x20   : > { %1527 = vmatprep.subr.bf16.mxu1 %v3755_v1  ;;  %1760 = vmatprep.subr.bf16.mxu0 %v3755_v1 }
  0x23   : > { %1528 = vmatpush1.bf16.msra.mxu1 %v3379_v15  ;;  %1761 = vmatpush1.bf16.msra.mxu0 %v3887_v16  ;;  %v3453_v15 = vld [vmem:[%s3896_s9 + $0x158] ss:$24 sps:$4 sm:$0xff]  }
  0x24   : > { %1529 = vmatprep.subr.bf16.mxu1 %v3755_v1  ;;  %1762 = vmatprep.subr.bf16.mxu0 %v3755_v1 }
  0x27   : > { %1530 = vmatpush1.bf16.msra.mxu1 %v3381_v17  ;;  %1763 = vmatpush1.bf16.msra.mxu0 %v3903_v18  ;;  %v3457_v17 = vld [vmem:[%s3896_s9 + $0x18c] ss:$24 sps:$4 sm:$0xff]  }
  0x28   : > { %1531 = vmatprep.subr.bf16.mxu1 %v3755_v1  ;;  %1764 = vmatprep.subr.bf16.mxu0 %v3755_v1 }
  0x2b   : > { %1532 = vmatpush1.bf16.msra.mxu1 %v3383_v20  ;;  %1765 = vmatpush1.bf16.msra.mxu0 %v3916_v22  ;;  %v3490_v20 = vld [vmem:[%s4748_s1 + $0x178] sm:$0xff]  }
  0x2c   : > { %1533 = vmatprep.subr.bf16.mxu1 %v3755_v1  ;;  %1766 = vmatprep.subr.bf16.mxu0 %v3755_v1 }
  0x2f   : > { %1534 = vmatpush1.bf16.msra.mxu1 %v3385_v23  ;;  %1767 = vmatpush1.bf16.msra.mxu0 %v3927_v24  ;;  %v3464_v23 = vld [vmem:[%s3896_s9 + $0x1bc] ss:$24 sps:$4 sm:$0xff]  }
  0x30   : > { %1535 = vmatprep.subr.bf16.mxu1 %v3755_v1  ;;  %1768 = vmatprep.subr.bf16.mxu0 %v3755_v1 }
  0x33   : > { %1536 = vmatpush1.bf16.msra.mxu1 %v3387_v25  ;;  %1769 = vmatpush1.bf16.msra.mxu0 %v3938_v26  ;;  %v3467_v25 = vld [vmem:[%s3896_s9 + $0x1b8] ss:$24 sps:$4 sm:$0xff]  }
  0x34   : > { %1537 = vmatprep.subr.bf16.mxu1 %v3755_v1  ;;  %1770 = vmatprep.subr.bf16.mxu0 %v3755_v1 }
  0x37   : > { %1538 = vmatpush1.bf16.msra.mxu1 %v3389_v27  ;;  %1771 = vmatpush1.bf16.msra.mxu0 %v3949_v28  ;;  %v3471_v27 = vld [vmem:[%s3896_s9 + $0x1ec] ss:$24 sps:$4 sm:$0xff]  }
  0x38   : > { %1539 = vmatprep.subr.bf16.mxu1 %v3755_v1  ;;  %1772 = vmatprep.subr.bf16.mxu0 %v3755_v1 }
  0x3b   : > { %1540 = vmatpush1.bf16.msra.mxu1 %v3391_v29  ;;  %1773 = vmatpush1.bf16.msra.mxu0 %v3960_v30  ;;  %v3477_v29 = vld [vmem:[%s3896_s9 + $0x214] ss:$24 sps:$4 sm:$0xff]  }
  0x3c   : > { %1541 = vmatprep.subr.bf16.mxu1 %v3755_v1  ;;  %1774 = vmatprep.subr.bf16.mxu0 %v3755_v1 }
  0x3f   : > { %1542 = vmatpush1.bf16.msra.mxu1 %v3393_v31  ;;  %1775 = vmatpush1.bf16.msra.mxu0 %v3971_v32  ;;  %v3481_v31 = vld [vmem:[%s3896_s9 + $0x210] ss:$24 sps:$4 sm:$0xff]  }
  0x40   : > { %1543 = vmatprep.subr.bf16.mxu1 %v3755_v1  ;;  %1776 = vmatprep.subr.bf16.mxu0 %v3755_v1 }
  0x43   : > { %1544 = vmatpush1.bf16.msra.mxu1 %v3395_v33  ;;  %1777 = vmatpush1.bf16.msra.mxu0 %v3982_v34  ;;  %v3484_v33 = vld [vmem:[%s3896_s9 + $0x244] ss:$24 sps:$4 sm:$0xff]  }
  0x44   : > { %3121 = vmatprep.subr.bf16.mxu1 %v3755_v1  ;;  %1979 = vmatprep.subr.bf16.mxu0 %v3755_v1 }
  0x46   : > { %1546 = vmatmul.mubr.bf16.vlgmr.msra.gmra.mrb[0].mxu1 %v3397_v35  ;;  %1779 = vmatmul.mubr.bf16.vlgmr.msra.gmra.mrb[0].mxu0 %v3400_v36  ;;  %v3488_v35 = vld [vmem:[%s3896_s9 + $0x240] ss:$24 sps:$4 sm:$0xff]  }
  0x47   : > { %1553 = vmatprep.mubr.bf16.mxu1 %v3404_v37  ;;  %1980 = vmatpush1.bf16.msra.mxu0 %v3403_v38  ;;  %v3489_v36 = vld [vmem:[%s3896_s9 + $0x248] ss:$24 sps:$4 sm:$0xff]   ;;  %v3491_v37 = vld [vmem:[%s3896_s9 + $0x274] ss:$24 sps:$4 sm:$0xff]  }
  0x48   : > { %3137 = vmatpush1.bf16.msra.mxu1 %v3804_v2  ;;  %1786 = vmatprep.mubr.bf16.mxu0 %v3406_v39  ;;  %v3437_v2 = vld [vmem:[%s3896_s9 + $0xf0] ss:$24 sps:$4 sm:$0xff]   ;;  %v3495_v38 = vld [vmem:[%s3896_s9 + $0x14] ss:$24 sps:$4 sm:$0xff]  }
  0x49   : > { %1981 = vmatprep.subr.bf16.mxu0 %v3755_v1  ;;  %3122 = vmatprep.subr.bf16.mxu1 %v3755_v1  ;;  %v3496_v39 = vld [vmem:[%s3896_s9 + $0x270] ss:$24 sps:$4 sm:$0xff]  }
  0x4b   : > { %1982 = vmatpush1.bf16.msra.mxu0 %v3410_v40  ;;  %v3493_v40 = vld [vmem:[%s3896_s9 + $0x10] ss:$24 sps:$4 sm:$0xff]  }
  0x4c   : > { %3138 = vmatpush1.bf16.msra.mxu1 %v3814_v4  ;;  %1983 = vmatprep.subr.bf16.mxu0 %v3755_v1  ;;  %v3440_v4 = vld [vmem:[%s3896_s9 + $0x124] ss:$24 sps:$4 sm:$0xff]  }
  0x4d   : > { %3123 = vmatprep.subr.bf16.mxu1 %v3755_v1 }
  0x4e   : > { %1554 = vmatmul.mubr.bf16.gmra.mrb[4].mxu1 %v3408_v41  ;;  %1787 = vmatmul.mubr.bf16.gmra.mrb[4].mxu0 %v3409_v42  ;;  %v3497_v41 = vld [vmem:[%s3896_s9 + $0x2a4] ss:$24 sps:$4 sm:$0xff]  }
  0x4f   : > { %1561 = vmatprep.mubr.bf16.mxu1 %v3412_v44  ;;  %1984 = vmatpush1.bf16.msra.mxu0 %v3411_v43  ;;  %v3499_v42 = vld [vmem:[%s3896_s9 + $0x44] ss:$24 sps:$4 sm:$0xff]   ;;  %v3501_v43 = vld [vmem:[%s3896_s9 + $0x2a0] ss:$24 sps:$4 sm:$0xff]  }
  0x50   : > { %1794 = vmatprep.mubr.bf16.mxu0 %v3414_v45  ;;  %1985 = vmatprep.subr.bf16.mxu0 %v3755_v1  ;;  %v3502_v44 = vld [vmem:[%s3896_s9 + $0x40] ss:$24 sps:$4 sm:$0xff]   ;;  %v3503_v45 = vld [vmem:[%s3896_s9 + $0x2d4] ss:$24 sps:$4 sm:$0xff]  }
  0x51   : > { %3139 = vmatpush1.bf16.msra.mxu1 %v3825_v6  ;;  %v3461_v6 = vld [vmem:[%s4748_s1 + $0x150] sm:$0xff]  }
  0x52   : > { %3124 = vmatprep.subr.bf16.mxu1 %v3755_v1 }
  0x53   : > { %1986 = vmatpush1.bf16.msra.mxu0 %v3418_v46  ;;  %v3505_v46 = vld [vmem:[%s3896_s9 + $0x74] ss:$24 sps:$4 sm:$0xff]  }
  0x54   : > { %1987 = vmatprep.subr.bf16.mxu0 %v3755_v1 }
  0x55   : > { %3140 = vmatpush1.bf16.msra.mxu1 %v3836_v8  ;;  %v3468_v8 = vld [vmem:[%s4748_s1 + $0x158] sm:$0xff]  }
  0x56   : > { %1562 = vmatmul.mubr.bf16.gmra.mrb[8].mxu1 %v3416_v47  ;;  %3125 = vmatprep.subr.bf16.mxu1 %v3755_v1  ;;  %v3507_v47 = vld [vmem:[%s3896_s9 + $0x2d0] ss:$24 sps:$4 sm:$0xff]  }
  0x57   : > { %1795 = vmatmul.mubr.bf16.gmra.mrb[8].mxu0 %v3417_v48  ;;  %1569 = vmatprep.mubr.bf16.mxu1 %v3419_v49  ;;  %v3508_v48 = vld [vmem:[%s3896_s9 + $0x70] ss:$24 sps:$4 sm:$0xff]   ;;  %v3509_v49 = vld [vmem:[%s3896_s9 + $0x304] ss:$24 sps:$4 sm:$0xff]  }
  0x58   : > { %1802 = vmatprep.mubr.bf16.mxu0 %v3421_v50  ;;  %1988 = vmatpush1.bf16.msra.mxu0 %v3425_v51  ;;  %v3511_v50 = vld [vmem:[%s3896_s9 + $0xa4] ss:$24 sps:$4 sm:$0xff]   ;;  %v3513_v51 = vld [vmem:[%s3896_s9 + $0x300] ss:$24 sps:$4 sm:$0xff]  }
  0x59   : > { %1989 = vmatprep.subr.bf16.mxu0 %v3755_v1  ;;  %3141 = vmatpush1.bf16.msra.mxu1 %v3847_v10  ;;  %v3448_v10 = vld [vmem:[%s3896_s9 + $0x154] ss:$24 sps:$4 sm:$0xff]  }
  0x5a   : > { %3126 = vmatprep.subr.bf16.mxu1 %v3755_v1 }
  0x5c   : > { %1990 = vmatpush1.bf16.msra.mxu0 %v3432_v52  ;;  %v3514_v52 = vld [vmem:[%s3896_s9 + $0xa0] ss:$24 sps:$4 sm:$0xff]  }
  0x5d   : > { %1991 = vmatprep.subr.bf16.mxu0 %v3755_v1  ;;  %3142 = vmatpush1.bf16.msra.mxu1 %v3860_v12  ;;  %v3473_v12 = vld [vmem:[%s4748_s1 + $0x160] sm:$0xff]  }
  0x5e   : > { %1570 = vmatmul.mubr.bf16.gmra.mrb[12].mxu1 %v3423_v53  ;;  %3127 = vmatprep.subr.bf16.mxu1 %v3755_v1  ;;  %v3515_v53 = vld [vmem:[%s3896_s9 + $0x334] ss:$24 sps:$4 sm:$0xff]  }
  0x5f   : > { %1803 = vmatmul.mubr.bf16.gmra.mrb[12].mxu0 %v3424_v54  ;;  %1577 = vmatprep.mubr.bf16.mxu1 %v3426_v55  ;;  %v3517_v54 = vld [vmem:[%s3896_s9 + $0xd4] ss:$24 sps:$4 sm:$0xff]   ;;  %v3519_v55 = vld [vmem:[%s3896_s9 + $0x330] ss:$24 sps:$4 sm:$0xff]  }
  0x60   : > { %1810 = vmatprep.mubr.bf16.mxu0 %v3428_v56  ;;  %1992 = vmatpush1.bf16.msra.mxu0 %v3439_v57  ;;  %v3520_v56 = vld [vmem:[%s3896_s9 + $0xd0] ss:$24 sps:$4 sm:$0xff]   ;;  %v3521_v57 = vld [vmem:[%s3896_s9 + $0x364] ss:$24 sps:$4 sm:$0xff]  }
  0x61   : > { %1993 = vmatprep.subr.bf16.mxu0 %v3755_v1  ;;  %3143 = vmatpush1.bf16.msra.mxu1 %v3875_v14  ;;  %v3476_v14 = vld [vmem:[%s4748_s1 + $0x168] sm:$0xff]  }
  0x62   : > { %3128 = vmatprep.subr.bf16.mxu1 %v3755_v1 }
  0x64   : > { %1994 = vmatpush1.bf16.msra.mxu0 %v3444_v58  ;;  %v3523_v58 = vld [vmem:[%s3896_s9 + $0x104] ss:$24 sps:$4 sm:$0xff]  }
  0x65   : > { %1995 = vmatprep.subr.bf16.mxu0 %v3755_v1  ;;  %3144 = vmatpush1.bf16.msra.mxu1 %v3887_v16  ;;  %v3455_v16 = vld [vmem:[%s3896_s9 + $0x184] ss:$24 sps:$4 sm:$0xff]  }
  0x66   : > { %1578 = vmatmul.mubr.bf16.gmra.mrb[16].mxu1 %v3430_v59  ;;  %3129 = vmatprep.subr.bf16.mxu1 %v3755_v1  ;;  %v3525_v59 = vld [vmem:[%s3896_s9 + $0x360] ss:$24 sps:$4 sm:$0xff]  }
  0x67   : > { %1811 = vmatmul.mubr.bf16.gmra.mrb[16].mxu0 %v3431_v60  ;;  %1585 = vmatprep.mubr.bf16.mxu1 %v3433_v61  ;;  %v3526_v60 = vld [vmem:[%s3896_s9 + $0x100] ss:$24 sps:$4 sm:$0xff]   ;;  %v3527_v61 = vld [vmem:[%s3896_s9 + $0x394] ss:$24 sps:$4 sm:$0xff]  }
  0x68   : > { %1818 = vmatprep.mubr.bf16.mxu0 %v3435_v62  ;;  %1996 = vmatpush1.bf16.msra.mxu0 %v3447_v63  ;;  %v3529_v62 = vld [vmem:[%s3896_s9 + $0x134] ss:$24 sps:$4 sm:$0xff]   ;;  %v3531_v63 = vld [vmem:[%s3896_s9 + $0x390] ss:$24 sps:$4 sm:$0xff]  }
  0x69   : > { %1997 = vmatprep.subr.bf16.mxu0 %v3755_v1  ;;  %3145 = vmatpush1.bf16.msra.mxu1 %v3903_v18  ;;  %v3483_v18 = vld [vmem:[%s4748_s1 + $0x170] sm:$0xff]  }
  0x6a   : > { %3130 = vmatprep.subr.bf16.mxu1 %v3755_v1 }
  0x6c   : > { %1998 = vmatpush1.bf16.msra.mxu0 %v3454_v0  ;;  %v3532_v0 = vld [vmem:[%s3896_s9 + $0x130] ss:$24 sps:$4 sm:$0xff]  }
  0x6d   : > { %1999 = vmatprep.subr.bf16.mxu0 %v3755_v1  ;;  %3146 = vmatpush1.bf16.msra.mxu1 %v3916_v22  ;;  %v3462_v22 = vld [vmem:[%s3896_s9 + $0x1b4] ss:$24 sps:$4 sm:$0xff]  }
  0x6e   : > { %1586 = vmatmul.mubr.bf16.gmra.mrb[20].mxu1 %v3437_v2  ;;  %3131 = vmatprep.subr.bf16.mxu1 %v3755_v1  ;;  %v3533_v2 = vld [vmem:[%s3896_s9 + $0x3c4] ss:$24 sps:$4 sm:$0xff]  }
  0x6f   : > { %1819 = vmatmul.mubr.bf16.gmra.mrb[20].mxu0 %v3438_v3  ;;  %1593 = vmatprep.mubr.bf16.mxu1 %v3440_v4  ;;  %v3535_v3 = vld [vmem:[%s3896_s9 + $0x164] ss:$24 sps:$4 sm:$0xff]   ;;  %v3537_v4 = vld [vmem:[%s3896_s9 + $0x3c0] ss:$24 sps:$4 sm:$0xff]  }
  0x70   : > { %1826 = vmatprep.mubr.bf16.mxu0 %v3442_v5  ;;  %2000 = vmatpush1.bf16.msra.mxu0 %v3461_v6  ;;  %v3538_v5 = vld [vmem:[%s3896_s9 + $0x160] ss:$24 sps:$4 sm:$0xff]   ;;  %v3539_v6 = vld [vmem:[%s3896_s9 + $0x3f4] ss:$24 sps:$4 sm:$0xff]  }
  0x71   : > { %2001 = vmatprep.subr.bf16.mxu0 %v3755_v1  ;;  %3147 = vmatpush1.bf16.msra.mxu1 %v3927_v24  ;;  %v3466_v24 = vld [vmem:[%s3896_s9 + $0x1b0] ss:$24 sps:$4 sm:$0xff]  }
  0x72   : > { %3132 = vmatprep.subr.bf16.mxu1 %v3755_v1 }
  0x74   : > { %2002 = vmatpush1.bf16.msra.mxu0 %v3468_v8  ;;  %v3543_v8 = vld [vmem:[%s3896_s9 + $0x3f0] ss:$24 sps:$4 sm:$0xff]  }
  0x75   : > { %2003 = vmatprep.subr.bf16.mxu0 %v3755_v1  ;;  %3148 = vmatpush1.bf16.msra.mxu1 %v3938_v26  ;;  %v3469_v26 = vld [vmem:[%s3896_s9 + $0x1e4] ss:$24 sps:$4 sm:$0xff]  }
  0x76   : > { %1594 = vmatmul.mubr.bf16.gmra.mrb[24].mxu1 %v3445_v7  ;;  %3133 = vmatprep.subr.bf16.mxu1 %v3755_v1  ;;  %v3541_v7 = vld [vmem:[%s3896_s9 + $0x194] ss:$24 sps:$4 sm:$0xff]  }
  0x77   : > { %1827 = vmatmul.mubr.bf16.gmra.mrb[24].mxu0 %v3446_v9  ;;  %1601 = vmatprep.mubr.bf16.mxu1 %v3448_v10  ;;  %v3544_v9 = vld [vmem:[%s3896_s9 + $0x190] ss:$24 sps:$4 sm:$0xff]   ;;  %v3545_v10 = vld [vmem:[%s3896_s9 + $0x424] ss:$24 sps:$4 sm:$0xff]  }
  0x78   : > { %1834 = vmatprep.mubr.bf16.mxu0 %v3450_v11  ;;  %2004 = vmatpush1.bf16.msra.mxu0 %v3473_v12  ;;  %v3547_v11 = vld [vmem:[%s3896_s9 + $0x1c4] ss:$24 sps:$4 sm:$0xff]   ;;  %v3549_v12 = vld [vmem:[%s3896_s9 + $0x420] ss:$24 sps:$4 sm:$0xff]  }
  0x79   : > { %2005 = vmatprep.subr.bf16.mxu0 %v3755_v1  ;;  %3149 = vmatpush1.bf16.msra.mxu1 %v3949_v28  ;;  %v3475_v28 = vld [vmem:[%s3896_s9 + $0x1e8] ss:$24 sps:$4 sm:$0xff]  }
  0x7a   : > { %3134 = vmatprep.subr.bf16.mxu1 %v3755_v1 }
  0x7c   : > { %2006 = vmatpush1.bf16.msra.mxu0 %v3476_v14  ;;  %v3551_v14 = vld [vmem:[%s3896_s9 + $0x454] ss:$24 sps:$4 sm:$0xff]  }
  0x7d   : > { %2007 = vmatprep.subr.bf16.mxu0 %v3755_v1  ;;  %3150 = vmatpush1.bf16.msra.mxu1 %v3960_v30  ;;  %v3479_v30 = vld [vmem:[%s3896_s9 + $0x21c] ss:$24 sps:$4 sm:$0xff]  }
  0x7e   : > { %1602 = vmatmul.mubr.bf16.gmra.mrb[28].mxu1 %v3452_v13  ;;  %3135 = vmatprep.subr.bf16.mxu1 %v3755_v1  ;;  %v3550_v13 = vld [vmem:[%s3896_s9 + $0x1c0] ss:$24 sps:$4 sm:$0xff]  }
  0x7f   : > { %1835 = vmatmul.mubr.bf16.gmra.mrb[28].mxu0 %v3453_v15  ;;  %1609 = vmatprep.mubr.bf16.mxu1 %v3455_v16  ;;  %v3553_v15 = vld [vmem:[%s3896_s9 + $0x1f4] ss:$24 sps:$4 sm:$0xff]   ;;  %v3555_v16 = vld [vmem:[%s3896_s9 + $0x450] ss:$24 sps:$4 sm:$0xff]  }
  0x80   : > { %1842 = vmatprep.mubr.bf16.mxu0 %v3457_v17  ;;  %2008 = vmatpush1.bf16.msra.mxu0 %v3483_v18  ;;  %v3556_v17 = vld [vmem:[%s3896_s9 + $0x1f0] ss:$24 sps:$4 sm:$0xff]   ;;  %v3557_v18 = vld [vmem:[%s3896_s9 + $0x484] ss:$24 sps:$4 sm:$0xff]  }
  0x81   : > { %2009 = vmatprep.subr.bf16.mxu0 %v3755_v1  ;;  %3151 = vmatpush1.bf16.msra.mxu1 %v3971_v32  ;;  %v3482_v32 = vld [vmem:[%s3896_s9 + $0x218] ss:$24 sps:$4 sm:$0xff]  }
  0x82   : > { %3136 = vmatprep.subr.bf16.mxu1 %v3755_v1  ;;  %v3474_v1 = vld [vmem:[%s3896_s9 + $0x1e0] ss:$24 sps:$4 sm:$0xff]  }
  0x84   : > { %2010 = vmatpush1.bf16.msra.mxu0 %v3490_v20  ;;  %v3561_v20 = vld [vmem:[%s3896_s9 + $0x480] ss:$24 sps:$4 sm:$0xff]  }
  0x85   : > { %3152 = vmatpush1.bf16.msra.mxu1 %v3982_v34  ;;  %v3486_v34 = vld [vmem:[%s3896_s9 + $0x24c] ss:$24 sps:$4 sm:$0xff]  }
  0x86   : > { %1610 = vmatmul.mubr.bf16.gmra.mrb[32].mxu1 %v3459_v19  ;;  %v3559_v19 = vld [vmem:[%s3896_s9 + $0x224] ss:$24 sps:$4 sm:$0xff]  }
  0x87   : > { %1843 = vmatmul.mubr.bf16.gmra.mrb[32].mxu0 %v3460_v21  ;;  %1617 = vmatprep.mubr.bf16.mxu1 %v3462_v22  ;;  %v3562_v21 = vld [vmem:[%s3896_s9 + $0x220] ss:$24 sps:$4 sm:$0xff]   ;;  %v3565_v22 = vld [vmem:[%s3896_s9 + $0x27c] ss:$24 sps:$4 sm:$0xff]  }
  0x88   : > { %1850 = vmatprep.mubr.bf16.mxu0 %v3464_v23  ;;  %v3566_v23 = vld [vmem:[%s3896_s9 + $0x254] ss:$24 sps:$4 sm:$0xff]  }
  0x8e   : > { %1618 = vmatmul.mubr.bf16.gmra.mrb[36].mxu1 %v3466_v24  ;;  %v3563_v24 = vld [vmem:[%s3896_s9 + $0x278] ss:$24 sps:$4 sm:$0xff]  }
  0x8f   : > { %1851 = vmatmul.mubr.bf16.gmra.mrb[36].mxu0 %v3467_v25  ;;  %1625 = vmatprep.mubr.bf16.mxu1 %v3469_v26  ;;  %v3568_v25 = vld [vmem:[%s3896_s9 + $0x250] ss:$24 sps:$4 sm:$0xff]   ;;  %v3569_v26 = vld [vmem:[%s3896_s9 + $0x2ac] ss:$24 sps:$4 sm:$0xff]  }
  0x90   : > { %1858 = vmatprep.mubr.bf16.mxu0 %v3471_v27  ;;  %v3571_v27 = vld [vmem:[%s3896_s9 + $0x284] ss:$24 sps:$4 sm:$0xff]  }
  0x96   : > { %1626 = vmatmul.mubr.bf16.gmra.mrb[40].mxu1 %v3474_v1  ;;  %v3573_v1 = vld [vmem:[%s3896_s9 + $0x2a8] ss:$24 sps:$4 sm:$0xff]  }
  0x97   : > { %1859 = vmatmul.mubr.bf16.gmra.mrb[40].mxu0 %v3475_v28  ;;  %1633 = vmatprep.mubr.bf16.mxu1 %v3477_v29  ;;  %v3574_v28 = vld [vmem:[%s3896_s9 + $0x280] ss:$24 sps:$4 sm:$0xff]   ;;  %v3575_v29 = vld [vmem:[%s3896_s9 + $0x2dc] ss:$24 sps:$4 sm:$0xff]  }
  0x98   : > { %1866 = vmatprep.mubr.bf16.mxu0 %v3479_v30  ;;  %v3577_v30 = vld [vmem:[%s3896_s9 + $0x2b4] ss:$24 sps:$4 sm:$0xff]  }
  0x9e   : > { %1634 = vmatmul.mubr.bf16.gmra.mrb[44].mxu1 %v3481_v31 }
  0x9f   : > { %1867 = vmatmul.mubr.bf16.gmra.mrb[44].mxu0 %v3482_v32  ;;  %1641 = vmatprep.mubr.bf16.mxu1 %v3484_v33  ;;  %v3579_v33 = vld [vmem:[%s3896_s9 + $0x2d8] ss:$24 sps:$4 sm:$0xff]  }
  0xa0   : > { %1874 = vmatprep.mubr.bf16.mxu0 %v3486_v34  ;;  %v3580_v34 = vld [vmem:[%s3896_s9 + $0x2b0] ss:$24 sps:$4 sm:$0xff]  }
  0xa6   : > { %1642 = vmatmul.mubr.bf16.gmra.mrb[48].mxu1 %v3488_v35 }
  0xa7   : > { %1875 = vmatmul.mubr.bf16.gmra.mrb[48].mxu0 %v3489_v36  ;;  %1649 = vmatprep.mubr.bf16.mxu1 %v3491_v37  ;;  %v3581_v36 = vld [vmem:[%s3896_s9 + $0x30c] ss:$24 sps:$4 sm:$0xff]  }
  0xa8   : > { %2011 = vmatprep.mubr.bf16.mxu0 %v3495_v38  ;;  %v3583_v38 = vld [vmem:[%s3896_s9 + $0x2e4] ss:$24 sps:$4 sm:$0xff]  }
  0xae   : > { %1650 = vmatmul.mubr.bf16.gmra.mrb[52].mxu1 %v3496_v39 }
  0xaf   : > { %2012 = vmatmul.mubr.bf16.vlgmr.msra.gmra.mrb[0].mxu0 %v3493_v40  ;;  %1657 = vmatprep.mubr.bf16.mxu1 %v3497_v41  ;;  %v3585_v41 = vld [vmem:[%s3896_s9 + $0x308] ss:$24 sps:$4 sm:$0xff]  }
  0xb0   : > { %2019 = vmatprep.mubr.bf16.mxu0 %v3499_v42  ;;  %v3586_v42 = vld [vmem:[%s3896_s9 + $0x2e0] ss:$24 sps:$4 sm:$0xff]  }
  0xb6   : > { %1658 = vmatmul.mubr.bf16.gmra.mrb[56].mxu1 %v3501_v43 }
  0xb7   : > { %2020 = vmatmul.mubr.bf16.gmra.mrb[4].mxu0 %v3502_v44  ;;  %1665 = vmatprep.mubr.bf16.mxu1 %v3503_v45  ;;  %v3587_v44 = vld [vmem:[%s3896_s9 + $0x33c] ss:$24 sps:$4 sm:$0xff]  }
  0xb8   : > { %2027 = vmatprep.mubr.bf16.mxu0 %v3505_v46  ;;  %v3589_v46 = vld [vmem:[%s3896_s9 + $0x314] ss:$24 sps:$4 sm:$0xff]  }
  0xbe   : > { %1666 = vmatmul.mubr.bf16.gmra.mrb[60].mxu1 %v3507_v47 }
  0xbf   : > { %2028 = vmatmul.mubr.bf16.gmra.mrb[8].mxu0 %v3508_v48  ;;  %1673 = vmatprep.mubr.bf16.mxu1 %v3509_v49  ;;  %v3591_v49 = vld [vmem:[%s3896_s9 + $0x338] ss:$24 sps:$4 sm:$0xff]  }
  0xc0   : > { %2035 = vmatprep.mubr.bf16.mxu0 %v3511_v50  ;;  %v3592_v50 = vld [vmem:[%s3896_s9 + $0x310] ss:$24 sps:$4 sm:$0xff]  }
  0xc6   : > { %1674 = vmatmul.mubr.bf16.gmra.mrb[64].mxu1 %v3513_v51 }
  0xc7   : > { %2036 = vmatmul.mubr.bf16.gmra.mrb[12].mxu0 %v3514_v52  ;;  %1681 = vmatprep.mubr.bf16.mxu1 %v3515_v53  ;;  %v3593_v52 = vld [vmem:[%s3896_s9 + $0x36c] ss:$24 sps:$4 sm:$0xff]  }
  0xc8   : > { %2043 = vmatprep.mubr.bf16.mxu0 %v3517_v54  ;;  %v3595_v54 = vld [vmem:[%s3896_s9 + $0x344] ss:$24 sps:$4 sm:$0xff]  }
  0xce   : > { %1682 = vmatmul.mubr.bf16.gmra.mrb[68].mxu1 %v3519_v55 }
  0xcf   : > { %2044 = vmatmul.mubr.bf16.gmra.mrb[16].mxu0 %v3520_v56  ;;  %1689 = vmatprep.mubr.bf16.mxu1 %v3521_v57  ;;  %v3597_v57 = vld [vmem:[%s3896_s9 + $0x368] ss:$24 sps:$4 sm:$0xff]  }
  0xd0   : > { %2051 = vmatprep.mubr.bf16.mxu0 %v3523_v58  ;;  %v3598_v58 = vld [vmem:[%s3896_s9 + $0x340] ss:$24 sps:$4 sm:$0xff]  }
  0xd6   : > { %1690 = vmatmul.mubr.bf16.gmra.mrb[72].mxu1 %v3525_v59 }
  0xd7   : > { %2052 = vmatmul.mubr.bf16.gmra.mrb[20].mxu0 %v3526_v60  ;;  %1697 = vmatprep.mubr.bf16.mxu1 %v3527_v61  ;;  %v3599_v60 = vld [vmem:[%s3896_s9 + $0x39c] ss:$24 sps:$4 sm:$0xff]  }
  0xd8   : > { %2059 = vmatprep.mubr.bf16.mxu0 %v3529_v62  ;;  %v3601_v62 = vld [vmem:[%s3896_s9 + $0x374] ss:$24 sps:$4 sm:$0xff]  }
  0xde   : > { %1698 = vmatmul.mubr.bf16.gmra.mrb[76].mxu1 %v3531_v63 }
  0xdf   : > { %2060 = vmatmul.mubr.bf16.gmra.mrb[24].mxu0 %v3532_v0  ;;  %1705 = vmatprep.mubr.bf16.mxu1 %v3533_v2  ;;  %v3603_v2 = vld [vmem:[%s3896_s9 + $0x398] ss:$24 sps:$4 sm:$0xff]  }
  0xe0   : > { %2067 = vmatprep.mubr.bf16.mxu0 %v3535_v3  ;;  %v3604_v3 = vld [vmem:[%s3896_s9 + $0x370] ss:$24 sps:$4 sm:$0xff]  }
  0xe6   : > { %1706 = vmatmul.mubr.bf16.gmra.mrb[80].mxu1 %v3537_v4 }
  0xe7   : > { %2068 = vmatmul.mubr.bf16.gmra.mrb[28].mxu0 %v3538_v5  ;;  %1713 = vmatprep.mubr.bf16.mxu1 %v3539_v6  ;;  %v3605_v5 = vld [vmem:[%s3896_s9 + $0x3cc] ss:$24 sps:$4 sm:$0xff]  }
  0xe8   : > { %2075 = vmatprep.mubr.bf16.mxu0 %v3541_v7  ;;  %v3607_v7 = vld [vmem:[%s3896_s9 + $0x3a4] ss:$24 sps:$4 sm:$0xff]  }
  0xee   : > { %1714 = vmatmul.mubr.bf16.gmra.mrb[84].mxu1 %v3543_v8 }
  0xef   : > { %2076 = vmatmul.mubr.bf16.gmra.mrb[32].mxu0 %v3544_v9  ;;  %1721 = vmatprep.mubr.bf16.mxu1 %v3545_v10  ;;  %v3609_v10 = vld [vmem:[%s3896_s9 + $0x3c8] ss:$24 sps:$4 sm:$0xff]  }
  0xf0   : > { %2083 = vmatprep.mubr.bf16.mxu0 %v3547_v11  ;;  %v3610_v11 = vld [vmem:[%s3896_s9 + $0x3a0] ss:$24 sps:$4 sm:$0xff]  }
  0xf6   : > { %1722 = vmatmul.mubr.bf16.gmra.mrb[88].mxu1 %v3549_v12 }
  0xf7   : > { %2084 = vmatmul.mubr.bf16.gmra.mrb[36].mxu0 %v3550_v13  ;;  %1729 = vmatprep.mubr.bf16.mxu1 %v3551_v14  ;;  %v3611_v13 = vld [vmem:[%s3896_s9 + $0x3fc] ss:$24 sps:$4 sm:$0xff]  }
  0xf8   : > { %2091 = vmatprep.mubr.bf16.mxu0 %v3553_v15  ;;  %v3613_v15 = vld [vmem:[%s3896_s9 + $0x3d4] ss:$24 sps:$4 sm:$0xff]  }
  0xfe   : > { %1730 = vmatmul.mubr.bf16.gmra.mrb[92].mxu1 %v3555_v16 }
  0xff   : > { %2092 = vmatmul.mubr.bf16.gmra.mrb[40].mxu0 %v3556_v17  ;;  %1737 = vmatprep.mubr.bf16.mxu1 %v3557_v18  ;;  %v3615_v18 = vld [vmem:[%s3896_s9 + $0x3f8] ss:$24 sps:$4 sm:$0xff]  }
 0x100   : > { %2099 = vmatprep.mubr.bf16.mxu0 %v3559_v19  ;;  %v3616_v19 = vld [vmem:[%s3896_s9 + $0x3d0] ss:$24 sps:$4 sm:$0xff]  }
 0x106   : > { %1738 = vmatmul.mubr.bf16.gmra.mrb[96].mxu1 %v3561_v20 }
 0x107   : > { %2100 = vmatmul.mubr.bf16.gmra.mrb[44].mxu0 %v3562_v21  ;;  %1882 = vmatprep.mubr.bf16.mxu1 %v3565_v22  ;;  %v3617_v21 = vld [vmem:[%s3896_s9 + $0x42c] ss:$24 sps:$4 sm:$0xff]  }
 0x108   : > { %2107 = vmatprep.mubr.bf16.mxu0 %v3566_v23  ;;  %v3619_v23 = vld [vmem:[%s3896_s9 + $0x404] ss:$24 sps:$4 sm:$0xff]  }
 0x10e   : > { %1883 = vmatmul.mubr.bf16.vlgmr.msra.gmra.mrb[52].mxu1 %v3563_v24 }
 0x10f   : > { %2108 = vmatmul.mubr.bf16.gmra.mrb[48].mxu0 %v3568_v25  ;;  %1890 = vmatprep.mubr.bf16.mxu1 %v3569_v26  ;;  %v3621_v26 = vld [vmem:[%s3896_s9 + $0x428] ss:$24 sps:$4 sm:$0xff]  }
 0x110   : > { %2115 = vmatprep.mubr.bf16.mxu0 %v3571_v27  ;;  %v3622_v27 = vld [vmem:[%s3896_s9 + $0x400] ss:$24 sps:$4 sm:$0xff]  }
 0x116   : > { %1891 = vmatmul.mubr.bf16.gmra.mrb[56].mxu1 %v3573_v1 }
 0x117   : > { %2116 = vmatmul.mubr.bf16.gmra.mrb[52].mxu0 %v3574_v28  ;;  %1898 = vmatprep.mubr.bf16.mxu1 %v3575_v29  ;;  %v3623_v28 = vld [vmem:[%s3896_s9 + $0x45c] ss:$24 sps:$4 sm:$0xff]  }
 0x118   : > { %2123 = vmatprep.mubr.bf16.mxu0 %v3577_v30  ;;  %v3625_v30 = vld [vmem:[%s3896_s9 + $0x434] ss:$24 sps:$4 sm:$0xff]  }
 0x119   : > { %v4190_v31 = vpop.f32.mrb[0].mxu1 }
 0x11a   : > { %v1549_v32 = vpop.f32.mrb[1].mxu1 }
 0x11b   : > { %v4194_v35 = vpop.f32.mrb[2].mxu1 }
 0x11c   : > { %v1552_v37 = vpop.f32.mrb[3].mxu1 }
 0x11e   : > { %1899 = vmatmul.mubr.bf16.gmra.mrb[60].mxu1 %v3579_v33 }
 0x11f   : > { %2124 = vmatmul.mubr.bf16.gmra.mrb[56].mxu0 %v3580_v34  ;;  %1906 = vmatprep.mubr.bf16.mxu1 %v3581_v36  ;;  %v3627_v34 = vld [vmem:[%s3896_s9 + $0x458] ss:$24 sps:$4 sm:$0xff]  }
 0x120   : > { %2131 = vmatprep.mubr.bf16.mxu0 %v3583_v38  ;;  %v3628_v36 = vld [vmem:[%s3896_s9 + $0x430] ss:$24 sps:$4 sm:$0xff]   ;;  %v3629_v38 = vld [vmem:[%s3896_s9 + $0x48c] ss:$24 sps:$4 sm:$0xff]  }
 0x121   : > { %v4198_v39 = vpop.f32.mrb[4].mxu1 }
 0x122   : > { %v1557_v40 = vpop.f32.mrb[5].mxu1 }
 0x123   : > { %v4202_v43 = vpop.f32.mrb[6].mxu1 }
 0x124   : > { %v1560_v45 = vpop.f32.mrb[7].mxu1 }
 0x125   : > { %v3633_v45 = vld [vmem:[%s3896_s9 + $0x488] ss:$24 sps:$4 sm:$0xff]  }
 0x126   : > { %1907 = vmatmul.mubr.bf16.gmra.mrb[64].mxu1 %v3585_v41  ;;  %v3631_v41 = vld [vmem:[%s3896_s9 + $0x464] ss:$24 sps:$4 sm:$0xff]  }
 0x127   : > { %2132 = vmatmul.mubr.bf16.gmra.mrb[60].mxu0 %v3586_v42  ;;  %1914 = vmatprep.mubr.bf16.mxu1 %v3587_v44 }
 0x128   : > { %2139 = vmatprep.mubr.bf16.mxu0 %v3589_v46  ;;  %v3634_v46 = vld [vmem:[%s3896_s9 + $0x460] ss:$24 sps:$4 sm:$0xff]  }
 0x129   : > { %v4206_v47 = vpop.f32.mrb[8].mxu1 }
 0x12a   : > { %v1565_v48 = vpop.f32.mrb[9].mxu1 }
 0x12b   : > { %v4210_v51 = vpop.f32.mrb[10].mxu1 }
 0x12c   : > { %v1568_v53 = vpop.f32.mrb[11].mxu1 }
 0x12e   : > { %1915 = vmatmul.mubr.bf16.gmra.mrb[68].mxu1 %v3591_v49 }
 0x12f   : > { %2140 = vmatmul.mubr.bf16.gmra.mrb[64].mxu0 %v3592_v50  ;;  %1922 = vmatprep.mubr.bf16.mxu1 %v3593_v52  ;;  %v3635_v50 = vld [vmem:[%s3896_s9 + $0x494] ss:$24 sps:$4 sm:$0xff]  }
 0x130   : > { %2147 = vmatprep.mubr.bf16.mxu0 %v3595_v54  ;;  %v3637_v54 = vld [vmem:[%s3896_s9 + $0x490] ss:$24 sps:$4 sm:$0xff]  }
 0x131   : > { %v4214_v55 = vpop.f32.mrb[12].mxu1 }
 0x132   : > { %v1573_v56 = vpop.f32.mrb[13].mxu1 }
 0x133   : > { %v4218_v59 = vpop.f32.mrb[14].mxu1 }
 0x134   : > { %v1576_v61 = vpop.f32.mrb[15].mxu1 }
 0x136   : > { %1923 = vmatmul.mubr.bf16.gmra.mrb[72].mxu1 %v3597_v57 }
 0x137   : > { %2148 = vmatmul.mubr.bf16.gmra.mrb[68].mxu0 %v3598_v58  ;;  %1930 = vmatprep.mubr.bf16.mxu1 %v3599_v60 }
 0x138   : > { %2155 = vmatprep.mubr.bf16.mxu0 %v3601_v62 }
 0x139   : > { %v4222_v63 = vpop.f32.mrb[16].mxu1 }
 0x13a   : > { %v1581_v0 = vpop.f32.mrb[17].mxu1 }
 0x13b   : > { %v4226_v4 = vpop.f32.mrb[18].mxu1 }
 0x13c   : > { %v1584_v6 = vpop.f32.mrb[19].mxu1 }
 0x13d   : > { %v4285_v6 = vld [vmem:[%s4749_s2] ss:$0 sm:$0xff] }
 0x13e   : > { %1931 = vmatmul.mubr.bf16.gmra.mrb[76].mxu1 %v3603_v2 }
 0x13f   : > { %2156 = vmatmul.mubr.bf16.gmra.mrb[72].mxu0 %v3604_v3  ;;  %1938 = vmatprep.mubr.bf16.mxu1 %v3605_v5 }
 0x140   : > { %2163 = vmatprep.mubr.bf16.mxu0 %v3607_v7  ;;  %v1548_v7 = vadd.f32 %v4285_v6, %v4190_v31  ;;  %v1556_v31 = vadd.f32 %v4285_v6, %v4198_v39 }
 0x141   : > { %v4230_v8 = vpop.f32.mrb[20].mxu1 }
 0x142   : > { %v1589_v9 = vpop.f32.mrb[21].mxu1 }
 0x143   : > { %v4234_v12 = vpop.f32.mrb[22].mxu1 }
 0x144   : > { %v1592_v14 = vpop.f32.mrb[23].mxu1 }
 0x146   : > { %1939 = vmatmul.mubr.bf16.gmra.mrb[80].mxu1 %v3609_v10  ;;  %v1551_v10 = vadd.f32 %v4285_v6, %v4194_v35 }
 0x147   : > { %2164 = vmatmul.mubr.bf16.gmra.mrb[76].mxu0 %v3610_v11  ;;  %1946 = vmatprep.mubr.bf16.mxu1 %v3611_v13 }
 0x148   : > { %2171 = vmatprep.mubr.bf16.mxu0 %v3613_v15 }
 0x149   : > { %v4238_v16 = vpop.f32.mrb[24].mxu1 }
 0x14a   : > { %v1597_v17 = vpop.f32.mrb[25].mxu1 }
 0x14b   : > { %v4242_v20 = vpop.f32.mrb[26].mxu1 }
 0x14c   : > { %v1600_v22 = vpop.f32.mrb[27].mxu1 }
 0x14e   : > { %1947 = vmatmul.mubr.bf16.gmra.mrb[84].mxu1 %v3615_v18 }
 0x14f   : > { %2172 = vmatmul.mubr.bf16.gmra.mrb[80].mxu0 %v3616_v19  ;;  %1954 = vmatprep.mubr.bf16.mxu1 %v3617_v21 }
 0x150   : > { %2179 = vmatprep.mubr.bf16.mxu0 %v3619_v23 }
 0x151   : > { %v4246_v24 = vpop.f32.mrb[28].mxu1 }
 0x152   : > { %v1605_v25 = vpop.f32.mrb[29].mxu1 }
 0x153   : > { %v4250_v1 = vpop.f32.mrb[30].mxu1  ;;  %v1559_v25 = vadd.f32 %v4285_v6, %v4202_v43 }
 0x154   : > { %v1608_v29 = vpop.f32.mrb[31].mxu1 }
 0x156   : > { %1955 = vmatmul.mubr.bf16.gmra.mrb[88].mxu1 %v3621_v26 }
 0x157   : > { %2180 = vmatmul.mubr.bf16.gmra.mrb[84].mxu0 %v3622_v27  ;;  %1962 = vmatprep.mubr.bf16.mxu1 %v3623_v28 }
 0x158   : > { %2187 = vmatprep.mubr.bf16.mxu0 %v3625_v30 }
 0x159   : > { %v4254_v32 = vpop.f32.mrb[32].mxu1 }
 0x15a   : > { %v1613_v33 = vpop.f32.mrb[33].mxu1 }
 0x15b   : > { %v4258_v37 = vpop.f32.mrb[34].mxu1 }
 0x15c   : > { %v1616_v40 = vpop.f32.mrb[35].mxu1 }
 0x15e   : > { %1963 = vmatmul.mubr.bf16.gmra.mrb[92].mxu1 %v3627_v34 }
 0x15f   : > { %2188 = vmatmul.mubr.bf16.gmra.mrb[88].mxu0 %v3628_v36  ;;  %1970 = vmatprep.mubr.bf16.mxu1 %v3629_v38 }
 0x160   : > { %2195 = vmatprep.mubr.bf16.mxu0 %v3631_v41 }
 0x161   : > { %v4262_v42 = vpop.f32.mrb[36].mxu1 }
 0x162   : > { %v1621_v44 = vpop.f32.mrb[37].mxu1 }
 0x163   : > { %v4266_v48 = vpop.f32.mrb[38].mxu1  ;;  %v1564_v44 = vadd.f32 %v4285_v6, %v4206_v47 }
 0x164   : > { %v1624_v49 = vpop.f32.mrb[39].mxu1 }
 0x166   : > { %1971 = vmatmul.mubr.bf16.gmra.mrb[96].mxu1 %v3633_v45 }
 0x167   : > { %2196 = vmatmul.mubr.bf16.gmra.mrb[92].mxu0 %v3634_v46 }
 0x168   : > { %2203 = vmatprep.mubr.bf16.mxu0 %v3635_v50  ;;  %v1567_v50 = vadd.f32 %v4285_v6, %v4210_v51 }
 0x169   : > { %v4269_v52 = vpop.f32.mrb[40].mxu1 }
 0x16a   : > { %v1629_v53 = vpop.f32.mrb[41].mxu1 }
 0x16b   : > { %v4272_v56 = vpop.f32.mrb[42].mxu1 }
 0x16c   : > { %v1632_v57 = vpop.f32.mrb[43].mxu1 }
 0x16f   : > { %2204 = vmatmul.mubr.bf16.gmra.mrb[96].mxu0 %v3637_v54 }
 0x171   : > { %v4274_v58 = vpop.f32.mrb[44].mxu1 }
 0x172   : > { %v1637_v60 = vpop.f32.mrb[45].mxu1 }
 0x173   : > { %v4276_v61 = vpop.f32.mrb[46].mxu1 }
 0x174   : > { %v1640_v62 = vpop.f32.mrb[47].mxu1 }
 0x179   : > { %v4278_v0 = vpop.f32.mrb[48].mxu1 }
 0x17a   : > { %v1645_v2 = vpop.f32.mrb[49].mxu1 }
 0x17b   : > { %v4280_v3 = vpop.f32.mrb[50].mxu1 }
 0x17c   : > { %v1648_v5 = vpop.f32.mrb[51].mxu1 }
 0x182   : > { %v2013_v9 = vpop.f32.mrb[0].mxu0 }
 0x183   : > { %v4291_v11 = vadd.f32 %v2013_v9, %v1548_v7  ;;  %v2015_v13 = vpop.f32.mrb[1].mxu0 }
 0x184   : > { %v2016_v14 = vpop.f32.mrb[2].mxu0 }
 0x185   : > { %v2212_v15 = vmul.f32 %v4291_v11, %v4291_v11  ;;  %v4295_v17 = vadd.f32 %v2016_v14, %v1551_v10  ;;  %v2018_v18 = vpop.f32.mrb[3].mxu0 }
 0x187   : > { %v2262_v19 = vmul.f32 %v4291_v11, %v2212_v15  ;;  %v2213_v21 = vmul.f32 %v4295_v17, %v4295_v17  ;;  %v1572_v15 = vadd.f32 %v4285_v6, %v4214_v55 }
 0x189   : > { %v2312_v22 = vmul.f32 0.044715, %v2262_v19  ;;  %v2263_v35 = vmul.f32 %v4295_v17, %v2213_v21 }
 0x18a   : > { %v2021_v23 = vpop.f32.mrb[4].mxu0 }
 0x18b   : > { %v2362_v26 = vadd.f32 %v4291_v11, %v2312_v22  ;;  %v2313_v27 = vmul.f32 0.044715, %v2263_v35  ;;  %v4306_v28 = vadd.f32 %v2021_v23, %v1556_v31  ;;  %v2023_v29 = vpop.f32.mrb[5].mxu0  ;;  %v1575_v35 = vadd.f32 %v4285_v6, %v4218_v59 }
 0x18c   : > { %v2024_v30 = vpop.f32.mrb[6].mxu0 }
 0x18d   : > { %v2412_v33 = vmul.f32 0.7978846, %v2362_v26  ;;  %v2363_v34 = vadd.f32 %v4295_v17, %v2313_v27  ;;  %v2214_v39 = vmul.f32 %v4306_v28, %v4306_v28  ;;  %v4311_v36 = vadd.f32 %v2024_v30, %v1559_v25  ;;  %v2026_v38 = vpop.f32.mrb[7].mxu0 }
 0x18f   : > { %3646 = vtanh.f32 %v2412_v33  ;;  %v2413_v40 = vmul.f32 0.7978846, %v2363_v34  ;;  %v2264_v43 = vmul.f32 %v4306_v28, %v2214_v39  ;;  %v2215_v41 = vmul.f32 %v4311_v36, %v4311_v36 }
 0x191   : > { %3648 = vtanh.f32 %v2413_v40  ;;  %v2314_v45 = vmul.f32 0.044715, %v2264_v43  ;;  %v2265_v46 = vmul.f32 %v4311_v36, %v2215_v41 }
 0x192   : > { %v2029_v49 = vpop.f32.mrb[8].mxu0 }
 0x193   : > { %v2364_v53 = vadd.f32 %v4306_v28, %v2314_v45  ;;  %v2315_v54 = vmul.f32 0.044715, %v2265_v46  ;;  %v4322_v57 = vadd.f32 %v2029_v49, %v1564_v44  ;;  %v2031_v60 = vpop.f32.mrb[9].mxu0 }
 0x194   : > { %v2032_v62 = vpop.f32.mrb[10].mxu0 }
 0x195   : > { %v2414_v2 = vmul.f32 0.7978846, %v2364_v53  ;;  %v2365_v5 = vadd.f32 %v4311_v36, %v2315_v54  ;;  %v2216_v47 = vmul.f32 %v4322_v57, %v4322_v57  ;;  %v4327_v7 = vadd.f32 %v2032_v62, %v1567_v50  ;;  %v2034_v9 = vpop.f32.mrb[11].mxu0 }
 0x196   : > { %v1580_v50 = vadd.f32 %v4285_v6, %v4222_v63 }
 0x197   : > { %3650 = vtanh.f32 %v2414_v2  ;;  %v2415_v10 = vmul.f32 0.7978846, %v2365_v5  ;;  %v2266_v51 = vmul.f32 %v4322_v57, %v2216_v47  ;;  %v2217_v13 = vmul.f32 %v4327_v7, %v4327_v7 }
 0x198   : > { %v1583_v47 = vadd.f32 %v4285_v6, %v4226_v4 }
 0x199   : > { %v3647_v14 = vpop.eup %3646  ;;  %3652 = vtanh.f32 %v2415_v10  ;;  %v2316_v18 = vmul.f32 0.044715, %v2266_v51  ;;  %v2267_v19 = vmul.f32 %v4327_v7, %v2217_v13 }
 0x19a   : > { %v2512_v21 = vadd.f32 1.0, %v3647_v14  ;;  %v2037_v31 = vpop.f32.mrb[12].mxu0 }
 0x19b   : > { %v3649_v22 = vpop.eup %3648  ;;  %v2366_v23 = vadd.f32 %v4322_v57, %v2316_v18  ;;  %v2317_v25 = vmul.f32 0.044715, %v2267_v19  ;;  %v4338_v26 = vadd.f32 %v2037_v31, %v1572_v15  ;;  %v2039_v27 = vpop.f32.mrb[13].mxu0 }
 0x19c   : > { %v2562_v29 = vmul.f32 0.5, %v2512_v21  ;;  %v2513_v30 = vadd.f32 1.0, %v3649_v22  ;;  %v2040_v33 = vpop.f32.mrb[14].mxu0 }
 0x19d   : > { %v2416_v55 = vmul.f32 0.7978846, %v2366_v23  ;;  %v2367_v34 = vadd.f32 %v4327_v7, %v2317_v25  ;;  %v2218_v39 = vmul.f32 %v4338_v26, %v4338_v26  ;;  %v4343_v38 = vadd.f32 %v2040_v33, %v1575_v35  ;;  %v2042_v40 = vpop.f32.mrb[15].mxu0 }
 0x19e   : > { %v2563_v43 = vmul.f32 0.5, %v2513_v30  ;;  %v2612_v45 = vmul.f32 %v4291_v11, %v2562_v29  ;;  %v1588_v30 = vadd.f32 %v4285_v6, %v4230_v8 }
 0x19f   : > { %3654 = vtanh.f32 %v2416_v55  ;;  %v2417_v59 = vmul.f32 0.7978846, %v2367_v34  ;;  %v2268_v41 = vmul.f32 %v4338_v26, %v2218_v39  ;;  %v2219_v44 = vmul.f32 %v4343_v38, %v4343_v38 }
 0x1a0   : > { %v2613_v46 = vmul.f32 %v4295_v17, %v2563_v43  ;;  %v1591_v43 = vadd.f32 %v4285_v6, %v4234_v12 }
 0x1a1   : > { %v3651_v49 = vpop.eup %3650  ;;  %3656 = vtanh.f32 %v2417_v59  ;;  %v2318_v53 = vmul.f32 0.044715, %v2268_v41  ;;  %v2269_v54 = vmul.f32 %v4343_v38, %v2219_v44 }
 0x1a2   : > { %v2662_v60 = vadd.f32 %v2613_v46, %v2612_v45  ;;  %v2514_v62 = vadd.f32 1.0, %v3651_v49  ;;  %v2045_v2 = vpop.f32.mrb[16].mxu0 }
 0x1a3   : > { %v3653_v5 = vpop.eup %3652  ;;  %v2368_v9 = vadd.f32 %v4338_v26, %v2318_v53  ;;  %v2319_v11 = vmul.f32 0.044715, %v2269_v54  ;;  %v4356_v10 = vadd.f32 %v2045_v2, %v1580_v50  ;;  %v2047_v17 = vpop.f32.mrb[17].mxu0 }
 0x1a4   : > { %v2564_v51 = vmul.f32 0.5, %v2514_v62  ;;  %v2515_v13 = vadd.f32 1.0, %v3653_v5  ;;  %v2048_v63 = vpop.f32.mrb[18].mxu0 }
 0x1a5   : > { %v2418_v14 = vmul.f32 0.7978846, %v2368_v9  ;;  %v2369_v15 = vadd.f32 %v4343_v38, %v2319_v11  ;;  %v2220_v18 = vmul.f32 %v4356_v10, %v4356_v10  ;;  %v4361_v19 = vadd.f32 %v2048_v63, %v1583_v47  ;;  %v2050_v21 = vpop.f32.mrb[19].mxu0 }
 0x1a6   : > { %v2614_v4 = vmul.f32 %v4306_v28, %v2564_v51  ;;  %v2565_v31 = vmul.f32 0.5, %v2515_v13  ;;  %v1596_v51 = vadd.f32 %v4285_v6, %v4238_v16 }
 0x1a7   : > { %3658 = vtanh.f32 %v2418_v14  ;;  %v2419_v22 = vmul.f32 0.7978846, %v2369_v15  ;;  %v2270_v35 = vmul.f32 %v4356_v10, %v2220_v18  ;;  %v2221_v23 = vmul.f32 %v4361_v19, %v4361_v19  ;;  %v3638_v18 = vld [vmem:[%s4750_s3] sm:$0xff]  }
 0x1a8   : > { %v2663_v25 = vadd.f32 %v2662_v60, %v2614_v4  ;;  %v2615_v27 = vmul.f32 %v4311_v36, %v2565_v31  ;;  %v1599_v4 = vadd.f32 %v4285_v6, %v4242_v20 }
 0x1a9   : > { %v3655_v29 = vpop.eup %3654  ;;  %3660 = vtanh.f32 %v2419_v22  ;;  %v2320_v33 = vmul.f32 0.044715, %v2270_v35  ;;  %v2271_v55 = vmul.f32 %v4361_v19, %v2221_v23  ;;  %v3756_v35 = vmov 0.0  }
 0x1aa   : > { %v2664_v28 = vadd.f32 %v2663_v25, %v2615_v27  ;;  %v2516_v34 = vadd.f32 1.0, %v3655_v29  ;;  %v2053_v39 = vpop.f32.mrb[20].mxu0  ;;  %3101 = vmatprep.subr.bf16.mxu1 %v3756_v35  ;;  %3117 = vmatprep.mubr.msk.bf16.mxu1 %vm3757_vm0, %v3756_v35 }
 0x1ab   : > { %v3657_v40 = vpop.eup %3656  ;;  %v2370_v59 = vadd.f32 %v4356_v10, %v2320_v33  ;;  %v2321_v41 = vmul.f32 0.044715, %v2271_v55  ;;  %v4374_v44 = vadd.f32 %v2053_v39, %v1588_v30  ;;  %v2055_v36 = vpop.f32.mrb[21].mxu0  ;;  %3102 = vmatpush3.bf16.msra.mxu1 %v3638_v18 }
 0x1ac   : > { %v2566_v45 = vmul.f32 0.5, %v2516_v34  ;;  %v2517_v46 = vadd.f32 1.0, %v3657_v40  ;;  %v2056_v8 = vpop.f32.mrb[22].mxu0  ;;  %3103 = vmatprep.subr.bf16.mxu1 %v3756_v35 }
 0x1ad   : > { %v2420_v49 = vmul.f32 0.7978846, %v2370_v59  ;;  %v2371_v50 = vadd.f32 %v4361_v19, %v2321_v41  ;;  %v2222_v53 = vmul.f32 %v4374_v44, %v4374_v44  ;;  %v4379_v54 = vadd.f32 %v2056_v8, %v1591_v43  ;;  %v2058_v60 = vpop.f32.mrb[23].mxu0 }
 0x1ae   : > { %v2616_v12 = vmul.f32 %v4322_v57, %v2566_v45  ;;  %v2567_v62 = vmul.f32 0.5, %v2517_v46  ;;  %v1604_v45 = vadd.f32 %v4285_v6, %v4246_v24 }
 0x1af   : > { %3662 = vtanh.f32 %v2420_v49  ;;  %v2421_v2 = vmul.f32 0.7978846, %v2371_v50  ;;  %v2272_v5 = vmul.f32 %v4374_v44, %v2222_v53  ;;  %v2223_v47 = vmul.f32 %v4379_v54, %v4379_v54  ;;  %v3639_v53 = vld [vmem:[%s4750_s3 + $0x8] sm:$0xff]  }
 0x1b0   : > { %v2665_v9 = vadd.f32 %v2664_v28, %v2616_v12  ;;  %v2617_v11 = vmul.f32 %v4327_v7, %v2567_v62  ;;  %v1607_v12 = vadd.f32 %v4285_v6, %v4250_v1  ;;  %3104 = vmatpush3.bf16.msra.mxu1 %v3639_v53 }
 0x1b1   : > { %v3659_v17 = vpop.eup %3658  ;;  %3664 = vtanh.f32 %v2421_v2  ;;  %v2322_v13 = vmul.f32 0.044715, %v2272_v5  ;;  %v2273_v63 = vmul.f32 %v4379_v54, %v2223_v47  ;;  %3105 = vmatprep.subr.bf16.mxu1 %v3756_v35 }
 0x1b2   : > { %v2666_v57 = vadd.f32 %v2665_v9, %v2617_v11  ;;  %v2518_v14 = vadd.f32 1.0, %v3659_v17  ;;  %v2061_v15 = vpop.f32.mrb[24].mxu0 }
 0x1b3   : > { %v3661_v21 = vpop.eup %3660  ;;  %v2372_v7 = vadd.f32 %v4374_v44, %v2322_v13  ;;  %v2323_v31 = vmul.f32 0.044715, %v2273_v63  ;;  %v4395_v22 = vadd.f32 %v2061_v15, %v1596_v51  ;;  %v2063_v16 = vpop.f32.mrb[25].mxu0 }
 0x1b4   : > { %v2568_v23 = vmul.f32 0.5, %v2518_v14  ;;  %v2519_v25 = vadd.f32 1.0, %v3661_v21  ;;  %v2064_v27 = vpop.f32.mrb[26].mxu0 }
 0x1b5   : > { %v2422_v29 = vmul.f32 0.7978846, %v2372_v7  ;;  %v2373_v30 = vadd.f32 %v4379_v54, %v2323_v31  ;;  %v2224_v33 = vmul.f32 %v4395_v22, %v4395_v22  ;;  %v4401_v20 = vadd.f32 %v2064_v27, %v1599_v4  ;;  %v2066_v55 = vpop.f32.mrb[27].mxu0 }
 0x1b6   : > { %v2618_v28 = vmul.f32 %v4338_v26, %v2568_v23  ;;  %v2569_v34 = vmul.f32 0.5, %v2519_v25  ;;  %v1612_v31 = vadd.f32 %v4285_v6, %v4254_v32 }
 0x1b7   : > { %3666 = vtanh.f32 %v2422_v29  ;;  %v2423_v39 = vmul.f32 0.7978846, %v2373_v30  ;;  %v2274_v40 = vmul.f32 %v4395_v22, %v2224_v33  ;;  %v2225_v43 = vmul.f32 %v4401_v20, %v4401_v20 }
 0x1b8   : > { %v2667_v59 = vadd.f32 %v2666_v57, %v2618_v28  ;;  %v2619_v41 = vmul.f32 %v4343_v38, %v2569_v34  ;;  %v1615_v30 = vadd.f32 %v4285_v6, %v4258_v37 }
 0x1b9   : > { %v3663_v36 = vpop.eup %3662  ;;  %3668 = vtanh.f32 %v2423_v39  ;;  %v2324_v46 = vmul.f32 0.044715, %v2274_v40  ;;  %v2275_v8 = vmul.f32 %v4401_v20, %v2225_v43 }
 0x1ba   : > { %v2668_v26 = vadd.f32 %v2667_v59, %v2619_v41  ;;  %v2520_v49 = vadd.f32 1.0, %v3663_v36  ;;  %v2069_v50 = vpop.f32.mrb[28].mxu0 }
 0x1bb   : > { %v3665_v60 = vpop.eup %3664  ;;  %v2374_v38 = vadd.f32 %v4395_v22, %v2324_v46  ;;  %v2325_v62 = vmul.f32 0.044715, %v2275_v8  ;;  %v4418_v2 = vadd.f32 %v2069_v50, %v1604_v45  ;;  %v2071_v24 = vpop.f32.mrb[29].mxu0 }
 0x1bc   : > { %v2570_v5 = vmul.f32 0.5, %v2520_v49  ;;  %v2521_v47 = vadd.f32 1.0, %v3665_v60  ;;  %v2072_v9 = vpop.f32.mrb[30].mxu0  ;;  %v1620_v60 = vadd.f32 %v4285_v6, %v4262_v42 }
 0x1bd   : > { %v2424_v11 = vmul.f32 0.7978846, %v2374_v38  ;;  %v2375_v17 = vadd.f32 %v4401_v20, %v2325_v62  ;;  %v2226_v51 = vmul.f32 %v4418_v2, %v4418_v2  ;;  %v4423_v13 = vadd.f32 %v2072_v9, %v1607_v12  ;;  %v2074_v63 = vpop.f32.mrb[31].mxu0 }
 0x1be   : > { %v2620_v1 = vmul.f32 %v4356_v10, %v2570_v5  ;;  %v2571_v57 = vmul.f32 0.5, %v2521_v47  ;;  %v3640_v5 = vld [vmem:[%s4750_s3 + $0x10] sm:$0xff]   ;;  %v1623_v9 = vadd.f32 %v4285_v6, %v4266_v48 }
 0x1bf   : > { %3670 = vtanh.f32 %v2424_v11  ;;  %v2425_v14 = vmul.f32 0.7978846, %v2375_v17  ;;  %v2276_v15 = vmul.f32 %v4418_v2, %v2226_v51  ;;  %v2227_v18 = vmul.f32 %v4423_v13, %v4423_v13  ;;  %3106 = vmatpush3.bf16.msra.mxu1 %v3640_v5 }
 0x1c0   : > { %v2669_v21 = vadd.f32 %v2668_v26, %v2620_v1  ;;  %v2621_v4 = vmul.f32 %v4361_v19, %v2571_v57  ;;  %3107 = vmatprep.subr.bf16.mxu1 %v3756_v35 }
 0x1c1   : > { %v3667_v7 = vpop.eup %3666  ;;  %3672 = vtanh.f32 %v2425_v14  ;;  %v2326_v16 = vmul.f32 0.044715, %v2276_v15  ;;  %v2277_v23 = vmul.f32 %v4423_v13, %v2227_v18 }
 0x1c2   : > { %v2670_v10 = vadd.f32 %v2669_v21, %v2621_v4  ;;  %v2522_v25 = vadd.f32 1.0, %v3667_v7  ;;  %v2077_v27 = vpop.f32.mrb[32].mxu0 }
 0x1c3   : > { %v3669_v29 = vpop.eup %3668  ;;  %v2376_v33 = vadd.f32 %v4418_v2, %v2326_v16  ;;  %v2327_v55 = vmul.f32 0.044715, %v2277_v23  ;;  %v4437_v28 = vadd.f32 %v2077_v27, %v1612_v31  ;;  %v2079_v19 = vpop.f32.mrb[33].mxu0  ;;  %v1628_v27 = vadd.f32 %v4285_v6, %v4269_v52 }
 0x1c4   : > { %v2572_v34 = vmul.f32 0.5, %v2522_v25  ;;  %v2523_v39 = vadd.f32 1.0, %v3669_v29  ;;  %v2080_v32 = vpop.f32.mrb[34].mxu0  ;;  %v3641_v19 = vld [vmem:[%s4750_s3 + $0x18] sm:$0xff]  }
 0x1c5   : > { %v2426_v40 = vmul.f32 0.7978846, %v2376_v33  ;;  %v2377_v43 = vadd.f32 %v4423_v13, %v2327_v55  ;;  %v2228_v59 = vmul.f32 %v4437_v28, %v4437_v28  ;;  %v4442_v41 = vadd.f32 %v2080_v32, %v1615_v30  ;;  %v2082_v36 = vpop.f32.mrb[35].mxu0  ;;  %3108 = vmatpush3.bf16.msra.mxu1 %v3641_v19 }
 0x1c6   : > { %v2622_v37 = vmul.f32 %v4374_v44, %v2572_v34  ;;  %v2573_v45 = vmul.f32 0.5, %v2523_v39  ;;  %v1631_v39 = vadd.f32 %v4285_v6, %v4272_v56  ;;  %3109 = vmatprep.subr.bf16.mxu1 %v3756_v35 }
 0x1c7   : > { %3674 = vtanh.f32 %v2426_v40  ;;  %v2427_v46 = vmul.f32 0.7978846, %v2377_v43  ;;  %v2278_v8 = vmul.f32 %v4437_v28, %v2228_v59  ;;  %v2229_v26 = vmul.f32 %v4442_v41, %v4442_v41 }
 0x1c8   : > { %v2671_v49 = vadd.f32 %v2670_v10, %v2622_v37  ;;  %v2623_v50 = vmul.f32 %v4379_v54, %v2573_v45 }
 0x1c9   : > { %v3671_v53 = vpop.eup %3670  ;;  %3676 = vtanh.f32 %v2427_v46  ;;  %v2328_v12 = vmul.f32 0.044715, %v2278_v8  ;;  %v2279_v38 = vmul.f32 %v4442_v41, %v2229_v26 }
 0x1ca   : > { %v2672_v44 = vadd.f32 %v2671_v49, %v2623_v50  ;;  %v2524_v62 = vadd.f32 1.0, %v3671_v53  ;;  %v2085_v24 = vpop.f32.mrb[36].mxu0 }
 0x1cb   : > { %v3673_v47 = vpop.eup %3672  ;;  %v2378_v54 = vadd.f32 %v4437_v28, %v2328_v12  ;;  %v2329_v11 = vmul.f32 0.044715, %v2279_v38  ;;  %v4458_v17 = vadd.f32 %v2085_v24, %v1620_v60  ;;  %v2087_v42 = vpop.f32.mrb[37].mxu0 }
 0x1cc   : > { %v2574_v51 = vmul.f32 0.5, %v2524_v62  ;;  %v2525_v63 = vadd.f32 1.0, %v3673_v47  ;;  %v2088_v1 = vpop.f32.mrb[38].mxu0  ;;  %v1636_v62 = vadd.f32 %v4285_v6, %v4274_v58 }
 0x1cd   : > { %v2428_v57 = vmul.f32 0.7978846, %v2378_v54  ;;  %v2379_v14 = vadd.f32 %v4442_v41, %v2329_v11  ;;  %v2230_v15 = vmul.f32 %v4458_v17, %v4458_v17  ;;  %v4463_v18 = vadd.f32 %v2088_v1, %v1623_v9  ;;  %v2090_v21 = vpop.f32.mrb[39].mxu0 }
 0x1ce   : > { %v2624_v48 = vmul.f32 %v4395_v22, %v2574_v51  ;;  %v2575_v4 = vmul.f32 0.5, %v2525_v63  ;;  %v1639_v11 = vadd.f32 %v4285_v6, %v4276_v61 }
 0x1cf   : > { %3678 = vtanh.f32 %v2428_v57  ;;  %v2429_v7 = vmul.f32 0.7978846, %v2379_v14  ;;  %v2280_v31 = vmul.f32 %v4458_v17, %v2230_v15  ;;  %v2231_v16 = vmul.f32 %v4463_v18, %v4463_v18 }
 0x1d0   : > { %v2673_v23 = vadd.f32 %v2672_v44, %v2624_v48  ;;  %v2625_v10 = vmul.f32 %v4401_v20, %v2575_v4 }
 0x1d1   : > { %v3675_v25 = vpop.eup %3674  ;;  %3680 = vtanh.f32 %v2429_v7  ;;  %v2330_v29 = vmul.f32 0.044715, %v2280_v31  ;;  %v2281_v30 = vmul.f32 %v4463_v18, %v2231_v16 }
 0x1d2   : > { %v2674_v22 = vadd.f32 %v2673_v23, %v2625_v10  ;;  %v2526_v33 = vadd.f32 1.0, %v3675_v25  ;;  %v2093_v55 = vpop.f32.mrb[40].mxu0 }
 0x1d3   : > { %v3677_v34 = vpop.eup %3676  ;;  %v2380_v20 = vadd.f32 %v4458_v17, %v2330_v29  ;;  %v2331_v32 = vmul.f32 0.044715, %v2281_v30  ;;  %v4480_v40 = vadd.f32 %v2093_v55, %v1628_v27  ;;  %v2095_v52 = vpop.f32.mrb[41].mxu0  ;;  %v1644_v29 = vadd.f32 %v4285_v6, %v4278_v0 }
 0x1d4   : > { %v2576_v43 = vmul.f32 0.5, %v2526_v33  ;;  %v2527_v59 = vadd.f32 1.0, %v3677_v34  ;;  %v2096_v36 = vpop.f32.mrb[42].mxu0 }
 0x1d5   : > { %v2430_v37 = vmul.f32 0.7978846, %v2380_v20  ;;  %v2381_v45 = vadd.f32 %v4463_v18, %v2331_v32  ;;  %v2232_v46 = vmul.f32 %v4480_v40, %v4480_v40  ;;  %v4485_v8 = vadd.f32 %v2096_v36, %v1631_v39  ;;  %v2098_v26 = vpop.f32.mrb[43].mxu0 }
 0x1d6   : > { %v2626_v56 = vmul.f32 %v4418_v2, %v2576_v43  ;;  %v2577_v49 = vmul.f32 0.5, %v2527_v59  ;;  %v1647_v20 = vadd.f32 %v4285_v6, %v4280_v3  ;;  %v3642_v59 = vld [vmem:[%s4750_s3 + $0x20] sm:$0xff]  }
 0x1d7   : > { %3682 = vtanh.f32 %v2430_v37  ;;  %v2431_v50 = vmul.f32 0.7978846, %v2381_v45  ;;  %v2282_v53 = vmul.f32 %v4480_v40, %v2232_v46  ;;  %v2233_v60 = vmul.f32 %v4485_v8, %v4485_v8  ;;  %3110 = vmatpush3.bf16.msra.mxu1 %v3642_v59 }
 0x1d8   : > { %v2675_v12 = vadd.f32 %v2674_v22, %v2626_v56  ;;  %v2627_v38 = vmul.f32 %v4423_v13, %v2577_v49  ;;  %3111 = vmatprep.subr.bf16.mxu1 %v3756_v35 }
 0x1d9   : > { %v3679_v44 = vpop.eup %3678  ;;  %3684 = vtanh.f32 %v2431_v50  ;;  %v2332_v24 = vmul.f32 0.044715, %v2282_v53  ;;  %v2283_v5 = vmul.f32 %v4485_v8, %v2233_v60 }
 0x1da   : > { %v2676_v2 = vadd.f32 %v2675_v12, %v2627_v38  ;;  %v2528_v47 = vadd.f32 1.0, %v3679_v44  ;;  %v2101_v9 = vpop.f32.mrb[44].mxu0 }
 0x1db   : > { %v3681_v54 = vpop.eup %3680  ;;  %v2382_v42 = vadd.f32 %v4480_v40, %v2332_v24  ;;  %v2333_v51 = vmul.f32 0.044715, %v2283_v5  ;;  %v4499_v63 = vadd.f32 %v2101_v9, %v1636_v62  ;;  %v2103_v13 = vpop.f32.mrb[45].mxu0  ;;  %v3643_v62 = vld [vmem:[%s4750_s3 + $0x28] sm:$0xff]  }
 0x1dc   : > { %v2578_v1 = vmul.f32 0.5, %v2528_v47  ;;  %v2529_v57 = vadd.f32 1.0, %v3681_v54  ;;  %v2104_v58 = vpop.f32.mrb[46].mxu0  ;;  %3112 = vmatpush3.bf16.msra.mxu1 %v3643_v62 }
 0x1dd   : > { %v2432_v14 = vmul.f32 0.7978846, %v2382_v42  ;;  %v2383_v15 = vadd.f32 %v4485_v8, %v2333_v51  ;;  %v2234_v21 = vmul.f32 %v4499_v63, %v4499_v63  ;;  %v4504_v48 = vadd.f32 %v2104_v58, %v1639_v11  ;;  %v2106_v4 = vpop.f32.mrb[47].mxu0  ;;  %3113 = vmatprep.subr.bf16.mxu1 %v3756_v35 }
 0x1de   : > { %v2628_v61 = vmul.f32 %v4437_v28, %v2578_v1  ;;  %v2579_v7 = vmul.f32 0.5, %v2529_v57  ;;  %v3644_v1 = vld [vmem:[%s4750_s3 + $0x30] sm:$0xff]  }
 0x1df   : > { %3686 = vtanh.f32 %v2432_v14  ;;  %v2433_v31 = vmul.f32 0.7978846, %v2383_v15  ;;  %v2284_v16 = vmul.f32 %v4499_v63, %v2234_v21  ;;  %v2235_v23 = vmul.f32 %v4504_v48, %v4504_v48 }
 0x1e0   : > { %v2677_v10 = vadd.f32 %v2676_v2, %v2628_v61  ;;  %v2629_v25 = vmul.f32 %v4442_v41, %v2579_v7  ;;  %3114 = vmatpush3.bf16.msra.mxu1 %v3644_v1 }
 0x1e1   : > { %v3683_v27 = vpop.eup %3682  ;;  %3688 = vtanh.f32 %v2433_v31  ;;  %v2334_v30 = vmul.f32 0.044715, %v2284_v16  ;;  %v2285_v22 = vmul.f32 %v4504_v48, %v2235_v23  ;;  %v1884_v28 = vpop.f32.mrb[52].mxu1  ;;  %3115 = vmatprep.subr.bf16.mxu1 %v3756_v35 }
 0x1e2   : > { %v2678_v33 = vadd.f32 %v2677_v10, %v2629_v25  ;;  %v2530_v55 = vadd.f32 1.0, %v3683_v27  ;;  %v2109_v19 = vpop.f32.mrb[48].mxu0  ;;  %v1886_v34 = vpop.f32.mrb[53].mxu1 }
 0x1e3   : > { %v3685_v39 = vpop.eup %3684  ;;  %v2384_v32 = vadd.f32 %v4499_v63, %v2334_v30  ;;  %v2335_v41 = vmul.f32 0.044715, %v2285_v22  ;;  %v4517_v52 = vadd.f32 %v2109_v19, %v1644_v29  ;;  %v2111_v43 = vpop.f32.mrb[49].mxu0  ;;  %v3645_v30 = vld [vmem:[%s4750_s3 + $0x38] sm:$0xff]  }
 0x1e4   : > { %v1887_v0 = vpop.f32.mrb[54].mxu1  ;;  %v2580_v36 = vmul.f32 0.5, %v2530_v55  ;;  %v2531_v37 = vadd.f32 1.0, %v3685_v39  ;;  %v2112_v45 = vpop.f32.mrb[50].mxu0  ;;  %3116 = vmatpush3.bf16.msra.mxu1 %v3645_v30 }
 0x1e5   : > { %v1889_v46 = vpop.f32.mrb[55].mxu1  ;;  %v2434_v26 = vmul.f32 0.7978846, %v2384_v32  ;;  %v2385_v56 = vadd.f32 %v4504_v48, %v2335_v41  ;;  %v2236_v3 = vmul.f32 %v4517_v52, %v4517_v52  ;;  %v4525_v49 = vadd.f32 %v2112_v45, %v1647_v20  ;;  %v2114_v50 = vpop.f32.mrb[51].mxu0 }
 0x1e6   : > { %v2630_v53 = vmul.f32 %v4458_v17, %v2580_v36  ;;  %v2581_v60 = vmul.f32 0.5, %v2531_v37  ;;  %v3205_v17 = vadd.f32 %v4285_v6, %v1884_v28  ;;  %v3207_v58 = vadd.f32 %v4285_v6, %v1887_v0 }
 0x1e7   : > { %3690 = vtanh.f32 %v2434_v26  ;;  %v2435_v12 = vmul.f32 0.7978846, %v2385_v56  ;;  %v2286_v38 = vmul.f32 %v4517_v52, %v2236_v3  ;;  %v2237_v44 = vmul.f32 %v4525_v49, %v4525_v49 }
 0x1e8   : > { %v2679_v24 = vadd.f32 %v2678_v33, %v2630_v53  ;;  %v2631_v5 = vmul.f32 %v4463_v18, %v2581_v60 }
 0x1e9   : > { %v3687_v2 = vpop.eup %3686  ;;  %3692 = vtanh.f32 %v2435_v12  ;;  %v2336_v47 = vmul.f32 0.044715, %v2286_v38  ;;  %v2287_v9 = vmul.f32 %v4525_v49, %v2237_v44  ;;  %v1892_v54 = vpop.f32.mrb[56].mxu1 }
 0x1ea   : > { %v2680_v11 = vadd.f32 %v2679_v24, %v2631_v5  ;;  %v2532_v42 = vadd.f32 1.0, %v3687_v2  ;;  %v2117_v51 = vpop.f32.mrb[52].mxu0  ;;  %v1894_v13 = vpop.f32.mrb[57].mxu1  ;;  %v3209_v32 = vadd.f32 %v4285_v6, %v1892_v54 }
 0x1eb   : > { %v3689_v18 = vpop.eup %3688  ;;  %v2386_v57 = vadd.f32 %v4517_v52, %v2336_v47  ;;  %v2337_v14 = vmul.f32 0.044715, %v2287_v9  ;;  %v4544_v15 = vadd.f32 %v3205_v17, %v2117_v51  ;;  %v2119_v21 = vpop.f32.mrb[53].mxu0 }
 0x1ec   : > { %v1895_v4 = vpop.f32.mrb[58].mxu1  ;;  %v2582_v61 = vmul.f32 0.5, %v2532_v42  ;;  %v2533_v7 = vadd.f32 1.0, %v3689_v18  ;;  %v2120_v31 = vpop.f32.mrb[54].mxu0 }
 0x1ed   : > { %v1897_v16 = vpop.f32.mrb[59].mxu1  ;;  %v2436_v23 = vmul.f32 0.7978846, %v2386_v57  ;;  %v2387_v10 = vadd.f32 %v4525_v49, %v2337_v14  ;;  %v2238_v25 = vmul.f32 %v4544_v15, %v4544_v15  ;;  %v4550_v27 = vadd.f32 %v3207_v58, %v2120_v31  ;;  %v2122_v29 = vpop.f32.mrb[55].mxu0 }
 0x1ee   : > { %v2632_v22 = vmul.f32 %v4480_v40, %v2582_v61  ;;  %v2583_v28 = vmul.f32 0.5, %v2533_v7  ;;  %v3211_v46 = vadd.f32 %v4285_v6, %v1895_v4 }
 0x1ef   : > { %3694 = vtanh.f32 %v2436_v23  ;;  %v2437_v33 = vmul.f32 0.7978846, %v2387_v10  ;;  %v2288_v55 = vmul.f32 %v4544_v15, %v2238_v25  ;;  %v2239_v19 = vmul.f32 %v4550_v27, %v4550_v27 }
 0x1f0   : > { %v2681_v34 = vadd.f32 %v2680_v11, %v2632_v22  ;;  %v2633_v39 = vmul.f32 %v4485_v8, %v2583_v28 }
 0x1f1   : > { %v3691_v20 = vpop.eup %3690  ;;  %3696 = vtanh.f32 %v2437_v33  ;;  %v2338_v41 = vmul.f32 0.044715, %v2288_v55  ;;  %v2289_v40 = vmul.f32 %v4550_v27, %v2239_v19  ;;  %v1900_v43 = vpop.f32.mrb[60].mxu1 }
 0x1f2   : > { %v2682_v35 = vadd.f32 %v2681_v34, %v2633_v39  ;;  %v2534_v0 = vadd.f32 1.0, %v3691_v20  ;;  %v2125_v59 = vpop.f32.mrb[56].mxu0  ;;  %v1902_v36 = vpop.f32.mrb[61].mxu1  ;;  %v3213_v13 = vadd.f32 %v4285_v6, %v1900_v43 }
 0x1f3   : > { %v3693_v37 = vpop.eup %3692  ;;  %v2388_v45 = vadd.f32 %v4544_v15, %v2338_v41  ;;  %v2339_v26 = vmul.f32 0.044715, %v2289_v40  ;;  %v4565_v8 = vadd.f32 %v3209_v32, %v2125_v59  ;;  %v2127_v56 = vpop.f32.mrb[57].mxu0 }
 0x1f4   : > { %v1903_v3 = vpop.f32.mrb[62].mxu1  ;;  %v2584_v50 = vmul.f32 0.5, %v2534_v0  ;;  %v2535_v53 = vadd.f32 1.0, %v3693_v37  ;;  %v2128_v60 = vpop.f32.mrb[58].mxu0 }
 0x1f5   : > { %v1905_v12 = vpop.f32.mrb[63].mxu1  ;;  %v2438_v38 = vmul.f32 0.7978846, %v2388_v45  ;;  %v2389_v44 = vadd.f32 %v4550_v27, %v2339_v26  ;;  %v2240_v62 = vmul.f32 %v4565_v8, %v4565_v8  ;;  %v4570_v24 = vadd.f32 %v3211_v46, %v2128_v60  ;;  %v2130_v5 = vpop.f32.mrb[59].mxu0 }
 0x1f6   : > { %v2634_v2 = vmul.f32 %v4499_v63, %v2584_v50  ;;  %v2585_v17 = vmul.f32 0.5, %v2535_v53  ;;  %v3215_v7 = vadd.f32 %v4285_v6, %v1903_v3 }
 0x1f7   : > { %3698 = vtanh.f32 %v2438_v38  ;;  %v2439_v47 = vmul.f32 0.7978846, %v2389_v44  ;;  %v2290_v9 = vmul.f32 %v4565_v8, %v2240_v62  ;;  %v2241_v54 = vmul.f32 %v4570_v24, %v4570_v24 }
 0x1f8   : > { %v2683_v11 = vadd.f32 %v2682_v35, %v2634_v2  ;;  %v2635_v42 = vmul.f32 %v4504_v48, %v2585_v17 }
 0x1f9   : > { %v3695_v51 = vpop.eup %3694  ;;  %3700 = vtanh.f32 %v2439_v47  ;;  %v2340_v1 = vmul.f32 0.044715, %v2290_v9  ;;  %v2291_v18 = vmul.f32 %v4570_v24, %v2241_v54  ;;  %v1908_v57 = vpop.f32.mrb[64].mxu1 }
 0x1fa   : > { %v2684_v63 = vadd.f32 %v2683_v11, %v2635_v42  ;;  %v2536_v58 = vadd.f32 1.0, %v3695_v51  ;;  %v2133_v14 = vpop.f32.mrb[60].mxu0  ;;  %v1910_v21 = vpop.f32.mrb[65].mxu1  ;;  %v3217_v0 = vadd.f32 %v4285_v6, %v1908_v57 }
 0x1fb   : > { %v3697_v4 = vpop.eup %3696  ;;  %v2390_v61 = vadd.f32 %v4565_v8, %v2340_v1  ;;  %v2341_v31 = vmul.f32 0.044715, %v2291_v18  ;;  %v4581_v16 = vadd.f32 %v3213_v13, %v2133_v14  ;;  %v2135_v48 = vpop.f32.mrb[61].mxu0 }
 0x1fc   : > { %v1911_v23 = vpop.f32.mrb[66].mxu1  ;;  %v2586_v10 = vmul.f32 0.5, %v2536_v58  ;;  %v2537_v25 = vadd.f32 1.0, %v3697_v4  ;;  %v2136_v29 = vpop.f32.mrb[62].mxu0 }
 0x1fd   : > { %v1913_v30 = vpop.f32.mrb[67].mxu1  ;;  %v2440_v22 = vmul.f32 0.7978846, %v2390_v61  ;;  %v2391_v28 = vadd.f32 %v4570_v24, %v2341_v31  ;;  %v2242_v33 = vmul.f32 %v4581_v16, %v4581_v16  ;;  %v4586_v55 = vadd.f32 %v3215_v7, %v2136_v29  ;;  %v2138_v19 = vpop.f32.mrb[63].mxu0 }
 0x1fe   : > { %v2636_v34 = vmul.f32 %v4517_v52, %v2586_v10  ;;  %v2587_v39 = vmul.f32 0.5, %v2537_v25  ;;  %v3219_v50 = vadd.f32 %v4285_v6, %v1911_v23 }
 0x1ff   : > { %3702 = vtanh.f32 %v2440_v22  ;;  %v2441_v20 = vmul.f32 0.7978846, %v2391_v28  ;;  %v2292_v32 = vmul.f32 %v4581_v16, %v2242_v33  ;;  %v2243_v41 = vmul.f32 %v4586_v55, %v4586_v55 }
 0x200   : > { %v2685_v40 = vadd.f32 %v2684_v63, %v2636_v34  ;;  %v2637_v43 = vmul.f32 %v4525_v49, %v2587_v39  ;;  %v4612_v63 = vld [vmem:[%s4749_s2] ss:$0 sm:$0xff] }
 0x201   : > { %v3699_v35 = vpop.eup %3698  ;;  %3704 = vtanh.f32 %v2441_v20  ;;  %v2342_v59 = vmul.f32 0.044715, %v2292_v32  ;;  %v2293_v36 = vmul.f32 %v4586_v55, %v2243_v41  ;;  %v1916_v37 = vpop.f32.mrb[68].mxu1 }
 0x202   : > { %v2686_v52 = vadd.f32 %v2685_v40, %v2637_v43  ;;  %v2538_v45 = vadd.f32 1.0, %v3699_v35  ;;  %v2141_v46 = vpop.f32.mrb[64].mxu0  ;;  %v1918_v26 = vpop.f32.mrb[69].mxu1 }
 0x203   : > { %v3701_v56 = vpop.eup %3700  ;;  %v2392_v3 = vadd.f32 %v4581_v16, %v2342_v59  ;;  %v2343_v53 = vmul.f32 0.044715, %v2293_v36  ;;  %v4597_v60 = vadd.f32 %v3217_v0, %v2141_v46  ;;  %v2143_v49 = vpop.f32.mrb[65].mxu0 }
 0x204   : > { %v1919_v12 = vpop.f32.mrb[70].mxu1  ;;  %v2588_v38 = vmul.f32 0.5, %v2538_v45  ;;  %v2539_v44 = vadd.f32 1.0, %v3701_v56  ;;  %v2144_v62 = vpop.f32.mrb[66].mxu0 }
 0x205   : > { %v1921_v5 = vpop.f32.mrb[71].mxu1  ;;  %v2442_v2 = vmul.f32 0.7978846, %v2392_v3  ;;  %v2393_v17 = vadd.f32 %v4586_v55, %v2343_v53  ;;  %v2244_v47 = vmul.f32 %v4597_v60, %v4597_v60  ;;  %v4602_v9 = vadd.f32 %v3219_v50, %v2144_v62  ;;  %v2146_v54 = vpop.f32.mrb[67].mxu0 }
 0x206   : > { %v2638_v6 = vmul.f32 %v4544_v15, %v2588_v38  ;;  %v2589_v11 = vmul.f32 0.5, %v2539_v44  ;;  %v3221_v15 = vadd.f32 %v4612_v63, %v1916_v37  ;;  %v3223_v23 = vadd.f32 %v4612_v63, %v1919_v12 }
 0x207   : > { %3706 = vtanh.f32 %v2442_v2  ;;  %v2443_v42 = vmul.f32 0.7978846, %v2393_v17  ;;  %v2294_v51 = vmul.f32 %v4597_v60, %v2244_v47  ;;  %v2245_v13 = vmul.f32 %v4602_v9, %v4602_v9 }
 0x208   : > { %v2687_v1 = vadd.f32 %v2686_v52, %v2638_v6  ;;  %v2639_v18 = vmul.f32 %v4550_v27, %v2589_v11 }
 0x209   : > { %v3703_v57 = vpop.eup %3702  ;;  %3708 = vtanh.f32 %v2443_v42  ;;  %v2344_v58 = vmul.f32 0.044715, %v2294_v51  ;;  %v2295_v14 = vmul.f32 %v4602_v9, %v2245_v13  ;;  %v1924_v21 = vpop.f32.mrb[72].mxu1 }
 0x20a   : > { %v2688_v4 = vadd.f32 %v2687_v1, %v2639_v18  ;;  %v2540_v61 = vadd.f32 1.0, %v3703_v57  ;;  %v2149_v7 = vpop.f32.mrb[68].mxu0  ;;  %v1926_v31 = vpop.f32.mrb[73].mxu1  ;;  %v3225_v45 = vadd.f32 %v4612_v63, %v1924_v21 }
 0x20b   : > { %v3705_v48 = vpop.eup %3704  ;;  %v2394_v27 = vadd.f32 %v4597_v60, %v2344_v58  ;;  %v2345_v10 = vmul.f32 0.044715, %v2295_v14  ;;  %v4618_v25 = vadd.f32 %v3221_v15, %v2149_v7  ;;  %v2151_v29 = vpop.f32.mrb[69].mxu0 }
 0x20c   : > { %v1927_v30 = vpop.f32.mrb[74].mxu1  ;;  %v2590_v22 = vmul.f32 0.5, %v2540_v61  ;;  %v2541_v28 = vadd.f32 1.0, %v3705_v48  ;;  %v2152_v33 = vpop.f32.mrb[70].mxu0 }
 0x20d   : > { %v1929_v19 = vpop.f32.mrb[75].mxu1  ;;  %v2444_v34 = vmul.f32 0.7978846, %v2394_v27  ;;  %v2395_v39 = vadd.f32 %v4602_v9, %v2345_v10  ;;  %v2246_v20 = vmul.f32 %v4618_v25, %v4618_v25  ;;  %v4623_v32 = vadd.f32 %v3223_v23, %v2152_v33  ;;  %v2154_v41 = vpop.f32.mrb[71].mxu0 }
 0x20e   : > { %v2640_v40 = vmul.f32 %v4565_v8, %v2590_v22  ;;  %v2591_v43 = vmul.f32 0.5, %v2541_v28  ;;  %v3227_v38 = vadd.f32 %v4612_v63, %v1927_v30 }
 0x20f   : > { %3710 = vtanh.f32 %v2444_v34  ;;  %v2445_v35 = vmul.f32 0.7978846, %v2395_v39  ;;  %v2296_v0 = vmul.f32 %v4618_v25, %v2246_v20  ;;  %v2247_v59 = vmul.f32 %v4623_v32, %v4623_v32 }
 0x210   : > { %v2689_v36 = vadd.f32 %v2688_v4, %v2640_v40  ;;  %v2641_v37 = vmul.f32 %v4570_v24, %v2591_v43 }
 0x211   : > { %v3707_v52 = vpop.eup %3706  ;;  %3712 = vtanh.f32 %v2445_v35  ;;  %v2346_v46 = vmul.f32 0.044715, %v2296_v0  ;;  %v2297_v26 = vmul.f32 %v4623_v32, %v2247_v59  ;;  %v1932_v56 = vpop.f32.mrb[76].mxu1 }
 0x212   : > { %v2690_v8 = vadd.f32 %v2689_v36, %v2641_v37  ;;  %v2542_v3 = vadd.f32 1.0, %v3707_v52  ;;  %v2157_v50 = vpop.f32.mrb[72].mxu0  ;;  %v1934_v53 = vpop.f32.mrb[77].mxu1  ;;  %v3229_v61 = vadd.f32 %v4612_v63, %v1932_v56 }
 0x213   : > { %v3709_v49 = vpop.eup %3708  ;;  %v2396_v12 = vadd.f32 %v4618_v25, %v2346_v46  ;;  %v2347_v44 = vmul.f32 0.044715, %v2297_v26  ;;  %v4634_v62 = vadd.f32 %v3225_v45, %v2157_v50  ;;  %v2159_v24 = vpop.f32.mrb[73].mxu0 }
 0x214   : > { %v1935_v5 = vpop.f32.mrb[78].mxu1  ;;  %v2592_v2 = vmul.f32 0.5, %v2542_v3  ;;  %v2543_v17 = vadd.f32 1.0, %v3709_v49  ;;  %v2160_v47 = vpop.f32.mrb[74].mxu0 }
 0x215   : > { %v1937_v54 = vpop.f32.mrb[79].mxu1  ;;  %v2446_v6 = vmul.f32 0.7978846, %v2396_v12  ;;  %v2397_v11 = vadd.f32 %v4623_v32, %v2347_v44  ;;  %v2248_v42 = vmul.f32 %v4634_v62, %v4634_v62  ;;  %v4639_v51 = vadd.f32 %v3227_v38, %v2160_v47  ;;  %v2162_v13 = vpop.f32.mrb[75].mxu0 }
 0x216   : > { %v2642_v1 = vmul.f32 %v4581_v16, %v2592_v2  ;;  %v2593_v18 = vmul.f32 0.5, %v2543_v17  ;;  %v3231_v22 = vadd.f32 %v4612_v63, %v1935_v5 }
 0x217   : > { %3714 = vtanh.f32 %v2446_v6  ;;  %v2447_v57 = vmul.f32 0.7978846, %v2397_v11  ;;  %v2298_v15 = vmul.f32 %v4634_v62, %v2248_v42  ;;  %v2249_v58 = vmul.f32 %v4639_v51, %v4639_v51 }
 0x218   : > { %v2691_v14 = vadd.f32 %v2690_v8, %v2642_v1  ;;  %v2643_v21 = vmul.f32 %v4586_v55, %v2593_v18 }
 0x219   : > { %v3711_v4 = vpop.eup %3710  ;;  %3716 = vtanh.f32 %v2447_v57  ;;  %v2348_v7 = vmul.f32 0.044715, %v2298_v15  ;;  %v2299_v31 = vmul.f32 %v4639_v51, %v2249_v58  ;;  %v1940_v48 = vpop.f32.mrb[80].mxu1 }
 0x21a   : > { %v2692_v16 = vadd.f32 %v2691_v14, %v2643_v21  ;;  %v2544_v27 = vadd.f32 1.0, %v3711_v4  ;;  %v2165_v23 = vpop.f32.mrb[76].mxu0  ;;  %v1942_v10 = vpop.f32.mrb[81].mxu1  ;;  %v3233_v3 = vadd.f32 %v4612_v63, %v1940_v48 }
 0x21b   : > { %v3713_v29 = vpop.eup %3712  ;;  %v2398_v30 = vadd.f32 %v4634_v62, %v2348_v7  ;;  %v2349_v28 = vmul.f32 0.044715, %v2299_v31  ;;  %v4650_v33 = vadd.f32 %v3229_v61, %v2165_v23  ;;  %v2167_v55 = vpop.f32.mrb[77].mxu0 }
 0x21c   : > { %v1943_v19 = vpop.f32.mrb[82].mxu1  ;;  %v2594_v34 = vmul.f32 0.5, %v2544_v27  ;;  %v2545_v39 = vadd.f32 1.0, %v3713_v29  ;;  %v2168_v20 = vpop.f32.mrb[78].mxu0 }
 0x21d   : > { %v1945_v41 = vpop.f32.mrb[83].mxu1  ;;  %v2448_v40 = vmul.f32 0.7978846, %v2398_v30  ;;  %v2399_v43 = vadd.f32 %v4639_v51, %v2349_v28  ;;  %v2250_v35 = vmul.f32 %v4650_v33, %v4650_v33  ;;  %v4655_v0 = vadd.f32 %v3231_v22, %v2168_v20  ;;  %v2170_v59 = vpop.f32.mrb[79].mxu0 }
 0x21e   : > { %v2644_v36 = vmul.f32 %v4597_v60, %v2594_v34  ;;  %v2595_v37 = vmul.f32 0.5, %v2545_v39  ;;  %v3235_v2 = vadd.f32 %v4612_v63, %v1943_v19 }
 0x21f   : > { %3718 = vtanh.f32 %v2448_v40  ;;  %v2449_v52 = vmul.f32 0.7978846, %v2399_v43  ;;  %v2300_v45 = vmul.f32 %v4650_v33, %v2250_v35  ;;  %v2251_v46 = vmul.f32 %v4655_v0, %v4655_v0 }
 0x220   : > { %v2693_v26 = vadd.f32 %v2692_v16, %v2644_v36  ;;  %v2645_v56 = vmul.f32 %v4602_v9, %v2595_v37 }
 0x221   : > { %v3715_v8 = vpop.eup %3714  ;;  %3720 = vtanh.f32 %v2449_v52  ;;  %v2350_v50 = vmul.f32 0.044715, %v2300_v45  ;;  %v2301_v53 = vmul.f32 %v4655_v0, %v2251_v46  ;;  %v1948_v49 = vpop.f32.mrb[84].mxu1 }
 0x222   : > { %v2694_v60 = vadd.f32 %v2693_v26, %v2645_v56  ;;  %v2546_v12 = vadd.f32 1.0, %v3715_v8  ;;  %v2173_v38 = vpop.f32.mrb[80].mxu0  ;;  %v1950_v44 = vpop.f32.mrb[85].mxu1  ;;  %v3237_v27 = vadd.f32 %v4612_v63, %v1948_v49 }
 0x223   : > { %v3717_v24 = vpop.eup %3716  ;;  %v2400_v5 = vadd.f32 %v4650_v33, %v2350_v50  ;;  %v2351_v17 = vmul.f32 0.044715, %v2301_v53  ;;  %v4666_v47 = vadd.f32 %v3233_v3, %v2173_v38  ;;  %v2175_v9 = vpop.f32.mrb[81].mxu0 }
 0x224   : > { %v1951_v54 = vpop.f32.mrb[86].mxu1  ;;  %v2596_v6 = vmul.f32 0.5, %v2546_v12  ;;  %v2547_v11 = vadd.f32 1.0, %v3717_v24  ;;  %v2176_v42 = vpop.f32.mrb[82].mxu0 }
 0x225   : > { %v1953_v13 = vpop.f32.mrb[87].mxu1  ;;  %v2450_v1 = vmul.f32 0.7978846, %v2400_v5  ;;  %v2401_v18 = vadd.f32 %v4655_v0, %v2351_v17  ;;  %v2252_v57 = vmul.f32 %v4666_v47, %v4666_v47  ;;  %v4671_v15 = vadd.f32 %v3235_v2, %v2176_v42  ;;  %v2178_v58 = vpop.f32.mrb[83].mxu0 }
 0x226   : > { %v2646_v14 = vmul.f32 %v4618_v25, %v2596_v6  ;;  %v2597_v21 = vmul.f32 0.5, %v2547_v11  ;;  %v3239_v34 = vadd.f32 %v4612_v63, %v1951_v54 }
 0x227   : > { %3722 = vtanh.f32 %v2450_v1  ;;  %v2451_v4 = vmul.f32 0.7978846, %v2401_v18  ;;  %v2302_v61 = vmul.f32 %v4666_v47, %v2252_v57  ;;  %v2253_v7 = vmul.f32 %v4671_v15, %v4671_v15 }
 0x228   : > { %v2695_v31 = vadd.f32 %v2694_v60, %v2646_v14  ;;  %v2647_v48 = vmul.f32 %v4623_v32, %v2597_v21 }
 0x229   : > { %v3719_v16 = vpop.eup %3718  ;;  %3724 = vtanh.f32 %v2451_v4  ;;  %v2352_v23 = vmul.f32 0.044715, %v2302_v61  ;;  %v2303_v10 = vmul.f32 %v4671_v15, %v2253_v7  ;;  %v1956_v29 = vpop.f32.mrb[88].mxu1 }
 0x22a   : > { %v2696_v25 = vadd.f32 %v2695_v31, %v2647_v48  ;;  %v2548_v30 = vadd.f32 1.0, %v3719_v16  ;;  %v2181_v22 = vpop.f32.mrb[84].mxu0  ;;  %v1958_v28 = vpop.f32.mrb[89].mxu1  ;;  %v3241_v12 = vadd.f32 %v4612_v63, %v1956_v29 }
 0x22b   : > { %v3721_v55 = vpop.eup %3720  ;;  %v2402_v19 = vadd.f32 %v4666_v47, %v2352_v23  ;;  %v2353_v39 = vmul.f32 0.044715, %v2303_v10  ;;  %v4682_v20 = vadd.f32 %v3237_v27, %v2181_v22  ;;  %v2183_v32 = vpop.f32.mrb[85].mxu0 }
 0x22c   : > { %v1959_v41 = vpop.f32.mrb[90].mxu1  ;;  %v2598_v40 = vmul.f32 0.5, %v2548_v30  ;;  %v2549_v43 = vadd.f32 1.0, %v3721_v55  ;;  %v2184_v35 = vpop.f32.mrb[86].mxu0 }
 0x22d   : > { %v1961_v59 = vpop.f32.mrb[91].mxu1  ;;  %v2452_v36 = vmul.f32 0.7978846, %v2402_v19  ;;  %v2403_v37 = vadd.f32 %v4671_v15, %v2353_v39  ;;  %v2254_v52 = vmul.f32 %v4682_v20, %v4682_v20  ;;  %v4687_v45 = vadd.f32 %v3239_v34, %v2184_v35  ;;  %v2186_v46 = vpop.f32.mrb[87].mxu0 }
 0x22e   : > { %v2648_v26 = vmul.f32 %v4634_v62, %v2598_v40  ;;  %v2599_v56 = vmul.f32 0.5, %v2549_v43  ;;  %v3243_v6 = vadd.f32 %v4612_v63, %v1959_v41 }
 0x22f   : > { %3726 = vtanh.f32 %v2452_v36  ;;  %v2453_v8 = vmul.f32 0.7978846, %v2403_v37  ;;  %v2304_v3 = vmul.f32 %v4682_v20, %v2254_v52  ;;  %v2255_v50 = vmul.f32 %v4687_v45, %v4687_v45 }
 0x230   : > { %v2697_v53 = vadd.f32 %v2696_v25, %v2648_v26  ;;  %v2649_v49 = vmul.f32 %v4639_v51, %v2599_v56 }
 0x231   : > { %v3723_v60 = vpop.eup %3722  ;;  %3728 = vtanh.f32 %v2453_v8  ;;  %v2354_v38 = vmul.f32 0.044715, %v2304_v3  ;;  %v2305_v44 = vmul.f32 %v4687_v45, %v2255_v50  ;;  %v1964_v24 = vpop.f32.mrb[92].mxu1 }
 0x232   : > { %v2698_v62 = vadd.f32 %v2697_v53, %v2649_v49  ;;  %v2550_v5 = vadd.f32 1.0, %v3723_v60  ;;  %v2189_v2 = vpop.f32.mrb[88].mxu0  ;;  %v1966_v17 = vpop.f32.mrb[93].mxu1  ;;  %v3245_v30 = vadd.f32 %v4612_v63, %v1964_v24 }
 0x233   : > { %v3725_v9 = vpop.eup %3724  ;;  %v2404_v54 = vadd.f32 %v4682_v20, %v2354_v38  ;;  %v2355_v11 = vmul.f32 0.044715, %v2305_v44  ;;  %v4698_v42 = vadd.f32 %v3241_v12, %v2189_v2  ;;  %v2191_v51 = vpop.f32.mrb[89].mxu0 }
 0x234   : > { %v1967_v13 = vpop.f32.mrb[94].mxu1  ;;  %v2600_v1 = vmul.f32 0.5, %v2550_v5  ;;  %v2551_v18 = vadd.f32 1.0, %v3725_v9  ;;  %v2192_v57 = vpop.f32.mrb[90].mxu0 }
 0x235   : > { %v1969_v58 = vpop.f32.mrb[95].mxu1  ;;  %v2454_v14 = vmul.f32 0.7978846, %v2404_v54  ;;  %v2405_v21 = vadd.f32 %v4687_v45, %v2355_v11  ;;  %v2256_v4 = vmul.f32 %v4698_v42, %v4698_v42  ;;  %v4703_v61 = vadd.f32 %v3243_v6, %v2192_v57  ;;  %v2194_v7 = vpop.f32.mrb[91].mxu0 }
 0x236   : > { %v2650_v31 = vmul.f32 %v4650_v33, %v2600_v1  ;;  %v2601_v48 = vmul.f32 0.5, %v2551_v18  ;;  %v3247_v40 = vadd.f32 %v4612_v63, %v1967_v13 }
 0x237   : > { %3730 = vtanh.f32 %v2454_v14  ;;  %v2455_v16 = vmul.f32 0.7978846, %v2405_v21  ;;  %v2306_v27 = vmul.f32 %v4698_v42, %v2256_v4  ;;  %v2257_v23 = vmul.f32 %v4703_v61, %v4703_v61 }
 0x238   : > { %v2699_v10 = vadd.f32 %v2698_v62, %v2650_v31  ;;  %v2651_v29 = vmul.f32 %v4655_v0, %v2601_v48 }
 0x239   : > { %v3727_v25 = vpop.eup %3726  ;;  %3732 = vtanh.f32 %v2455_v16  ;;  %v2356_v22 = vmul.f32 0.044715, %v2306_v27  ;;  %v2307_v28 = vmul.f32 %v4703_v61, %v2257_v23  ;;  %v1972_v55 = vpop.f32.mrb[96].mxu1 }
 0x23a   : > { %v2700_v33 = vadd.f32 %v2699_v10, %v2651_v29  ;;  %v2552_v19 = vadd.f32 1.0, %v3727_v25  ;;  %v2197_v34 = vpop.f32.mrb[92].mxu0  ;;  %v1974_v39 = vpop.f32.mrb[97].mxu1  ;;  %v3249_v5 = vadd.f32 %v4612_v63, %v1972_v55 }
 0x23b   : > { %v3729_v32 = vpop.eup %3728  ;;  %v2406_v41 = vadd.f32 %v4698_v42, %v2356_v22  ;;  %v2357_v43 = vmul.f32 0.044715, %v2307_v28  ;;  %v4714_v35 = vadd.f32 %v3245_v30, %v2197_v34  ;;  %v2199_v0 = vpop.f32.mrb[93].mxu0 }
 0x23c   : > { %v1975_v59 = vpop.f32.mrb[98].mxu1  ;;  %v2602_v36 = vmul.f32 0.5, %v2552_v19  ;;  %v2553_v37 = vadd.f32 1.0, %v3729_v32  ;;  %v2200_v52 = vpop.f32.mrb[94].mxu0 }
 0x23d   : > { %v1977_v46 = vpop.f32.mrb[99].mxu1  ;;  %v2456_v26 = vmul.f32 0.7978846, %v2406_v41  ;;  %v2407_v56 = vadd.f32 %v4703_v61, %v2357_v43  ;;  %v2258_v8 = vmul.f32 %v4714_v35, %v4714_v35  ;;  %v4719_v3 = vadd.f32 %v3247_v40, %v2200_v52  ;;  %v2202_v50 = vpop.f32.mrb[95].mxu0 }
 0x23e   : > { %v2652_v53 = vmul.f32 %v4666_v47, %v2602_v36  ;;  %v2603_v49 = vmul.f32 0.5, %v2553_v37  ;;  %v3251_v51 = vadd.f32 %v4612_v63, %v1975_v59 }
 0x23f   : > { %3734 = vtanh.f32 %v2456_v26  ;;  %v2457_v60 = vmul.f32 0.7978846, %v2407_v56  ;;  %v2308_v12 = vmul.f32 %v4714_v35, %v2258_v8  ;;  %v2259_v38 = vmul.f32 %v4719_v3, %v4719_v3 }
 0x240   : > { %v2701_v44 = vadd.f32 %v2700_v33, %v2652_v53  ;;  %v2653_v24 = vmul.f32 %v4671_v15, %v2603_v49 }
 0x241   : > { %v3731_v62 = vpop.eup %3730  ;;  %3736 = vtanh.f32 %v2457_v60  ;;  %v2358_v2 = vmul.f32 0.044715, %v2308_v12  ;;  %v2309_v17 = vmul.f32 %v4719_v3, %v2259_v38 }
 0x242   : > { %v2702_v9 = vadd.f32 %v2701_v44, %v2653_v24  ;;  %v2554_v47 = vadd.f32 1.0, %v3731_v62  ;;  %v2205_v54 = vpop.f32.mrb[96].mxu0 }
 0x243   : > { %v3733_v6 = vpop.eup %3732  ;;  %v2408_v11 = vadd.f32 %v4714_v35, %v2358_v2  ;;  %v2359_v13 = vmul.f32 0.044715, %v2309_v17  ;;  %v3250_v1 = vadd.f32 %v3249_v5, %v2205_v54  ;;  %v2207_v18 = vpop.f32.mrb[97].mxu0 }
 0x244   : > { %v2604_v57 = vmul.f32 0.5, %v2554_v47  ;;  %v2555_v15 = vadd.f32 1.0, %v3733_v6  ;;  %v2208_v58 = vpop.f32.mrb[98].mxu0 }
 0x245   : > { %v2458_v14 = vmul.f32 0.7978846, %v2408_v11  ;;  %v2409_v21 = vadd.f32 %v4719_v3, %v2359_v13  ;;  %v2260_v4 = vmul.f32 %v3250_v1, %v3250_v1  ;;  %v3252_v7 = vadd.f32 %v3251_v51, %v2208_v58  ;;  %v2210_v31 = vpop.f32.mrb[99].mxu0 }
 0x246   : > { %v2654_v48 = vmul.f32 %v4682_v20, %v2604_v57  ;;  %v2605_v16 = vmul.f32 0.5, %v2555_v15  ;;  %v2825_v13 = vlaneseq }
 0x247   : > { %3738 = vtanh.f32 %v2458_v14  ;;  %v2459_v27 = vmul.f32 0.7978846, %v2409_v21  ;;  %v2310_v23 = vmul.f32 %v3250_v1, %v2260_v4  ;;  %v2261_v10 = vmul.f32 %v3252_v7, %v3252_v7 }
 0x248   : > { %v2703_v63 = vadd.f32 %v2702_v9, %v2654_v48  ;;  %v2655_v29 = vmul.f32 %v4687_v45, %v2605_v16  ;;  %v2826_v18 = vand.u32 127, %v2825_v13 }
 0x249   : > { %v3735_v25 = vpop.eup %3734  ;;  %3740 = vtanh.f32 %v2459_v27  ;;  %v2360_v30 = vmul.f32 0.044715, %v2310_v23  ;;  %v2311_v22 = vmul.f32 %v3252_v7, %v2261_v10 }
 0x24a   : > { %v2704_v28 = vadd.f32 %v2703_v63, %v2655_v29  ;;  %v2556_v55 = vadd.f32 1.0, %v3735_v25  ;;  %vm2827_vm1 = vcmp.lt.s32.totalorder %v2826_v18, 100 }
 0x24b   : > { %v3737_v33 = vpop.eup %3736  ;;  %v2410_v19 = vadd.f32 %v3250_v1, %v2360_v30  ;;  %v2361_v34 = vmul.f32 0.044715, %v2311_v22 }
 0x24c   : > { %v2606_v39 = vmul.f32 0.5, %v2556_v55  ;;  %v2557_v32 = vadd.f32 1.0, %v3737_v33 }
 0x24d   : > { %v2460_v20 = vmul.f32 0.7978846, %v2410_v19  ;;  %v2411_v41 = vadd.f32 %v3252_v7, %v2361_v34 }
 0x24e   : > { %v2656_v40 = vmul.f32 %v4698_v42, %v2606_v39  ;;  %v2607_v43 = vmul.f32 0.5, %v2557_v32 }
 0x24f   : > { %3742 = vtanh.f32 %v2460_v20  ;;  %v2461_v0 = vmul.f32 0.7978846, %v2411_v41 }
 0x250   : > { %v2705_v59 = vadd.f32 %v2704_v28, %v2656_v40  ;;  %v2657_v45 = vmul.f32 %v4703_v61, %v2607_v43 }
 0x251   : > { %v3739_v36 = vpop.eup %3738  ;;  %3744 = vtanh.f32 %v2461_v0 }
 0x252   : > { %v2706_v37 = vadd.f32 %v2705_v59, %v2657_v45  ;;  %v2558_v52 = vadd.f32 1.0, %v3739_v36 }
 0x253   : > { %v3741_v46 = vpop.eup %3740 }
 0x254   : > { %v2608_v26 = vmul.f32 0.5, %v2558_v52  ;;  %v2559_v56 = vadd.f32 1.0, %v3741_v46 }
 0x256   : > { %v2658_v8 = vmul.f32 %v4714_v35, %v2608_v26  ;;  %v2609_v50 = vmul.f32 0.5, %v2559_v56 }
 0x258   : > { %v2707_v53 = vadd.f32 %v2706_v37, %v2658_v8  ;;  %v2659_v49 = vmul.f32 %v4719_v3, %v2609_v50 }
 0x259   : > { %v3743_v42 = vpop.eup %3742 }
 0x25a   : > { %v2708_v60 = vadd.f32 %v2707_v53, %v2659_v49  ;;  %v2560_v12 = vadd.f32 1.0, %v3743_v42 }
 0x25b   : > { %v3745_v38 = vpop.eup %3744 }
 0x25c   : > { %v2610_v44 = vmul.f32 0.5, %v2560_v12  ;;  %v2561_v24 = vadd.f32 1.0, %v3745_v38 }
 0x25e   : > { %v2660_v61 = vmul.f32 %v3250_v1, %v2610_v44  ;;  %v2611_v62 = vmul.f32 0.5, %v2561_v24  ;;  %v2736_v1 = vld [vmem:[%s4751_s4] sm:$0x1] }
 0x260   : > { %v2709_v5 = vadd.f32 %v2708_v60, %v2660_v61  ;;  %v2661_v2 = vmul.f32 %v3252_v7, %v2611_v62 }
 0x262   : > { %v2710_v17 = vadd.f32 %v2709_v5, %v2661_v2 }
 0x264   : > { %v2711_v9 = vrot.slane %v2710_v17, 4 }
 0x266   : > { %v2712_v47 = vadd.f32 %v2711_v9, %v2710_v17 }
 0x268   : > { %v2713_v54 = vrot.slane %v2712_v47, 2 }
 0x26a   : > { %v2714_v35 = vadd.f32 %v2713_v54, %v2712_v47 }
 0x26c   : > { %v2715_v6 = vrot.slane %v2714_v35, 1 }
 0x26e   : > { %v2716_v11 = vadd.f32 %v2715_v6, %v2714_v35 }
 0x270   : > { %v2718_v51 = vmul.f32 0.0025, %v2716_v11 }
 0x272   : > { %v2719_v3 = vpack.c.bf16 %v2718_v51, %v2718_v51 }
 0x274   : > { %3118 = vmatmul.mubr.bf16.vlgmr.msra.gmra.mrb[100].mxu1 %v2719_v3 }
 0x347   : > { %v2819_v57 = vpop.f32.mrb[100].mxu1 }
 0x348   : > { %v2820_v15 = vadd.f32 %v2819_v57, %v2736_v1  ;;  %v3119_v58 = vpop.f32.mrb[101].mxu1 }
 0x349   : > { %v2822_v14 = vpop.f32.mrb[102].mxu1 }
 0x34a   : > { %v2828_v21 = vsel %vm2827_vm1, %v2820_v15, -inf  ;;  %v3120_v4 = vpop.f32.mrb[103].mxu1 }
 0x34b   : > { %2829 = vst [vmem:[%s220_s6] sm:$0x1] %v2828_v21 }
 0x34c PF: > { %s15_s18 = sadd.s32 1, %s3753_s18  }
 0x34d   : > { %p12_p4 = scmp.ge.s32.totalorder %s15_s18, 6  }
 0x34f   :  { %14 = sbr.rel (!%p12_p4) target bundleno = 1 (0x1), region = 70 }

</bundles_post_ra>
